<compile_context>
chip_gen: v5e
topology: v5e:2x2
jax: 0.10.0
libtpu: 0.0.40
codegen_flags: <defaults>
</compile_context>

<pallas_src>
import functools

import jax
import jax.numpy as jnp
from jax.experimental import pallas as pl
from jax.experimental.pallas import tpu as pltpu


def _round_up(x, m):
    return ((x + m - 1) // m) * m


def _pick_tile_m(m):
    # Prefer a tile that leaves >= 2 blocks on the (parallel) M axis so the
    # v7x megacore has something to shard; fall back to any 128-multiple.
    for t in (512, 256, 128):
        if m % t == 0 and m // t >= 2:
            return t
    for t in (512, 256, 128):
        if m % t == 0:
            return t
    return 128          # M will be zero-padded (not hit at the shapes used here)


# --------------------------------------------------------------------------
# Kernel 1: matmul + bias + ReLU   (bf16 operands, f32 epilogue, bf16 store)
# --------------------------------------------------------------------------
def _matmul_bias_relu_kernel(x_ref, w_ref, b_ref, o_ref):
    acc = jnp.dot(x_ref[...], w_ref[...], preferred_element_type=jnp.float32)
    # Bias + ReLU stay in f32 on the accumulator (v5e has no bf16 VPU path);
    # only the final store narrows to the output dtype (bf16 for hidden layers).
    o_ref[...] = jnp.maximum(acc + b_ref[...], 0.0).astype(o_ref.dtype)


def matmul_bias_relu(x, w, b, *, out_dtype=jnp.bfloat16):
    """Y = relu(X @ W + b) on the MXU.

    x: (M, Kp) bf16 with Kp a multiple of 128 (callers fold any K zero-padding
       into the im2col concatenate -- no extra padded activation copy).
    w: (K, N), b: (N,) with K <= Kp; weights/bias are zero-padded here to
       (Kp, Np) -- compile-time constants under jit, so the padding is free.
    Returns the full (M, Np) result; padded output columns are exactly zero
    (relu(0 + 0)), so callers can slice them off or carry them forward.
    """
    M, Kp = x.shape
    K, N = w.shape
    assert K <= Kp and Kp % 128 == 0 and b.shape == (N,)

    tm = _pick_tile_m(M)
    Mp = _round_up(M, tm)
    Np = _round_up(N, 128)
    tn = 256 if (Np % 256 == 0 and Np >= 512) else 128

    xb = x.astype(jnp.bfloat16)
    if Mp != M:
        # TODO(synk): only reached when M is not 128-aligned; replace this
        # padded copy with a masked final block if it ever matters.
        xb = jnp.zeros((Mp, Kp), jnp.bfloat16).at[:M].set(xb)
    wp = jnp.zeros((Kp, Np), jnp.bfloat16).at[:K, :N].set(w.astype(jnp.bfloat16))
    bp = jnp.zeros((1, Np), jnp.float32).at[0, :N].set(b.astype(jnp.float32))

    grid = (Mp // tm, Np // tn)
    out = pl.pallas_call(
        _matmul_bias_relu_kernel,
        out_shape=jax.ShapeDtypeStruct((Mp, Np), out_dtype),
        grid=grid,
        in_specs=[
            pl.BlockSpec((tm, Kp), lambda i, j: (i, 0)),   # full-K block: no K axis
            pl.BlockSpec((Kp, tn), lambda i, j: (0, j)),
            pl.BlockSpec((1, tn), lambda i, j: (0, j)),
        ],
        out_specs=pl.BlockSpec((tm, tn), lambda i, j: (i, j)),
        compiler_params=pltpu.CompilerParams(
            dimension_semantics=("parallel", "parallel"),
            # <= ~48 MiB is safe on every generation incl. v7x (64 MiB VMEM);
            # actual use at these shapes is well under 1 MiB per step.
            vmem_limit_bytes=48 * 1024 * 1024),
        cost_estimate=pl.CostEstimate(
            flops=2 * Mp * Kp * Np, transcendentals=0,
            bytes_accessed=(Mp * Kp + Kp * Np) * 2
                           + Mp * Np * jnp.dtype(out_dtype).itemsize),
    )(xb, wp, bp)
    return out[:M]


# --------------------------------------------------------------------------
# Kernel 2: fused 1x1-conv + bias + ReLU + global average pool
# --------------------------------------------------------------------------
def _conv1x1_relu_meanpool_kernel(x_ref, w_ref, b_ref, o_ref, *,
                                  n_batch, spatial):
    # x: (N*S, Cx) bf16, w: (Cx, tn) bf16, b: (1, tn) f32, o: (N, tn) f32
    y = jnp.dot(x_ref[...], w_ref[...], preferred_element_type=jnp.float32)
    y = jnp.maximum(y + b_ref[...], 0.0)
    # spatial (=64 here) is a multiple of 8, so this reshape is tile-aligned.
    o_ref[...] = jnp.mean(y.reshape(n_batch, spatial, -1),
                          axis=1).astype(o_ref.dtype)


def conv1x1_relu_avgpool(x_nhwc, w_hwio, b):
    """relu(1x1 conv(x)) then adaptive_avg_pool2d(.,(1,1)).view(N, Cout), fused
    so the wide (N, 8, 8, 2048) activation never round-trips through HBM.
    Accepts an input whose channel dim is zero-padded past the weights' Cin;
    the extra weight rows are zero-padded to match (contribute exactly 0)."""
    N, H, W, Cx = x_nhwc.shape
    kh, kw, Cin, Cout = w_hwio.shape
    assert (kh, kw) == (1, 1) and Cin <= Cx and Cx % 128 == 0
    S = H * W
    # Two big grid steps instead of 8 tiny ones (total VMEM ~2 MiB); the two
    # "parallel" steps keep both v7x TensorCores busy.
    tn = 1024 if Cout % 1024 == 0 else 128
    assert Cout % tn == 0

    x2d = x_nhwc.reshape(N * S, Cx).astype(jnp.bfloat16)
    w2d = jnp.zeros((Cx, Cout), jnp.bfloat16).at[:Cin].set(
        w_hwio.reshape(Cin, Cout).astype(jnp.bfloat16))
    b2d = b.astype(jnp.float32).reshape(1, Cout)

    kernel = functools.partial(_conv1x1_relu_meanpool_kernel,
                               n_batch=N, spatial=S)
    return pl.pallas_call(
        kernel,
        out_shape=jax.ShapeDtypeStruct((N, Cout), jnp.float32),
        grid=(Cout // tn,),
        in_specs=[
            pl.BlockSpec((N * S, Cx), lambda j: (0, 0)),
            pl.BlockSpec((Cx, tn), lambda j: (0, j)),
            pl.BlockSpec((1, tn), lambda j: (0, j)),
        ],
        out_specs=pl.BlockSpec((N, tn), lambda j: (0, j)),
        compiler_params=pltpu.CompilerParams(
            dimension_semantics=("parallel",),
            vmem_limit_bytes=48 * 1024 * 1024),
        cost_estimate=pl.CostEstimate(
            flops=2 * N * S * Cx * Cout, transcendentals=0,
            bytes_accessed=(N * S * Cx + Cx * Cout) * 2 + N * Cout * 4),
    )(x2d, w2d, b2d)


# --------------------------------------------------------------------------
# Glue: im2col for the 3x3 stride-2 layers (bf16; K pad folded into concat)
# --------------------------------------------------------------------------
def conv2d_relu(x_nhwc, w_hwio, b, *, stride, padding,
                out_dtype=jnp.bfloat16, trim_cout=True):
    # TODO(synk): at full 299x299 resolution this kh*kw im2col materialization
    # should be replaced by a tap-accumulating conv kernel (grid axis over the
    # kh*kw taps with a strided-input index_map); at the toy shapes used here
    # the patches tensor is tiny.
    N, H, W, Cin = x_nhwc.shape
    kh, kw, _, Cout = w_hwio.shape
    Ho = (H + 2 * padding - kh) // stride + 1
    Wo = (W + 2 * padding - kw) // stride + 1
    K = kh * kw * Cin
    Kp = _round_up(K, 128)

    xp = jnp.pad(x_nhwc.astype(jnp.bfloat16),
                 ((0, 0), (padding, padding), (padding, padding), (0, 0)))
    cols = [xp[:, di:di + stride * Ho:stride, dj:dj + stride * Wo:stride, :]
            for di in range(kh) for dj in range(kw)]
    if Kp != K:
        # Fold the K zero-pad into the same concatenate that builds patches:
        # no separate zero-padded copy of the activation is materialized.
        cols.append(jnp.zeros((N, Ho, Wo, Kp - K), jnp.bfloat16))
    patches = jnp.concatenate(cols, axis=-1)             # (N, Ho, Wo, Kp)
    x2d = patches.reshape(N * Ho * Wo, Kp)
    w2d = w_hwio.reshape(K, Cout)

    y2d = matmul_bias_relu(x2d, w2d, b, out_dtype=out_dtype)   # (M, Np)
    if trim_cout:
        y2d = y2d[:, :Cout]
    # With trim_cout=False the (exactly-zero) padded channels are carried
    # forward so the next layer sees a lane-aligned Cin without a slice/copy.
    return y2d.reshape(N, Ho, Wo, y2d.shape[-1])


# --------------------------------------------------------------------------
# FIDInceptionModel
# --------------------------------------------------------------------------
class FIDInceptionModelPallas:
    # TODO(synk): the pretrained torchvision inception_v3 backbone (dozens of
    # conv/BN/pool blocks + checkpoint weights) is not replicated; a
    # deterministic synthetic conv stack stands in, producing the hooked
    # "Mixed_7c"-style wide activation before the FID pooling head.
    def __init__(self, key):
        k1, k2, k3 = jax.random.split(key, 3)
        self.w1 = 0.10 * jax.random.normal(k1, (3, 3, 3, 32), jnp.float32)
        self.b1 = jnp.zeros((32,), jnp.float32)
        self.w2 = 0.05 * jax.random.normal(k2, (3, 3, 32, 192), jnp.float32)
        self.b2 = jnp.zeros((192,), jnp.float32)
        self.w3 = 0.05 * jax.random.normal(k3, (1, 1, 192, 2048), jnp.float32)
        self.b3 = jnp.zeros((2048,), jnp.float32)

    def __call__(self, x_nchw):
        # x: (N, 3, H, W) in [-1, 1]   (PyTorch NCHW convention)
        x = jnp.transpose(x_nchw, (0, 2, 3, 1))                    # -> NHWC
        h = conv2d_relu(x, self.w1, self.b1, stride=2, padding=1)  # (N,16,16,32)
        # Keep conv2's Cout zero-padded (192 -> 256) so the fused 1x1+pool
        # kernel gets a lane-aligned Cin with no extra slice/copy.
        h = conv2d_relu(h, self.w2, self.b2, stride=2, padding=1,
                        trim_cout=False)                           # (N,8,8,256)
        # "Mixed_7c" hook + F.adaptive_avg_pool2d(acts,(1,1)).view(N,2048),
        # fused into one 1x1-conv + mean-pool Pallas kernel -> (N, 2048).
        return conv1x1_relu_avgpool(h, self.w3, self.b3)


# --------------------------------------------------------------------------
# Pure-JAX reference (same bf16-operand / f32-accumulate / bf16-store math)
# --------------------------------------------------------------------------
def _ref_conv2d_relu(x_nhwc, w_hwio, b, *, stride, padding):
    N, H, W, Cin = x_nhwc.shape
    kh, kw, _, Cout = w_hwio.shape
    Ho = (H + 2 * padding - kh) // stride + 1
    Wo = (W + 2 * padding - kw) // stride + 1
    xp = jnp.pad(x_nhwc.astype(jnp.bfloat16),
                 ((0, 0), (padding, padding), (padding, padding), (0, 0)))
    cols = [xp[:, di:di + stride * Ho:stride, dj:dj + stride * Wo:stride, :]
            for di in range(kh) for dj in range(kw)]
    patches = jnp.concatenate(cols, axis=-1).reshape(N * Ho * Wo, kh * kw * Cin)
    y = jnp.dot(patches, w_hwio.reshape(kh * kw * Cin, Cout).astype(jnp.bfloat16),
                preferred_element_type=jnp.float32) + b.astype(jnp.float32)
    # Hidden activations are stored as bf16 in the Pallas path too.
    return jnp.maximum(y, 0.0).astype(jnp.bfloat16).reshape(N, Ho, Wo, Cout)


def _ref_forward(model, x_nchw):
    x = jnp.transpose(x_nchw, (0, 2, 3, 1))
    h = _ref_conv2d_relu(x, model.w1, model.b1, stride=2, padding=1)
    h = _ref_conv2d_relu(h, model.w2, model.b2, stride=2, padding=1)
    N, H, W, Cin = h.shape
    y = jnp.dot(h.reshape(N * H * W, Cin),
                model.w3.reshape(Cin, 2048).astype(jnp.bfloat16),
                preferred_element_type=jnp.float32) + model.b3
    y = jnp.maximum(y, 0.0).reshape(N, H * W, 2048)
    return jnp.mean(y, axis=1)


if __name__ == "__main__":
    key = jax.random.PRNGKey(0)
    k_param, k_input = jax.random.split(key)

    model = FIDInceptionModelPallas(k_param)

    # Small-shape analogue of (N, 3, 299, 299) inputs in range [-1, 1].
    x = jax.random.uniform(k_input, (2, 3, 32, 32), jnp.float32,
                           minval=-1.0, maxval=1.0)

    forward = jax.jit(lambda xx: model(xx))
    out = jax.block_until_ready(forward(x))

    assert out.shape == (2, 2048), out.shape
    assert out.dtype == jnp.float32
    assert bool(jnp.isfinite(out).all())

    # Sanity: matches a pure-JAX forward using the same bf16/f32 matmul math.
    ref = jax.block_until_ready(jax.jit(lambda xx: _ref_forward(model, xx))(x))
    max_err = float(jnp.max(jnp.abs(out - ref)))
    assert jnp.allclose(out, ref, atol=1e-2, rtol=1e-2), max_err

    print("KERNEL_OK")
</pallas_src>

<mosaic_0001>
module attributes {stable_mosaic.version = 11 : i64} {
  func.func @_matmul_bias_relu_kernel(%arg0: i32, %arg1: i32, %arg2: memref<256x128xbf16, #tpu.memory_space<vmem>>, %arg3: memref<128x128xbf16, #tpu.memory_space<vmem>>, %arg4: memref<1x128xf32, #tpu.memory_space<vmem>>, %arg5: memref<256x128xbf16, #tpu.memory_space<vmem>>) attributes {dimension_semantics = [#tpu.dimension_semantics<parallel>, #tpu.dimension_semantics<parallel>], iteration_bounds = array<i64: 2, 1>, scalar_prefetch = 0 : i64, scratch_operands = 0 : i64, tpu.core_type = #tpu.core_type<tc>, window_params = [{transform_indices = @transform_0, window_bounds = array<i64: 256, 128>}, {transform_indices = @transform_1, window_bounds = array<i64: 128, 128>}, {transform_indices = @transform_2, window_bounds = array<i64: 1, 128>}, {transform_indices = @transform_3, window_bounds = array<i64: 256, 128>}]} {
    %c0 = arith.constant 0 : index
    %c0_0 = arith.constant 0 : index
    %0 = vector.load %arg2[%c0, %c0_0] : memref<256x128xbf16, #tpu.memory_space<vmem>>, vector<256x128xbf16>
    %c0_1 = arith.constant 0 : index
    %c0_2 = arith.constant 0 : index
    %1 = vector.load %arg3[%c0_1, %c0_2] : memref<128x128xbf16, #tpu.memory_space<vmem>>, vector<128x128xbf16>
    %cst = arith.constant dense<0.000000e+00> : vector<256x128xf32>
    %2 = tpu.matmul %0, %1, %cst {dimension_numbers = #tpu.dot_dimension_numbers<[1], [0], [0], [1], [0, 0, 1, 1], [], []>} : vector<256x128xbf16>, vector<128x128xbf16>, vector<256x128xf32> -> vector<256x128xf32>
    %c0_3 = arith.constant 0 : index
    %c0_4 = arith.constant 0 : index
    %3 = vector.load %arg4[%c0_3, %c0_4] : memref<1x128xf32, #tpu.memory_space<vmem>>, vector<1x128xf32>
    %4 = vector.broadcast %3 : vector<1x128xf32> to vector<256x128xf32>
    %5 = arith.addf %2, %4 : vector<256x128xf32>
    %cst_5 = arith.constant 0.000000e+00 : f32
    %6 = vector.broadcast %cst_5 : f32 to vector<256x128xf32>
    %7 = arith.maximumf %5, %6 : vector<256x128xf32>
    %8 = arith.truncf %7 : vector<256x128xf32> to vector<256x128xbf16>
    %c0_6 = arith.constant 0 : index
    %c0_7 = arith.constant 0 : index
    %9 = vector.load %arg5[%c0_6, %c0_7] : memref<256x128xbf16, #tpu.memory_space<vmem>>, vector<256x128xbf16>
    tpu.vector_store %arg5[%c0_6, %c0_7], %8 {strides = array<i32>} : memref<256x128xbf16, #tpu.memory_space<vmem>>, vector<256x128xbf16>,
    return
  }
  func.func @transform_0(%arg0: i32, %arg1: i32) -> (i32, i32) {
    %c0_i32 = arith.constant 0 : i32
    %c0_i32_0 = arith.constant 0 : i32
    return %arg0, %c0_i32 : i32, i32
  }
  func.func @transform_1(%arg0: i32, %arg1: i32) -> (i32, i32) {
    %c0_i32 = arith.constant 0 : i32
    %c0_i32_0 = arith.constant 0 : i32
    return %c0_i32, %arg1 : i32, i32
  }
  func.func @transform_2(%arg0: i32, %arg1: i32) -> (i32, i32) {
    %c0_i32 = arith.constant 0 : i32
    %c0_i32_0 = arith.constant 0 : i32
    return %c0_i32, %arg1 : i32, i32
  }
  func.func @transform_3(%arg0: i32, %arg1: i32) -> (i32, i32) {
    %c0_i32 = arith.constant 0 : i32
    return %arg0, %arg1 : i32, i32
  }
}

module attributes {stable_mosaic.version = 11 : i64} {
  func.func @_matmul_bias_relu_kernel(%arg0: i32, %arg1: i32, %arg2: memref<128x384xbf16, #tpu.memory_space<vmem>>, %arg3: memref<384x128xbf16, #tpu.memory_space<vmem>>, %arg4: memref<1x128xf32, #tpu.memory_space<vmem>>, %arg5: memref<128x128xbf16, #tpu.memory_space<vmem>>) attributes {dimension_semantics = [#tpu.dimension_semantics<parallel>, #tpu.dimension_semantics<parallel>], iteration_bounds = array<i64: 1, 2>, scalar_prefetch = 0 : i64, scratch_operands = 0 : i64, tpu.core_type = #tpu.core_type<tc>, window_params = [{transform_indices = @transform_0, window_bounds = array<i64: 128, 384>}, {transform_indices = @transform_1, window_bounds = array<i64: 384, 128>}, {transform_indices = @transform_2, window_bounds = array<i64: 1, 128>}, {transform_indices = @transform_3, window_bounds = array<i64: 128, 128>}]} {
    %c0 = arith.constant 0 : index
    %c0_0 = arith.constant 0 : index
    %0 = vector.load %arg2[%c0, %c0_0] : memref<128x384xbf16, #tpu.memory_space<vmem>>, vector<128x384xbf16>
    %c0_1 = arith.constant 0 : index
    %c0_2 = arith.constant 0 : index
    %1 = vector.load %arg3[%c0_1, %c0_2] : memref<384x128xbf16, #tpu.memory_space<vmem>>, vector<384x128xbf16>
    %cst = arith.constant dense<0.000000e+00> : vector<128x128xf32>
    %2 = tpu.matmul %0, %1, %cst {dimension_numbers = #tpu.dot_dimension_numbers<[1], [0], [0], [1], [0, 0, 1, 1], [], []>} : vector<128x384xbf16>, vector<384x128xbf16>, vector<128x128xf32> -> vector<128x128xf32>
    %c0_3 = arith.constant 0 : index
    %c0_4 = arith.constant 0 : index
    %3 = vector.load %arg4[%c0_3, %c0_4] : memref<1x128xf32, #tpu.memory_space<vmem>>, vector<1x128xf32>
    %4 = vector.broadcast %3 : vector<1x128xf32> to vector<128x128xf32>
    %5 = arith.addf %2, %4 : vector<128x128xf32>
    %cst_5 = arith.constant 0.000000e+00 : f32
    %6 = vector.broadcast %cst_5 : f32 to vector<128x128xf32>
    %7 = arith.maximumf %5, %6 : vector<128x128xf32>
    %8 = arith.truncf %7 : vector<128x128xf32> to vector<128x128xbf16>
    %c0_6 = arith.constant 0 : index
    %c0_7 = arith.constant 0 : index
    %9 = vector.load %arg5[%c0_6, %c0_7] : memref<128x128xbf16, #tpu.memory_space<vmem>>, vector<128x128xbf16>
    tpu.vector_store %arg5[%c0_6, %c0_7], %8 {strides = array<i32>} : memref<128x128xbf16, #tpu.memory_space<vmem>>, vector<128x128xbf16>,
    return
  }
  func.func @transform_0(%arg0: i32, %arg1: i32) -> (i32, i32) {
    %c0_i32 = arith.constant 0 : i32
    %c0_i32_0 = arith.constant 0 : i32
    return %arg0, %c0_i32 : i32, i32
  }
  func.func @transform_1(%arg0: i32, %arg1: i32) -> (i32, i32) {
    %c0_i32 = arith.constant 0 : i32
    %c0_i32_0 = arith.constant 0 : i32
    return %c0_i32, %arg1 : i32, i32
  }
  func.func @transform_2(%arg0: i32, %arg1: i32) -> (i32, i32) {
    %c0_i32 = arith.constant 0 : i32
    %c0_i32_0 = arith.constant 0 : i32
    return %c0_i32, %arg1 : i32, i32
  }
  func.func @transform_3(%arg0: i32, %arg1: i32) -> (i32, i32) {
    %c0_i32 = arith.constant 0 : i32
    return %arg0, %arg1 : i32, i32
  }
}

module attributes {stable_mosaic.version = 11 : i64} {
  func.func @_conv1x1_relu_meanpool_kernel(%arg0: i32, %arg1: memref<128x256xbf16, #tpu.memory_space<vmem>>, %arg2: memref<256x1024xbf16, #tpu.memory_space<vmem>>, %arg3: memref<1x1024xf32, #tpu.memory_space<vmem>>, %arg4: memref<2x1024xf32, #tpu.memory_space<vmem>>) attributes {dimension_semantics = [#tpu.dimension_semantics<parallel>], iteration_bounds = array<i64: 2>, scalar_prefetch = 0 : i64, scratch_operands = 0 : i64, tpu.core_type = #tpu.core_type<tc>, window_params = [{pipeline_mode = #tpu.pipeline_mode<synchronous>, transform_indices = @transform_0, window_bounds = array<i64: 128, 256>}, {transform_indices = @transform_1, window_bounds = array<i64: 256, 1024>}, {transform_indices = @transform_2, window_bounds = array<i64: 1, 1024>}, {transform_indices = @transform_3, window_bounds = array<i64: 2, 1024>}]} {
    %c0 = arith.constant 0 : index
    %c0_0 = arith.constant 0 : index
    %0 = vector.load %arg1[%c0, %c0_0] : memref<128x256xbf16, #tpu.memory_space<vmem>>, vector<128x256xbf16>
    %c0_1 = arith.constant 0 : index
    %c0_2 = arith.constant 0 : index
    %1 = vector.load %arg2[%c0_1, %c0_2] : memref<256x1024xbf16, #tpu.memory_space<vmem>>, vector<256x1024xbf16>
    %cst = arith.constant dense<0.000000e+00> : vector<128x1024xf32>
    %2 = tpu.matmul %0, %1, %cst {dimension_numbers = #tpu.dot_dimension_numbers<[1], [0], [0], [1], [0, 0, 1, 1], [], []>} : vector<128x256xbf16>, vector<256x1024xbf16>, vector<128x1024xf32> -> vector<128x1024xf32>
    %c0_3 = arith.constant 0 : index
    %c0_4 = arith.constant 0 : index
    %3 = vector.load %arg3[%c0_3, %c0_4] : memref<1x1024xf32, #tpu.memory_space<vmem>>, vector<1x1024xf32>
    %4 = vector.broadcast %3 : vector<1x1024xf32> to vector<128x1024xf32>
    %5 = arith.addf %2, %4 : vector<128x1024xf32>
    %cst_5 = arith.constant 0.000000e+00 : f32
    %6 = vector.broadcast %cst_5 : f32 to vector<128x1024xf32>
    %7 = arith.maximumf %5, %6 : vector<128x1024xf32>
    %8 = vector.shape_cast %7 : vector<128x1024xf32> to vector<2x64x1024xf32>
    %cst_6 = arith.constant dense<0.000000e+00> : vector<2x1024xf32>
    %9 = vector.multi_reduction <add>, %8, %cst_6 [1] : vector<2x64x1024xf32> to vector<2x1024xf32>
    %cst_7 = arith.constant 6.400000e+01 : f32
    %10 = vector.broadcast %cst_7 : f32 to vector<2x1024xf32>
    %11 = arith.divf %9, %10 : vector<2x1024xf32>
    %c0_8 = arith.constant 0 : index
    %c0_9 = arith.constant 0 : index
    %12 = vector.load %arg4[%c0_8, %c0_9] : memref<2x1024xf32, #tpu.memory_space<vmem>>, vector<2x1024xf32>
    tpu.vector_store %arg4[%c0_8, %c0_9], %11 {strides = array<i32>} : memref<2x1024xf32, #tpu.memory_space<vmem>>, vector<2x1024xf32>,
    return
  }
  func.func @transform_0(%arg0: i32) -> (i32, i32) {
    %c0_i32 = arith.constant 0 : i32
    %c0_i32_0 = arith.constant 0 : i32
    %c0_i32_1 = arith.constant 0 : i32
    return %c0_i32, %c0_i32_0 : i32, i32
  }
  func.func @transform_1(%arg0: i32) -> (i32, i32) {
    %c0_i32 = arith.constant 0 : i32
    %c0_i32_0 = arith.constant 0 : i32
    return %c0_i32, %arg0 : i32, i32
  }
  func.func @transform_2(%arg0: i32) -> (i32, i32) {
    %c0_i32 = arith.constant 0 : i32
    %c0_i32_0 = arith.constant 0 : i32
    return %c0_i32, %arg0 : i32, i32
  }
  func.func @transform_3(%arg0: i32) -> (i32, i32) {
    %c0_i32 = arith.constant 0 : i32
    %c0_i32_0 = arith.constant 0 : i32
    return %c0_i32, %arg0 : i32, i32
  }
}

</mosaic_0001>

<bundles_post_ra>
// kernel: _lambda_.3
= control target key start
LH: loop header
LB: loop body
LE: loop exit
PB: predicated region body
PF: predicated region fallthrough
CT: control target
= control target key end

     0   :  { %s1029_s12 = smov 0   ;;  %s1031_s13 = smov 0   ;;  %s1169_s0 = inlined_call_operand.vmem [shape: bf16[512,128], index: 0, kind: input, shape index: {}]   ;;  %s1170_s1 = inlined_call_operand.vmem [shape: bf16[128,128], index: 1, kind: input, shape index: {}]   ;;  %s1171_s2 = inlined_call_operand.vmem [shape: f32[1,128], index: 2, kind: input, shape index: {}]   ;;  %s1172_s3 = inlined_call_operand.vmem [shape: bf16[512,128], index: 3, kind: output, shape index: {}]  }
   0x1   :  { %s1033_s14 = smov 0  }
   0x2 LB: > { %s25_s15 = sadd.s32 1, %s1003_s13  ;;  %p714_p0 = scmp.ge.s32.totalorder %s1007_s14, 1  ;;  %s1007_s14 = sphi %s1033_s14, %s13_s14   ;;  %s1003_s13 = sphi %s1031_s13, %s1174_s13   ;;  %s999_s12 = sphi %s1029_s12, %s1173_s12  }
   0x3   : > { %p27_p1 = scmp.ge.s32.totalorder %s25_s15, 2  ;;  %p169_p2 = scmp.lt.s32.totalorder %s1007_s14, 3 }
   0x5   : > { %s1176_s15 = smov (%p27_p1, %s25_s15), 0  ;;  %p170_p3 = pnand %p714_p0, %p169_p2 }
   0x6   : > { %s715_s24 = sshll.u32 (!%p170_p3), %s999_s12, 5 }
   0x7   : > { %173 = sbr.rel (%p170_p3) target bundleno = 241 (0xf1), region = 32  ;;  %p204_p4 = scmp.lt.s32.totalorder (!%p170_p3), %s715_s24, 63 }
   0xc   : > { %v840_v0 = vld [vmem:[%s1170_s1 + $0x38] sm:$0xff]  ;;  %v839_v1 = vld [vmem:[%s1170_s1 + $0x30] sm:$0xff]  ;;  %v838_v2 = vld [vmem:[%s1170_s1 + $0x28] sm:$0xff]  ;;  %s1178_s24 = smov (!%p204_p4, %s715_s24), 63 }
   0xd   : > { %421 = vmatpush.bf16.msra.mxu0 %v840_v0  ;;  %936 = vmatpush.bf16.msra.mxu1 %v840_v0  ;;  %v837_v3 = vld [vmem:[%s1170_s1 + $0x20] sm:$0xff]  ;;  %v836_v4 = vld [vmem:[%s1170_s1 + $0x18] sm:$0xff]  ;;  %v835_v5 = vld [vmem:[%s1170_s1 + $0x10] sm:$0xff]  ;;  %s716_s4 = sshll.u32 %s1178_s24, 2 }
   0xe   : > { %937 = vmatpush.bf16.msra.mxu2 %v840_v0  ;;  %938 = vmatpush.bf16.msra.mxu3 %v840_v0  ;;  %v834_v6 = vld [vmem:[%s1170_s1 + $0x8] sm:$0xff]  ;;  %v833_v7 = vld [vmem:[%s1170_s1] sm:$0xff]  ;;  %s1082_s9 = scalar_lea.vmem %s1169_s0, %s716_s4  ;;  %s1114_s17 = scalar_lea.vmem %s1172_s3, %s716_s4 }
   0xf   : > { %v817_v8 = vld [vmem:[%s1082_s9] sm:$0xff]  ;;  %v818_v12 = vld [vmem:[%s1082_s9 + $0x8] sm:$0xff]  ;;  %v819_v16 = vld [vmem:[%s1082_s9 + $0x10] sm:$0xff] }
  0x10   : > { %v821_v9 = vld [vmem:[%s1082_s9 + $0x20] sm:$0xff]  ;;  %v822_v13 = vld [vmem:[%s1082_s9 + $0x28] sm:$0xff]  ;;  %v823_v17 = vld [vmem:[%s1082_s9 + $0x30] sm:$0xff] }
  0x11   : > { %422 = vmatpush.bf16.msra.mxu0 %v839_v1  ;;  %939 = vmatpush.bf16.msra.mxu1 %v839_v1  ;;  %v825_v10 = vld [vmem:[%s1082_s9 + $0x40] sm:$0xff]  ;;  %v826_v14 = vld [vmem:[%s1082_s9 + $0x48] sm:$0xff]  ;;  %v827_v18 = vld [vmem:[%s1082_s9 + $0x50] sm:$0xff] }
  0x12   : > { %940 = vmatpush.bf16.msra.mxu2 %v839_v1  ;;  %941 = vmatpush.bf16.msra.mxu3 %v839_v1  ;;  %v829_v11 = vld [vmem:[%s1082_s9 + $0x60] sm:$0xff]  ;;  %v830_v15 = vld [vmem:[%s1082_s9 + $0x68] sm:$0xff]  ;;  %v831_v19 = vld [vmem:[%s1082_s9 + $0x70] sm:$0xff] }
  0x13   : > { %v820_v20 = vld [vmem:[%s1082_s9 + $0x18] sm:$0xff]  ;;  %v1103_v26 = vld [vmem:[%s1171_s2] ss:$0 sm:$0xff] }
  0x14   : > { %v824_v21 = vld [vmem:[%s1082_s9 + $0x38] sm:$0xff] }
  0x15   : > { %423 = vmatpush.bf16.msra.mxu0 %v838_v2  ;;  %942 = vmatpush.bf16.msra.mxu1 %v838_v2  ;;  %v828_v22 = vld [vmem:[%s1082_s9 + $0x58] sm:$0xff] }
  0x16   : > { %943 = vmatpush.bf16.msra.mxu2 %v838_v2  ;;  %944 = vmatpush.bf16.msra.mxu3 %v838_v2  ;;  %v832_v23 = vld [vmem:[%s1082_s9 + $0x78] sm:$0xff] }
  0x19   : > { %424 = vmatpush.bf16.msra.mxu0 %v837_v3  ;;  %945 = vmatpush.bf16.msra.mxu1 %v837_v3 }
  0x1a   : > { %946 = vmatpush.bf16.msra.mxu2 %v837_v3  ;;  %947 = vmatpush.bf16.msra.mxu3 %v837_v3 }
  0x1d   : > { %425 = vmatpush.bf16.msra.mxu0 %v836_v4  ;;  %948 = vmatpush.bf16.msra.mxu1 %v836_v4 }
  0x1e   : > { %949 = vmatpush.bf16.msra.mxu2 %v836_v4  ;;  %950 = vmatpush.bf16.msra.mxu3 %v836_v4 }
  0x21   : > { %426 = vmatpush.bf16.msra.mxu0 %v835_v5  ;;  %951 = vmatpush.bf16.msra.mxu1 %v835_v5 }
  0x22   : > { %952 = vmatpush.bf16.msra.mxu2 %v835_v5  ;;  %953 = vmatpush.bf16.msra.mxu3 %v835_v5 }
  0x25   : > { %427 = vmatpush.bf16.msra.mxu0 %v834_v6  ;;  %954 = vmatpush.bf16.msra.mxu1 %v834_v6 }
  0x26   : > { %955 = vmatpush.bf16.msra.mxu2 %v834_v6  ;;  %956 = vmatpush.bf16.msra.mxu3 %v834_v6 }
  0x29   : > { %428 = vmatpush.bf16.msra.mxu0 %v833_v7  ;;  %957 = vmatpush.bf16.msra.mxu1 %v833_v7 }
  0x2a   : > { %958 = vmatpush.bf16.msra.mxu2 %v833_v7  ;;  %959 = vmatpush.bf16.msra.mxu3 %v833_v7 }
  0x2c   : > { %429 = vmatmul.bf16.vlgmr.msra.gmra.mxu0 %v817_v8  ;;  %449 = vmatmul.bf16.vlgmr.msra.gmra.mxu1 %v821_v9 }
  0x2d   : > { %469 = vmatmul.bf16.vlgmr.msra.gmra.mxu2 %v825_v10  ;;  %489 = vmatmul.bf16.vlgmr.msra.gmra.mxu3 %v829_v11 }
  0x3c   : > { %434 = vmatmul.bf16.gmra.mxu0 %v818_v12  ;;  %454 = vmatmul.bf16.gmra.mxu1 %v822_v13 }
  0x3d   : > { %474 = vmatmul.bf16.gmra.mxu2 %v826_v14  ;;  %494 = vmatmul.bf16.gmra.mxu3 %v830_v15 }
  0x4c   : > { %439 = vmatmul.bf16.gmra.mxu0 %v819_v16  ;;  %459 = vmatmul.bf16.gmra.mxu1 %v823_v17 }
  0x4d   : > { %479 = vmatmul.bf16.gmra.mxu2 %v827_v18  ;;  %499 = vmatmul.bf16.gmra.mxu3 %v831_v19 }
  0x5c   : > { %444 = vmatmul.bf16.gmra.mxu0 %v820_v20  ;;  %464 = vmatmul.bf16.gmra.mxu1 %v824_v21 }
  0x5d   : > { %484 = vmatmul.bf16.gmra.mxu2 %v828_v22  ;;  %504 = vmatmul.bf16.gmra.mxu3 %v832_v23 }
  0xa9   : > { %v430_v24 = vpop.f32.mrf.mxu0  ;;  %v450_v25 = vpop.f32.mrf.mxu1 }
  0xaa   : > { %v431_v27 = vadd.f32 %v1103_v26, %v430_v24  ;;  %v451_v28 = vadd.f32 %v1103_v26, %v450_v25 }
  0xac   : > { %v510_v35 = vmax.f32 %v431_v27, 0.0  ;;  %v518_v36 = vmax.f32 %v451_v28, 0.0 }
  0xb0   : > { %v470_v29 = vpop.f32.mrf.mxu2  ;;  %v490_v30 = vpop.f32.mrf.mxu3 }
  0xb1   : > { %v432_v31 = vpop.f32.mrf.mxu0  ;;  %v452_v32 = vpop.f32.mrf.mxu1  ;;  %v471_v41 = vadd.f32 %v1103_v26, %v470_v29  ;;  %v491_v42 = vadd.f32 %v1103_v26, %v490_v30 }
  0xb2   : > { %v433_v33 = vadd.f32 %v1103_v26, %v432_v31  ;;  %v453_v34 = vadd.f32 %v1103_v26, %v452_v32 }
  0xb3   : > { %v526_v49 = vmax.f32 %v471_v41, 0.0  ;;  %v534_v50 = vmax.f32 %v491_v42, 0.0 }
  0xb4   : > { %v511_v37 = vmax.f32 %v433_v33, 0.0  ;;  %v519_v38 = vmax.f32 %v453_v34, 0.0 }
  0xb6   : > { %v844_v39 = vpack.c.bf16 %v511_v37, %v510_v35  ;;  %v864_v40 = vpack.c.bf16 %v519_v38, %v518_v36 }
  0xb8   : > { %845 = vst [vmem:[%s1114_s17] sm:$0xff] %v844_v39   ;;  %v472_v43 = vpop.f32.mrf.mxu2  ;;  %v492_v44 = vpop.f32.mrf.mxu3 }
  0xb9   : > { %924 = vst [vmem:[%s1114_s17 + $0x20] sm:$0xff] %v864_v40   ;;  %v473_v45 = vadd.f32 %v1103_v26, %v472_v43  ;;  %v493_v46 = vadd.f32 %v1103_v26, %v492_v44  ;;  %v435_v47 = vpop.f32.mrf.mxu0  ;;  %v455_v48 = vpop.f32.mrf.mxu1 }
  0xba   : > { %v436_v55 = vadd.f32 %v1103_v26, %v435_v47  ;;  %v456_v56 = vadd.f32 %v1103_v26, %v455_v48 }
  0xbb   : > { %v527_v51 = vmax.f32 %v473_v45, 0.0  ;;  %v535_v52 = vmax.f32 %v493_v46, 0.0 }
  0xbc   : > { %v512_v63 = vmax.f32 %v436_v55, 0.0  ;;  %v520_v0 = vmax.f32 %v456_v56, 0.0 }
  0xbd   : > { %v884_v53 = vpack.c.bf16 %v527_v51, %v526_v49  ;;  %v904_v54 = vpack.c.bf16 %v535_v52, %v534_v50 }
  0xbf   : > { %928 = vst [vmem:[%s1114_s17 + $0x40] sm:$0xff] %v884_v53  }
  0xc0   : > { %932 = vst [vmem:[%s1114_s17 + $0x60] sm:$0xff] %v904_v54   ;;  %v475_v57 = vpop.f32.mrf.mxu2  ;;  %v495_v58 = vpop.f32.mrf.mxu3 }
  0xc1   : > { %v437_v59 = vpop.f32.mrf.mxu0  ;;  %v457_v60 = vpop.f32.mrf.mxu1  ;;  %v476_v5 = vadd.f32 %v1103_v26, %v475_v57  ;;  %v496_v6 = vadd.f32 %v1103_v26, %v495_v58 }
  0xc2   : > { %v438_v61 = vadd.f32 %v1103_v26, %v437_v59  ;;  %v458_v62 = vadd.f32 %v1103_v26, %v457_v60 }
  0xc3   : > { %v528_v13 = vmax.f32 %v476_v5, 0.0  ;;  %v536_v14 = vmax.f32 %v496_v6, 0.0 }
  0xc4   : > { %v513_v1 = vmax.f32 %v438_v61, 0.0  ;;  %v521_v2 = vmax.f32 %v458_v62, 0.0 }
  0xc6   : > { %v849_v3 = vpack.c.bf16 %v513_v1, %v512_v63  ;;  %v869_v4 = vpack.c.bf16 %v521_v2, %v520_v0 }
  0xc8   : > { %921 = vst [vmem:[%s1114_s17 + $0x8] sm:$0xff] %v849_v3   ;;  %v477_v7 = vpop.f32.mrf.mxu2  ;;  %v497_v8 = vpop.f32.mrf.mxu3 }
  0xc9   : > { %925 = vst [vmem:[%s1114_s17 + $0x28] sm:$0xff] %v869_v4   ;;  %v478_v9 = vadd.f32 %v1103_v26, %v477_v7  ;;  %v498_v10 = vadd.f32 %v1103_v26, %v497_v8  ;;  %v440_v11 = vpop.f32.mrf.mxu0  ;;  %v460_v12 = vpop.f32.mrf.mxu1 }
  0xca   : > { %v441_v19 = vadd.f32 %v1103_v26, %v440_v11  ;;  %v461_v20 = vadd.f32 %v1103_v26, %v460_v12 }
  0xcb   : > { %v529_v15 = vmax.f32 %v478_v9, 0.0  ;;  %v537_v16 = vmax.f32 %v498_v10, 0.0 }
  0xcc   : > { %v514_v28 = vmax.f32 %v441_v19, 0.0  ;;  %v522_v29 = vmax.f32 %v461_v20, 0.0 }
  0xcd   : > { %v889_v17 = vpack.c.bf16 %v529_v15, %v528_v13  ;;  %v909_v18 = vpack.c.bf16 %v537_v16, %v536_v14 }
  0xcf   : > { %929 = vst [vmem:[%s1114_s17 + $0x48] sm:$0xff] %v889_v17  }
  0xd0   : > { %933 = vst [vmem:[%s1114_s17 + $0x68] sm:$0xff] %v909_v18   ;;  %v480_v21 = vpop.f32.mrf.mxu2  ;;  %v500_v22 = vpop.f32.mrf.mxu3 }
  0xd1   : > { %v442_v23 = vpop.f32.mrf.mxu0  ;;  %v462_v24 = vpop.f32.mrf.mxu1  ;;  %v481_v34 = vadd.f32 %v1103_v26, %v480_v21  ;;  %v501_v35 = vadd.f32 %v1103_v26, %v500_v22 }
  0xd2   : > { %v443_v25 = vadd.f32 %v1103_v26, %v442_v23  ;;  %v463_v27 = vadd.f32 %v1103_v26, %v462_v24 }
  0xd3   : > { %v530_v42 = vmax.f32 %v481_v34, 0.0  ;;  %v538_v43 = vmax.f32 %v501_v35, 0.0 }
  0xd4   : > { %v515_v30 = vmax.f32 %v443_v25, 0.0  ;;  %v523_v31 = vmax.f32 %v463_v27, 0.0 }
  0xd6   : > { %v854_v32 = vpack.c.bf16 %v515_v30, %v514_v28  ;;  %v874_v33 = vpack.c.bf16 %v523_v31, %v522_v29 }
  0xd8   : > { %922 = vst [vmem:[%s1114_s17 + $0x10] sm:$0xff] %v854_v32   ;;  %v482_v36 = vpop.f32.mrf.mxu2  ;;  %v502_v37 = vpop.f32.mrf.mxu3 }
  0xd9   : > { %926 = vst [vmem:[%s1114_s17 + $0x30] sm:$0xff] %v874_v33   ;;  %v483_v38 = vadd.f32 %v1103_v26, %v482_v36  ;;  %v503_v39 = vadd.f32 %v1103_v26, %v502_v37  ;;  %v445_v40 = vpop.f32.mrf.mxu0  ;;  %v465_v41 = vpop.f32.mrf.mxu1 }
  0xda   : > { %v446_v48 = vadd.f32 %v1103_v26, %v445_v40  ;;  %v466_v49 = vadd.f32 %v1103_v26, %v465_v41 }
  0xdb   : > { %v531_v44 = vmax.f32 %v483_v38, 0.0  ;;  %v539_v45 = vmax.f32 %v503_v39, 0.0 }
  0xdc   : > { %v516_v56 = vmax.f32 %v446_v48, 0.0  ;;  %v524_v57 = vmax.f32 %v466_v49, 0.0 }
  0xdd   : > { %v894_v46 = vpack.c.bf16 %v531_v44, %v530_v42  ;;  %v914_v47 = vpack.c.bf16 %v539_v45, %v538_v43 }
  0xdf   : > { %930 = vst [vmem:[%s1114_s17 + $0x50] sm:$0xff] %v894_v46  }
  0xe0   : > { %934 = vst [vmem:[%s1114_s17 + $0x70] sm:$0xff] %v914_v47   ;;  %v485_v50 = vpop.f32.mrf.mxu2  ;;  %v505_v51 = vpop.f32.mrf.mxu3 }
  0xe1   : > { %v447_v52 = vpop.f32.mrf.mxu0  ;;  %v467_v53 = vpop.f32.mrf.mxu1  ;;  %v486_v62 = vadd.f32 %v1103_v26, %v485_v50  ;;  %v506_v63 = vadd.f32 %v1103_v26, %v505_v51 }
  0xe2   : > { %v448_v54 = vadd.f32 %v1103_v26, %v447_v52  ;;  %v468_v55 = vadd.f32 %v1103_v26, %v467_v53 }
  0xe3   : > { %v532_v4 = vmax.f32 %v486_v62, 0.0  ;;  %v540_v5 = vmax.f32 %v506_v63, 0.0 }
  0xe4   : > { %v517_v58 = vmax.f32 %v448_v54, 0.0  ;;  %v525_v59 = vmax.f32 %v468_v55, 0.0 }
  0xe6   : > { %v859_v60 = vpack.c.bf16 %v517_v58, %v516_v56  ;;  %v879_v61 = vpack.c.bf16 %v525_v59, %v524_v57 }
  0xe8   : > { %923 = vst [vmem:[%s1114_s17 + $0x18] sm:$0xff] %v859_v60   ;;  %v487_v0 = vpop.f32.mrf.mxu2  ;;  %v507_v1 = vpop.f32.mrf.mxu3 }
  0xe9   : > { %927 = vst [vmem:[%s1114_s17 + $0x38] sm:$0xff] %v879_v61   ;;  %v488_v2 = vadd.f32 %v1103_v26, %v487_v0  ;;  %v508_v3 = vadd.f32 %v1103_v26, %v507_v1 }
  0xeb   : > { %v533_v6 = vmax.f32 %v488_v2, 0.0  ;;  %v541_v7 = vmax.f32 %v508_v3, 0.0 }
  0xed   : > { %v899_v8 = vpack.c.bf16 %v533_v6, %v532_v4  ;;  %v919_v9 = vpack.c.bf16 %v541_v7, %v540_v5 }
  0xef   : > { %931 = vst [vmem:[%s1114_s17 + $0x58] sm:$0xff] %v899_v8  }
  0xf0   : > { %935 = vst [vmem:[%s1114_s17 + $0x78] sm:$0xff] %v919_v9  }
  0xf1 PF: > { %s13_s14 = sadd.s32 1, %s1007_s14   ;;  %s1173_s12 = smov %s1003_s13 }
  0xf2   : > { %p10_p5 = scmp.ge.s32.totalorder %s13_s14, 4   ;;  %s1174_s13 = smov %s1176_s15 }
  0xf4   :  { %12 = sbr.rel (!%p10_p5) target bundleno = 2 (0x2), region = 68 }

// kernel: _lambda_.4
= control target key start
LH: loop header
LB: loop body
LE: loop exit
PB: predicated region body
PF: predicated region fallthrough
CT: control target
= control target key end

     0   :  { %s1631_s12 = smov 0   ;;  %s1633_s13 = smov 0   ;;  %s2086_s0 = inlined_call_operand.vmem [shape: bf16[128,384], index: 0, kind: input, shape index: {}]   ;;  %s2087_s1 = inlined_call_operand.vmem [shape: bf16[384,256], index: 1, kind: input, shape index: {}]   ;;  %s2088_s2 = inlined_call_operand.vmem [shape: f32[1,256], index: 2, kind: input, shape index: {}]   ;;  %s2089_s3 = inlined_call_operand.vmem [shape: bf16[128,256], index: 3, kind: output, shape index: {}]  }
   0x1   :  { %s1635_s14 = smov 0   ;;  %s1637_s15 = smov 0  }
   0x2   :  { %s1639_s16 = smov 0  }
   0x3 LB: > { %s22_s17 = sadd.s32 1, %s1605_s15  ;;  %s1205_s18 = sadd.s32 4294967295, %s1609_s16   ;;  %s1609_s16 = sphi %s1639_s16, %s13_s16   ;;  %s1605_s15 = sphi %s1637_s15, %s2094_s15   ;;  %s1601_s14 = sphi %s1635_s14, %s2093_s14   ;;  %s1597_s13 = sphi %s1633_s13, %s2092_s13   ;;  %s1593_s12 = sphi %s1631_s12, %s2091_s12  }
   0x4   : > { %p23_p0 = scmp.ge.s32.totalorder %s22_s17, 2  ;;  %p65_p1 = scmp.ne.s32.totalorder %s1597_s13, %s1593_s12 }
   0x5   : > { %p66_p2 = scmp.eq.s32.totalorder %s1609_s16, 0  ;;  %p123_p4 = scmp.eq.s32.totalorder %s1205_s18, 1 }
   0x6   : > { %s2096_s17 = smov (%p23_p0, %s22_s17), 0  ;;  %s58_s20 = sadd.s32 1, %s1597_s13 }
   0x7   : > { %p67_p3 = por %p66_p2, %p65_p1  ;;  %s55_s19 = ssub.s32 %s1605_s15, %s2096_s17 }
   0x8   : > { %p56_p5 = scmp.eq.s32.totalorder %s55_s19, 0  ;;  %p1666_p6 = por %p123_p4, %p65_p1 }
   0x9   : > { %p1209_p7 = scmp.ge.s32.totalorder %s1609_s16, 2 }
   0xa   : > { %s1671_s22 = scalar_select %p56_p5, %s1597_s13, %s58_s20  }
   0xb   : > { %155 = sbr.rel (%p1209_p7) target bundleno = 69 (0x45), region = 20 }
  0x10   : > { %158 = sbr.rel (!%p67_p3) target bundleno = 69 (0x45), region = 24  ;;  %s160_s23 = sand.u32 (%p67_p3), 1, %s1597_s13  }
  0x11   : > { %s1210_s24 = sshll.u32 (%p67_p3), %s1605_s15, 2  ;;  %s1528_s25 = smul.u32 (%p67_p3), 192, %s160_s23 }
  0x12   : > { %s1679_s28 = scalar_lea.vmem (%p67_p3), %s2087_s1, %s1210_s24 }
  0x13   : > { %v181_v0 = vld [vmem:[%s1679_s28] sm:$0xf] (%p67_p3)  ;;  %v183_v1 = vld [vmem:[%s1679_s28 + $0x8] sm:$0xf] (%p67_p3)  ;;  %v185_v2 = vld [vmem:[%s1679_s28 + $0x10] sm:$0xf] (%p67_p3) }
  0x14   : > { %s1684_s29 = scalar_lea.vmem (%p67_p3), [#allocation2], %s1528_s25  ;;  %v187_v3 = vld [vmem:[%s1679_s28 + $0x18] sm:$0xf] (%p67_p3)  ;;  %v189_v4 = vld [vmem:[%s1679_s28 + $0x20] sm:$0xf] (%p67_p3) }
  0x15   : > { %182 = vst [vmem:[%s1684_s29] sm:$0xf] %v181_v0  ;;  %v191_v5 = vld [vmem:[%s1679_s28 + $0x28] sm:$0xf]  ;;  %v193_v6 = vld [vmem:[%s1679_s28 + $0x30] sm:$0xf] }
  0x16   : > { %184 = vst [vmem:[%s1684_s29 + $0x4] sm:$0xf] %v183_v1  ;;  %v195_v7 = vld [vmem:[%s1679_s28 + $0x38] sm:$0xf]  ;;  %v197_v8 = vld [vmem:[%s1679_s28 + $0x40] sm:$0xf] }
  0x17   : > { %186 = vst [vmem:[%s1684_s29 + $0x8] sm:$0xf] %v185_v2  ;;  %v199_v9 = vld [vmem:[%s1679_s28 + $0x48] sm:$0xf]  ;;  %v201_v10 = vld [vmem:[%s1679_s28 + $0x50] sm:$0xf] }
  0x18   : > { %188 = vst [vmem:[%s1684_s29 + $0xc] sm:$0xf] %v187_v3  ;;  %v203_v11 = vld [vmem:[%s1679_s28 + $0x58] sm:$0xf]  ;;  %v205_v12 = vld [vmem:[%s1679_s28 + $0x60] sm:$0xf] }
  0x19   : > { %190 = vst [vmem:[%s1684_s29 + $0x10] sm:$0xf] %v189_v4  ;;  %v207_v13 = vld [vmem:[%s1679_s28 + $0x68] sm:$0xf]  ;;  %v209_v14 = vld [vmem:[%s1679_s28 + $0x70] sm:$0xf] }
  0x1a   : > { %192 = vst [vmem:[%s1684_s29 + $0x14] sm:$0xf] %v191_v5  ;;  %v211_v15 = vld [vmem:[%s1679_s28 + $0x78] sm:$0xf]  ;;  %v213_v16 = vld [vmem:[%s1679_s28 + $0x80] sm:$0xf] }
  0x1b   : > { %194 = vst [vmem:[%s1684_s29 + $0x18] sm:$0xf] %v193_v6  ;;  %v215_v17 = vld [vmem:[%s1679_s28 + $0x88] sm:$0xf]  ;;  %v217_v18 = vld [vmem:[%s1679_s28 + $0x90] sm:$0xf] }
  0x1c   : > { %196 = vst [vmem:[%s1684_s29 + $0x1c] sm:$0xf] %v195_v7  ;;  %v219_v19 = vld [vmem:[%s1679_s28 + $0x98] sm:$0xf]  ;;  %v221_v20 = vld [vmem:[%s1679_s28 + $0xa0] sm:$0xf] }
  0x1d   : > { %198 = vst [vmem:[%s1684_s29 + $0x20] sm:$0xf] %v197_v8  ;;  %v223_v21 = vld [vmem:[%s1679_s28 + $0xa8] sm:$0xf]  ;;  %v225_v22 = vld [vmem:[%s1679_s28 + $0xb0] sm:$0xf] }
  0x1e   : > { %200 = vst [vmem:[%s1684_s29 + $0x24] sm:$0xf] %v199_v9  ;;  %v227_v23 = vld [vmem:[%s1679_s28 + $0xb8] sm:$0xf]  ;;  %v229_v24 = vld [vmem:[%s1679_s28 + $0xc0] sm:$0xf] }
  0x1f   : > { %202 = vst [vmem:[%s1684_s29 + $0x28] sm:$0xf] %v201_v10  ;;  %v231_v25 = vld [vmem:[%s1679_s28 + $0xc8] sm:$0xf]  ;;  %v233_v26 = vld [vmem:[%s1679_s28 + $0xd0] sm:$0xf] }
  0x20   : > { %204 = vst [vmem:[%s1684_s29 + $0x2c] sm:$0xf] %v203_v11  ;;  %v235_v27 = vld [vmem:[%s1679_s28 + $0xd8] sm:$0xf]  ;;  %v237_v28 = vld [vmem:[%s1679_s28 + $0xe0] sm:$0xf] }
  0x21   : > { %206 = vst [vmem:[%s1684_s29 + $0x30] sm:$0xf] %v205_v12  ;;  %v239_v29 = vld [vmem:[%s1679_s28 + $0xe8] sm:$0xf]  ;;  %v241_v30 = vld [vmem:[%s1679_s28 + $0xf0] sm:$0xf] }
  0x22   : > { %208 = vst [vmem:[%s1684_s29 + $0x34] sm:$0xf] %v207_v13  ;;  %v243_v31 = vld [vmem:[%s1679_s28 + $0xf8] sm:$0xf]  ;;  %v245_v32 = vld [vmem:[%s1679_s28 + $0x100] sm:$0xf] }
  0x23   : > { %210 = vst [vmem:[%s1684_s29 + $0x38] sm:$0xf] %v209_v14  ;;  %v247_v33 = vld [vmem:[%s1679_s28 + $0x108] sm:$0xf]  ;;  %v249_v34 = vld [vmem:[%s1679_s28 + $0x110] sm:$0xf] }
  0x24   : > { %212 = vst [vmem:[%s1684_s29 + $0x3c] sm:$0xf] %v211_v15  ;;  %v251_v35 = vld [vmem:[%s1679_s28 + $0x118] sm:$0xf]  ;;  %v253_v36 = vld [vmem:[%s1679_s28 + $0x120] sm:$0xf] }
  0x25   : > { %214 = vst [vmem:[%s1684_s29 + $0x40] sm:$0xf] %v213_v16  ;;  %v255_v37 = vld [vmem:[%s1679_s28 + $0x128] sm:$0xf]  ;;  %v257_v38 = vld [vmem:[%s1679_s28 + $0x130] sm:$0xf] }
  0x26   : > { %216 = vst [vmem:[%s1684_s29 + $0x44] sm:$0xf] %v215_v17  ;;  %v259_v39 = vld [vmem:[%s1679_s28 + $0x138] sm:$0xf]  ;;  %v261_v40 = vld [vmem:[%s1679_s28 + $0x140] sm:$0xf] }
  0x27   : > { %218 = vst [vmem:[%s1684_s29 + $0x48] sm:$0xf] %v217_v18  ;;  %v263_v41 = vld [vmem:[%s1679_s28 + $0x148] sm:$0xf]  ;;  %v265_v42 = vld [vmem:[%s1679_s28 + $0x150] sm:$0xf] }
  0x28   : > { %220 = vst [vmem:[%s1684_s29 + $0x4c] sm:$0xf] %v219_v19  ;;  %v267_v43 = vld [vmem:[%s1679_s28 + $0x158] sm:$0xf]  ;;  %v269_v44 = vld [vmem:[%s1679_s28 + $0x160] sm:$0xf] }
  0x29   : > { %222 = vst [vmem:[%s1684_s29 + $0x50] sm:$0xf] %v221_v20  ;;  %v271_v45 = vld [vmem:[%s1679_s28 + $0x168] sm:$0xf]  ;;  %v273_v46 = vld [vmem:[%s1679_s28 + $0x170] sm:$0xf] }
  0x2a   : > { %224 = vst [vmem:[%s1684_s29 + $0x54] sm:$0xf] %v223_v21  ;;  %v275_v47 = vld [vmem:[%s1679_s28 + $0x178] sm:$0xf] }
  0x2b   : > { %226 = vst [vmem:[%s1684_s29 + $0x58] sm:$0xf] %v225_v22 }
  0x2c   : > { %228 = vst [vmem:[%s1684_s29 + $0x5c] sm:$0xf] %v227_v23 }
  0x2d   : > { %230 = vst [vmem:[%s1684_s29 + $0x60] sm:$0xf] %v229_v24 }
  0x2e   : > { %232 = vst [vmem:[%s1684_s29 + $0x64] sm:$0xf] %v231_v25 }
  0x2f   : > { %234 = vst [vmem:[%s1684_s29 + $0x68] sm:$0xf] %v233_v26 }
  0x30   : > { %236 = vst [vmem:[%s1684_s29 + $0x6c] sm:$0xf] %v235_v27 }
  0x31   : > { %238 = vst [vmem:[%s1684_s29 + $0x70] sm:$0xf] %v237_v28 }
  0x32   : > { %240 = vst [vmem:[%s1684_s29 + $0x74] sm:$0xf] %v239_v29 }
  0x33   : > { %242 = vst [vmem:[%s1684_s29 + $0x78] sm:$0xf] %v241_v30 }
  0x34   : > { %244 = vst [vmem:[%s1684_s29 + $0x7c] sm:$0xf] %v243_v31 }
  0x35   : > { %246 = vst [vmem:[%s1684_s29 + $0x80] sm:$0xf] %v245_v32 }
  0x36   : > { %248 = vst [vmem:[%s1684_s29 + $0x84] sm:$0xf] %v247_v33 }
  0x37   : > { %250 = vst [vmem:[%s1684_s29 + $0x88] sm:$0xf] %v249_v34 }
  0x38   : > { %252 = vst [vmem:[%s1684_s29 + $0x8c] sm:$0xf] %v251_v35 }
  0x39   : > { %254 = vst [vmem:[%s1684_s29 + $0x90] sm:$0xf] %v253_v36 }
  0x3a   : > { %256 = vst [vmem:[%s1684_s29 + $0x94] sm:$0xf] %v255_v37 }
  0x3b   : > { %258 = vst [vmem:[%s1684_s29 + $0x98] sm:$0xf] %v257_v38 }
  0x3c   : > { %260 = vst [vmem:[%s1684_s29 + $0x9c] sm:$0xf] %v259_v39 }
  0x3d   : > { %262 = vst [vmem:[%s1684_s29 + $0xa0] sm:$0xf] %v261_v40 }
  0x3e   : > { %264 = vst [vmem:[%s1684_s29 + $0xa4] sm:$0xf] %v263_v41 }
  0x3f   : > { %266 = vst [vmem:[%s1684_s29 + $0xa8] sm:$0xf] %v265_v42 }
  0x40   : > { %268 = vst [vmem:[%s1684_s29 + $0xac] sm:$0xf] %v267_v43 }
  0x41   : > { %270 = vst [vmem:[%s1684_s29 + $0xb0] sm:$0xf] %v269_v44 }
  0x42   : > { %272 = vst [vmem:[%s1684_s29 + $0xb4] sm:$0xf] %v271_v45 }
  0x43   : > { %274 = vst [vmem:[%s1684_s29 + $0xb8] sm:$0xf] %v273_v46 }
  0x44   : > { %276 = vst [vmem:[%s1684_s29 + $0xbc] sm:$0xf] %v275_v47 }
  0x45 PF: > { %p1211_p8 = scmp.ge.s32.totalorder %s1609_s16, 1  ;;  %p401_p9 = scmp.lt.s32.totalorder %s1609_s16, 3 }
  0x47   : > { %p402_p10 = pnand %p1211_p8, %p401_p9 }
  0x48   : > { %s408_s30 = sand.u32 (!%p402_p10), 1, %s1593_s12   ;;  %p446_p11 = scmp.lt.s32.totalorder (!%p402_p10), %s1601_s14, 1 }
  0x49   : > { %405 = sbr.rel (%p402_p10) target bundleno = 348 (0x15c), region = 69  ;;  %s1212_s18 = sshll.u32 (!%p402_p10), %s408_s30, 6 }
  0x4a   : > { %s1529_s4 = smul.u32 (!%p402_p10), 192, %s408_s30 }
  0x4c   : > { %s1784_s5 = scalar_lea.vmem (!%p402_p10), [#allocation2], %s1529_s4 }
  0x4e   : > { %v1440_v48 = vld [vmem:[%s1784_s5 + $0x38] sm:$0xff]  ;;  %v1439_v51 = vld [vmem:[%s1784_s5 + $0x30] sm:$0xff]  ;;  %s1804_s6 = scalar_select %p446_p11, %s1601_s14, 1  ;;  %v1438_v54 = vld [vmem:[%s1784_s5 + $0x28] sm:$0xff] }
  0x4f   : > { %v1788_v49 = vld [vmem:[%s1784_s5 + $0x78] sm:$0xff]  ;;  %806 = vmatpush.bf16.msra.mxu0 %v1440_v48  ;;  %1504 = vmatpush.bf16.msra.mxu3 %v1440_v48  ;;  %v1798_v52 = vld [vmem:[%s1784_s5 + $0x70] sm:$0xff]  ;;  %v1446_v55 = vld [vmem:[%s1784_s5 + $0x68] sm:$0xff]  ;;  %s1406_s12 = sshll.u32 (%p1666_p6), %s1601_s14, 2 }
  0x50   : > { %v1791_v50 = vld [vmem:[%s1784_s5 + $0xb8] sm:$0xff]  ;;  %855 = vmatpush.bf16.msra.mxu1 %v1788_v49  ;;  %v1801_v53 = vld [vmem:[%s1784_s5 + $0xb0] sm:$0xff]  ;;  %v1811_v56 = vld [vmem:[%s1784_s5 + $0xa8] sm:$0xff]  ;;  %s448_s9 = scalar_lea.vmem %s2088_s2, %s1804_s6  ;;  %s2017_s6 = scalar_lea.vmem [#allocation3], %s1212_s18 }
  0x51   : > { %904 = vmatpush.bf16.msra.mxu2 %v1791_v50  ;;  %v1437_v57 = vld [vmem:[%s1784_s5 + $0x20] sm:$0xff]  ;;  %v1436_v60 = vld [vmem:[%s1784_s5 + $0x18] sm:$0xff]  ;;  %v1435_v63 = vld [vmem:[%s1784_s5 + $0x10] sm:$0xff]  ;;  %s1012_s19 = scalar_lea.vmem (%p1666_p6), %s2089_s3, %s1406_s12 }
  0x52   : > { %v1445_v58 = vld [vmem:[%s1784_s5 + $0x60] sm:$0xff]  ;;  %v1444_v61 = vld [vmem:[%s1784_s5 + $0x58] sm:$0xff]  ;;  %v1443_v0 = vld [vmem:[%s1784_s5 + $0x50] sm:$0xff] }
  0x53   : > { %807 = vmatpush.bf16.msra.mxu0 %v1439_v51  ;;  %1505 = vmatpush.bf16.msra.mxu3 %v1439_v51  ;;  %v1821_v59 = vld [vmem:[%s1784_s5 + $0xa0] sm:$0xff]  ;;  %v1827_v62 = vld [vmem:[%s1784_s5 + $0x98] sm:$0xff]  ;;  %v1833_v1 = vld [vmem:[%s1784_s5 + $0x90] sm:$0xff] }
  0x54   : > { %856 = vmatpush.bf16.msra.mxu1 %v1798_v52  ;;  %v1434_v2 = vld [vmem:[%s1784_s5 + $0x8] sm:$0xff]  ;;  %v1215_v5 = vld [vmem:[%s2086_s0] sm:$0xf]  ;;  %v1287_v10 = vld [vmem:[%s2086_s0 + $0x90] sm:$0xf] }
  0x55   : > { %905 = vmatpush.bf16.msra.mxu2 %v1801_v53  ;;  %v1442_v3 = vld [vmem:[%s1784_s5 + $0x48] sm:$0xff]  ;;  %v1433_v7 = vld [vmem:[%s1784_s5] sm:$0xff]  ;;  %v1428_v11 = vld [vmem:[%s2086_s0 + $0x98] sm:$0xf0] }
  0x56   : > { %v1839_v4 = vld [vmem:[%s1784_s5 + $0x88] sm:$0xff]  ;;  %v1441_v8 = vld [vmem:[%s1784_s5 + $0x40] sm:$0xff]  ;;  %v1217_v13 = vld [vmem:[%s2086_s0 + $0xc] sm:$0xf0]  ;;  %v1288_v17 = vor.u32 %v1428_v11, %v1287_v10 }
  0x57   : > { %808 = vmatpush.bf16.msra.mxu0 %v1438_v54  ;;  %1506 = vmatpush.bf16.msra.mxu3 %v1438_v54  ;;  %v1410_v6 = vld [vmem:[%s2086_s0 + $0x8] sm:$0xf0]  ;;  %v1850_v9 = vld [vmem:[%s1784_s5 + $0x80] sm:$0xff]  ;;  %v1223_v14 = vld [vmem:[%s2086_s0 + $0x8] sm:$0xf] }
  0x58   : > { %857 = vmatpush.bf16.msra.mxu1 %v1446_v55  ;;  %v1409_v12 = vld [vmem:[%s2086_s0 + $0x4] sm:$0xf]  ;;  %v1411_v15 = vld [vmem:[%s2086_s0 + $0x10] sm:$0xf0]  ;;  %v1216_v16 = vor.u32 %v1410_v6, %v1215_v5  ;;  %v1227_v20 = vld [vmem:[%s2086_s0 + $0x18] sm:$0xf] }
  0x59   : > { %906 = vmatpush.bf16.msra.mxu2 %v1811_v56  ;;  %v1220_v18 = vor.u32 %v1409_v12, %v1217_v13  ;;  %v1224_v19 = vor.u32 %v1411_v15, %v1223_v14  ;;  %v1413_v21 = vld [vmem:[%s2086_s0 + $0x20] sm:$0xf0]  ;;  %v1299_v22 = vld [vmem:[%s2086_s0 + $0xa8] sm:$0xf]  ;;  %v1431_v23 = vld [vmem:[%s2086_s0 + $0xb0] sm:$0xf0] }
  0x5a   : > { %v1412_v24 = vld [vmem:[%s2086_s0 + $0x1c] sm:$0xf]  ;;  %v1229_v25 = vld [vmem:[%s2086_s0 + $0x24] sm:$0xf0]  ;;  %v1235_v26 = vld [vmem:[%s2086_s0 + $0x20] sm:$0xf]  ;;  %v1228_v28 = vor.u32 %v1413_v21, %v1227_v20  ;;  %v1300_v29 = vor.u32 %v1431_v23, %v1299_v22 }
  0x5b   : > { %809 = vmatpush.bf16.msra.mxu0 %v1437_v57  ;;  %1507 = vmatpush.bf16.msra.mxu3 %v1437_v57  ;;  %v1414_v27 = vld [vmem:[%s2086_s0 + $0x28] sm:$0xf0]  ;;  %v1232_v30 = vor.u32 %v1412_v24, %v1229_v25  ;;  %v1239_v32 = vld [vmem:[%s2086_s0 + $0x30] sm:$0xf]  ;;  %v1416_v33 = vld [vmem:[%s2086_s0 + $0x38] sm:$0xf0] }
  0x5c   : > { %858 = vmatpush.bf16.msra.mxu1 %v1445_v58  ;;  %v1236_v31 = vor.u32 %v1414_v27, %v1235_v26  ;;  %v1415_v34 = vld [vmem:[%s2086_s0 + $0x34] sm:$0xf]  ;;  %v1289_v36 = vld [vmem:[%s2086_s0 + $0x9c] sm:$0xf0]  ;;  %v1247_v38 = vld [vmem:[%s2086_s0 + $0x38] sm:$0xf]  ;;  %v1240_v40 = vor.u32 %v1416_v33, %v1239_v32 }
  0x5d   : > { %907 = vmatpush.bf16.msra.mxu2 %v1821_v59  ;;  %v1427_v35 = vld [vmem:[%s2086_s0 + $0x94] sm:$0xf]  ;;  %v1241_v37 = vld [vmem:[%s2086_s0 + $0x3c] sm:$0xf0]  ;;  %v1417_v39 = vld [vmem:[%s2086_s0 + $0x40] sm:$0xf0] }
  0x5e   : > { %v1292_v41 = vor.u32 %v1427_v35, %v1289_v36  ;;  %v1244_v42 = vor.u32 %v1415_v34, %v1241_v37  ;;  %v1248_v43 = vor.u32 %v1417_v39, %v1247_v38  ;;  %v1251_v44 = vld [vmem:[%s2086_s0 + $0x48] sm:$0xf]  ;;  %v1419_v45 = vld [vmem:[%s2086_s0 + $0x50] sm:$0xf0]  ;;  %v1418_v46 = vld [vmem:[%s2086_s0 + $0x4c] sm:$0xf] }
  0x5f   : > { %810 = vmatpush.bf16.msra.mxu0 %v1436_v60  ;;  %1508 = vmatpush.bf16.msra.mxu3 %v1436_v60  ;;  %v1430_v47 = vld [vmem:[%s2086_s0 + $0xac] sm:$0xf]  ;;  %v1301_v48 = vld [vmem:[%s2086_s0 + $0xb4] sm:$0xf0]  ;;  %v1420_v51 = vld [vmem:[%s2086_s0 + $0x58] sm:$0xf0] }
  0x60   : > { %859 = vmatpush.bf16.msra.mxu1 %v1444_v61  ;;  %v1422_v57 = vld [vmem:[%s2086_s0 + $0x68] sm:$0xf0]  ;;  %v1429_v60 = vld [vmem:[%s2086_s0 + $0xa0] sm:$0xf0]  ;;  %v1424_v6 = vld [vmem:[%s2086_s0 + $0x7c] sm:$0xf] }
  0x61   : > { %908 = vmatpush.bf16.msra.mxu2 %v1827_v62  ;;  %v1425_v5 = vld [vmem:[%s2086_s0 + $0x80] sm:$0xf0]  ;;  %v1283_v10 = vld [vmem:[%s2086_s0 + $0x80] sm:$0xf]  ;;  %v1426_v11 = vld [vmem:[%s2086_s0 + $0x88] sm:$0xf0] }
  0x62   : > { %v1284_v15 = vor.u32 %v1426_v11, %v1283_v10 }
  0x63   : > { %811 = vmatpush.bf16.msra.mxu0 %v1435_v63  ;;  %1509 = vmatpush.bf16.msra.mxu3 %v1435_v63  ;;  %v1423_v63 = vld [vmem:[%s2086_s0 + $0x70] sm:$0xf0] }
  0x64   : > { %860 = vmatpush.bf16.msra.mxu1 %v1443_v0 }
  0x65   : > { %909 = vmatpush.bf16.msra.mxu2 %v1833_v1 }
  0x67   : > { %812 = vmatpush.bf16.msra.mxu0 %v1434_v2  ;;  %1510 = vmatpush.bf16.msra.mxu3 %v1434_v2 }
  0x68   : > { %861 = vmatpush.bf16.msra.mxu1 %v1442_v3 }
  0x69   : > { %910 = vmatpush.bf16.msra.mxu2 %v1839_v4 }
  0x6b   : > { %813 = vmatpush.bf16.msra.mxu0 %v1433_v7  ;;  %1511 = vmatpush.bf16.msra.mxu3 %v1433_v7  ;;  %v1307_v7 = vld [vmem:[%s2086_s0 + $0xb0] sm:$0xf] }
  0x6c   : > { %862 = vmatpush.bf16.msra.mxu1 %v1441_v8 }
  0x6d   : > { %911 = vmatpush.bf16.msra.mxu2 %v1850_v9 }
  0x6e   : > { %814 = vmatmul.bf16.vlgmr.msra.gmra.mxu0 %v1216_v16  ;;  %844 = vmatmul.bf16.vlgmr.msra.gmra.mxu3 %v1288_v17 }
  0x6f   : > { %1512 = vmatpush.bf16.msrb.mxu3 %v1788_v49  ;;  %863 = vmatmul.bf16.vlgmr.msra.gmra.mxu1 %v1220_v18  ;;  %v1253_v49 = vld [vmem:[%s2086_s0 + $0x54] sm:$0xf0]  ;;  %v2007_v18 = vld [vmem:[%s448_s9] ss:$0 sm:$0xff] }
  0x70   : > { %912 = vmatmul.bf16.vlgmr.msra.gmra.mxu2 %v1224_v19  ;;  %v1256_v54 = vor.u32 %v1418_v46, %v1253_v49 }
  0x73   : > { %1513 = vmatpush.bf16.msrb.mxu3 %v1798_v52  ;;  %v1252_v52 = vor.u32 %v1419_v45, %v1251_v44 }
  0x77   : > { %1514 = vmatpush.bf16.msrb.mxu3 %v1446_v55 }
  0x7b   : > { %1515 = vmatpush.bf16.msrb.mxu3 %v1445_v58  ;;  %v1421_v58 = vld [vmem:[%s2086_s0 + $0x64] sm:$0xf] }
  0x7e   : > { %819 = vmatmul.bf16.gmra.mxu0 %v1228_v28  ;;  %849 = vmatmul.bf16.gmra.mxu3 %v1300_v29 }
  0x7f   : > { %1516 = vmatpush.bf16.msrb.mxu3 %v1444_v61  ;;  %868 = vmatmul.bf16.gmra.mxu1 %v1232_v30  ;;  %v1265_v61 = vld [vmem:[%s2086_s0 + $0x6c] sm:$0xf0] }
  0x80   : > { %917 = vmatmul.bf16.gmra.mxu2 %v1236_v31  ;;  %v1268_v2 = vor.u32 %v1421_v58, %v1265_v61 }
  0x83   : > { %1517 = vmatpush.bf16.msrb.mxu3 %v1443_v0 }
  0x87   : > { %1518 = vmatpush.bf16.msrb.mxu3 %v1442_v3 }
  0x8b   : > { %1519 = vmatpush.bf16.msrb.mxu3 %v1441_v8  ;;  %v1432_v8 = vld [vmem:[%s2086_s0 + $0xb8] sm:$0xf0] }
  0x8c   : > { %v1308_v13 = vor.u32 %v1432_v8, %v1307_v7 }
  0x8e   : > { %824 = vmatmul.bf16.gmra.mxu0 %v1240_v40  ;;  %893 = vmatmul.bf16.vlgmr.msrb.gmra.mxu3 %v1292_v41 }
  0x8f   : > { %1520 = vmatpush.bf16.msra.mxu3 %v1791_v50  ;;  %873 = vmatmul.bf16.gmra.mxu1 %v1244_v42  ;;  %v1259_v50 = vld [vmem:[%s2086_s0 + $0x50] sm:$0xf] }
  0x90   : > { %922 = vmatmul.bf16.gmra.mxu2 %v1248_v43  ;;  %v1260_v55 = vor.u32 %v1420_v51, %v1259_v50 }
  0x93   : > { %1521 = vmatpush.bf16.msra.mxu3 %v1801_v53  ;;  %v1304_v53 = vor.u32 %v1430_v47, %v1301_v48 }
  0x97   : > { %1522 = vmatpush.bf16.msra.mxu3 %v1811_v56  ;;  %v1263_v56 = vld [vmem:[%s2086_s0 + $0x60] sm:$0xf] }
  0x98   : > { %v1264_v0 = vor.u32 %v1422_v57, %v1263_v56 }
  0x9b   : > { %1523 = vmatpush.bf16.msra.mxu3 %v1821_v59  ;;  %v1295_v59 = vld [vmem:[%s2086_s0 + $0x98] sm:$0xf] }
  0x9e   : > { %829 = vmatmul.bf16.gmra.mxu0 %v1252_v52  ;;  %898 = vmatmul.bf16.gmra.mxu3 %v1304_v53 }
  0x9f   : > { %1524 = vmatpush.bf16.msra.mxu3 %v1827_v62  ;;  %878 = vmatmul.bf16.gmra.mxu1 %v1256_v54  ;;  %v1271_v62 = vld [vmem:[%s2086_s0 + $0x68] sm:$0xf] }
  0xa0   : > { %927 = vmatmul.bf16.gmra.mxu2 %v1260_v55  ;;  %v1272_v3 = vor.u32 %v1423_v63, %v1271_v62 }
  0xa3   : > { %1525 = vmatpush.bf16.msra.mxu3 %v1833_v1  ;;  %v1296_v1 = vor.u32 %v1429_v60, %v1295_v59 }
  0xa7   : > { %1526 = vmatpush.bf16.msra.mxu3 %v1839_v4  ;;  %v1275_v4 = vld [vmem:[%s2086_s0 + $0x78] sm:$0xf] }
  0xa8   : > { %v1276_v12 = vor.u32 %v1425_v5, %v1275_v4 }
  0xab   : > { %1527 = vmatpush.bf16.msra.mxu3 %v1850_v9  ;;  %v1277_v9 = vld [vmem:[%s2086_s0 + $0x84] sm:$0xf0] }
  0xac   : > { %v1280_v14 = vor.u32 %v1424_v6, %v1277_v9 }
  0xae   : > { %834 = vmatmul.bf16.gmra.mxu0 %v1264_v0  ;;  %942 = vmatmul.bf16.vlgmr.msra.gmra.mxu3 %v1296_v1 }
  0xaf   : > { %883 = vmatmul.bf16.gmra.mxu1 %v1268_v2 }
  0xb0   : > { %932 = vmatmul.bf16.gmra.mxu2 %v1272_v3 }
  0xbe   : > { %839 = vmatmul.bf16.gmra.mxu0 %v1276_v12  ;;  %947 = vmatmul.bf16.gmra.mxu3 %v1308_v13 }
  0xbf   : > { %888 = vmatmul.bf16.gmra.mxu1 %v1280_v14 }
  0xc0   : > { %937 = vmatmul.bf16.gmra.mxu2 %v1284_v15 }
  0xeb   : > { %v815_v16 = vpop.f32.mrf.mxu0 }
  0xec   : > { %v864_v17 = vpop.f32.mrf.mxu1  ;;  %v816_v19 = vadd.f32 %v2007_v18, %v815_v16 }
  0xee   : > { %v865_v24 = vadd.f32 %v864_v17, %v816_v19 }
  0xf1   : > { %v2010_v20 = vpop.f32.mrf.mxu3 }
  0xf3   : > { %v913_v21 = vpop.f32.mrf.mxu2  ;;  %v817_v22 = vpop.f32.mrf.mxu0 }
  0xf4   : > { %v866_v23 = vpop.f32.mrf.mxu1  ;;  %v818_v25 = vadd.f32 %v2007_v18, %v817_v22  ;;  %v914_v26 = vadd.f32 %v913_v21, %v865_v24 }
  0xf6   : > { %v867_v27 = vadd.f32 %v866_v23, %v818_v25  ;;  %v953_v33 = vmax.f32 %v914_v26, 0.0 }
  0xf9   : > { %v2013_v28 = vpop.f32.mrf.mxu3 }
  0xfb   : > { %v915_v29 = vpop.f32.mrf.mxu2  ;;  %v820_v31 = vpop.f32.mrf.mxu0 }
  0xfc   : > { %v916_v30 = vadd.f32 %v915_v29, %v867_v27  ;;  %v869_v32 = vpop.f32.mrf.mxu1  ;;  %v821_v36 = vadd.f32 %v2007_v18, %v820_v31 }
  0xfe   : > { %v954_v34 = vmax.f32 %v916_v30, 0.0  ;;  %v870_v41 = vadd.f32 %v869_v32, %v821_v36  ;;  %v846_v30 = vadd.f32 %v2007_v18, %v2010_v20 }
 0x100   : > { %v1460_v35 = vpack.c.bf16 %v954_v34, %v953_v33  ;;  %v848_v34 = vadd.f32 %v2007_v18, %v2013_v28 }
 0x101   : > { %v2021_v37 = vpop.f32.mrf.mxu3 }
 0x102   : > { %1461 = vst [vmem:[%s2017_s6] sm:$0xff] %v1460_v35  }
 0x103   : > { %v918_v38 = vpop.f32.mrf.mxu2  ;;  %v822_v39 = vpop.f32.mrf.mxu0 }
 0x104   : > { %v871_v40 = vpop.f32.mrf.mxu1  ;;  %v823_v42 = vadd.f32 %v2007_v18, %v822_v39  ;;  %v919_v43 = vadd.f32 %v918_v38, %v870_v41 }
 0x106   : > { %v872_v44 = vadd.f32 %v871_v40, %v823_v42  ;;  %v955_v50 = vmax.f32 %v919_v43, 0.0 }
 0x109   : > { %v2024_v45 = vpop.f32.mrf.mxu3 }
 0x10b   : > { %v920_v46 = vpop.f32.mrf.mxu2  ;;  %v825_v48 = vpop.f32.mrf.mxu0 }
 0x10c   : > { %v921_v47 = vadd.f32 %v920_v46, %v872_v44  ;;  %v874_v49 = vpop.f32.mrf.mxu1  ;;  %v826_v53 = vadd.f32 %v2007_v18, %v825_v48 }
 0x10e   : > { %v956_v51 = vmax.f32 %v921_v47, 0.0  ;;  %v875_v58 = vadd.f32 %v874_v49, %v826_v53 }
 0x110   : > { %v1465_v52 = vpack.c.bf16 %v956_v51, %v955_v50 }
 0x111   : > { %v894_v54 = vpop.f32.mrf.mxu3 }
 0x112   : > { %1497 = vst [vmem:[%s2017_s6 + $0x8] sm:$0xff] %v1465_v52   ;;  %v895_v35 = vadd.f32 %v894_v54, %v846_v30 }
 0x113   : > { %v923_v55 = vpop.f32.mrf.mxu2  ;;  %v827_v56 = vpop.f32.mrf.mxu0 }
 0x114   : > { %v876_v57 = vpop.f32.mrf.mxu1  ;;  %v828_v59 = vadd.f32 %v2007_v18, %v827_v56  ;;  %v924_v60 = vadd.f32 %v923_v55, %v875_v58  ;;  %v851_v56 = vadd.f32 %v2007_v18, %v2021_v37 }
 0x116   : > { %v877_v61 = vadd.f32 %v876_v57, %v828_v59  ;;  %v957_v3 = vmax.f32 %v924_v60, 0.0  ;;  %v853_v59 = vadd.f32 %v2007_v18, %v2024_v45  ;;  %v1031_v45 = vld [vmem:[%s2017_s6 + $0x4] sm:$0xf] (%p1666_p6) }
 0x117   : > { %1032 = vst [vmem:[%s1012_s19 + $0x8] sm:$0xf] (%p1666_p6), %v1031_v45 }
 0x119   : > { %v896_v62 = vpop.f32.mrf.mxu3 }
 0x11a   : > { %v897_v36 = vadd.f32 %v896_v62, %v848_v34 }
 0x11b   : > { %v925_v63 = vpop.f32.mrf.mxu2  ;;  %v830_v1 = vpop.f32.mrf.mxu0 }
 0x11c   : > { %v926_v0 = vadd.f32 %v925_v63, %v877_v61  ;;  %v879_v2 = vpop.f32.mrf.mxu1  ;;  %v831_v6 = vadd.f32 %v2007_v18, %v830_v1 }
 0x11e   : > { %v958_v4 = vmax.f32 %v926_v0, 0.0  ;;  %v880_v11 = vadd.f32 %v879_v2, %v831_v6 }
 0x120   : > { %v1470_v5 = vpack.c.bf16 %v958_v4, %v957_v3 }
 0x121   : > { %v899_v7 = vpop.f32.mrf.mxu3 }
 0x122   : > { %1498 = vst [vmem:[%s2017_s6 + $0x10] sm:$0xff] %v1470_v5   ;;  %v900_v60 = vadd.f32 %v899_v7, %v851_v56  ;;  %v1033_v7 = vld [vmem:[%s2017_s6 + $0x8] sm:$0xf] (%p1666_p6) }
 0x123   : > { %v928_v8 = vpop.f32.mrf.mxu2  ;;  %v832_v9 = vpop.f32.mrf.mxu0  ;;  %1034 = vst [vmem:[%s1012_s19 + $0x10] sm:$0xf] (%p1666_p6), %v1033_v7 }
 0x124   : > { %v881_v10 = vpop.f32.mrf.mxu1  ;;  %v833_v12 = vadd.f32 %v2007_v18, %v832_v9  ;;  %v929_v13 = vadd.f32 %v928_v8, %v880_v11 }
 0x126   : > { %v882_v14 = vadd.f32 %v881_v10, %v833_v12  ;;  %v959_v22 = vmax.f32 %v929_v13, 0.0  ;;  %v1035_v12 = vld [vmem:[%s2017_s6 + $0xc] sm:$0xf] (%p1666_p6) }
 0x127   : > { %1036 = vst [vmem:[%s1012_s19 + $0x18] sm:$0xf] (%p1666_p6), %v1035_v12 }
 0x129   : > { %v901_v15 = vpop.f32.mrf.mxu3  ;;  %v1037_v13 = vld [vmem:[%s2017_s6 + $0x10] sm:$0xf] (%p1666_p6) }
 0x12a   : > { %v902_v61 = vadd.f32 %v901_v15, %v853_v59  ;;  %1038 = vst [vmem:[%s1012_s19 + $0x20] sm:$0xf] (%p1666_p6), %v1037_v13 }
 0x12b   : > { %v930_v16 = vpop.f32.mrf.mxu2  ;;  %v835_v19 = vpop.f32.mrf.mxu0 }
 0x12c   : > { %v931_v17 = vadd.f32 %v930_v16, %v882_v14  ;;  %v884_v21 = vpop.f32.mrf.mxu1  ;;  %v836_v25 = vadd.f32 %v2007_v18, %v835_v19  ;;  %v1039_v14 = vld [vmem:[%s2017_s6 + $0x14] sm:$0xf] (%p1666_p6) }
 0x12d   : > { %1040 = vst [vmem:[%s1012_s19 + $0x28] sm:$0xf] (%p1666_p6), %v1039_v14 }
 0x12e   : > { %v960_v23 = vmax.f32 %v931_v17, 0.0  ;;  %v885_v32 = vadd.f32 %v884_v21, %v836_v25 }
 0x130   : > { %v1475_v24 = vpack.c.bf16 %v960_v23, %v959_v22 }
 0x131   : > { %v943_v26 = vpop.f32.mrf.mxu3 }
 0x132   : > { %1499 = vst [vmem:[%s2017_s6 + $0x18] sm:$0xff] %v1475_v24   ;;  %v944_v38 = vadd.f32 %v943_v26, %v895_v35 }
 0x133   : > { %v933_v27 = vpop.f32.mrf.mxu2  ;;  %v837_v29 = vpop.f32.mrf.mxu0 }
 0x134   : > { %v886_v31 = vpop.f32.mrf.mxu1  ;;  %v838_v33 = vadd.f32 %v2007_v18, %v837_v29  ;;  %v934_v39 = vadd.f32 %v933_v27, %v885_v32  ;;  %v965_v20 = vmax.f32 %v944_v38, 0.0 }
 0x136   : > { %v887_v40 = vadd.f32 %v886_v31, %v838_v33  ;;  %v961_v48 = vmax.f32 %v934_v39, 0.0 }
 0x139   : > { %v945_v41 = vpop.f32.mrf.mxu3  ;;  %v1041_v15 = vld [vmem:[%s2017_s6 + $0x18] sm:$0xf] (%p1666_p6)  ;;  %v1043_v16 = vld [vmem:[%s2017_s6 + $0x1c] sm:$0xf] (%p1666_p6) }
 0x13a   : > { %v946_v43 = vadd.f32 %v945_v41, %v897_v36  ;;  %1042 = vst [vmem:[%s1012_s19 + $0x30] sm:$0xf] (%p1666_p6), %v1041_v15 }
 0x13b   : > { %v935_v42 = vpop.f32.mrf.mxu2  ;;  %v840_v46 = vpop.f32.mrf.mxu0  ;;  %1044 = vst [vmem:[%s1012_s19 + $0x38] sm:$0xf] (%p1666_p6), %v1043_v16 }
 0x13c   : > { %v936_v44 = vadd.f32 %v935_v42, %v887_v40  ;;  %v966_v47 = vmax.f32 %v946_v43, 0.0  ;;  %v889_v51 = vpop.f32.mrf.mxu1  ;;  %v841_v28 = vadd.f32 %v2007_v18, %v840_v46 }
 0x13e   : > { %v962_v49 = vmax.f32 %v936_v44, 0.0  ;;  %v1490_v50 = vpack.c.bf16 %v966_v47, %v965_v20  ;;  %v890_v57 = vadd.f32 %v889_v51, %v841_v28 }
 0x140   : > { %v1480_v52 = vpack.c.bf16 %v962_v49, %v961_v48  ;;  %1502 = vst [vmem:[%s2017_s6 + $0x30] sm:$0xff] %v1490_v50  }
 0x141   : > { %v948_v53 = vpop.f32.mrf.mxu3 }
 0x142   : > { %1500 = vst [vmem:[%s2017_s6 + $0x20] sm:$0xff] %v1480_v52   ;;  %v949_v62 = vadd.f32 %v948_v53, %v900_v60 }
 0x143   : > { %v938_v54 = vpop.f32.mrf.mxu2  ;;  %v842_v55 = vpop.f32.mrf.mxu0 }
 0x144   : > { %v843_v58 = vadd.f32 %v2007_v18, %v842_v55  ;;  %v891_v63 = vpop.f32.mrf.mxu1  ;;  %v939_v0 = vadd.f32 %v938_v54, %v890_v57  ;;  %v967_v6 = vmax.f32 %v949_v62, 0.0  ;;  %v1029_v18 = vld [vmem:[%s2017_s6] sm:$0xf] (%p1666_p6) }
 0x145   : > { %1030 = vst [vmem:[%s1012_s19] sm:$0xf] (%p1666_p6), %v1029_v18 }
 0x146   : > { %v892_v1 = vadd.f32 %v891_v63, %v843_v58  ;;  %v963_v8 = vmax.f32 %v939_v0, 0.0 }
 0x147   : > { %v1053_v23 = vld [vmem:[%s2017_s6 + $0x30] sm:$0xf] (%p1666_p6)  ;;  %v1055_v24 = vld [vmem:[%s2017_s6 + $0x34] sm:$0xf] (%p1666_p6) }
 0x148   : > { %1054 = vst [vmem:[%s1012_s19 + $0x60] sm:$0xf] (%p1666_p6), %v1053_v23 }
 0x149   : > { %v950_v2 = vpop.f32.mrf.mxu3  ;;  %v1045_v17 = vld [vmem:[%s2017_s6 + $0x20] sm:$0xf] (%p1666_p6)  ;;  %v1047_v19 = vld [vmem:[%s2017_s6 + $0x24] sm:$0xf] (%p1666_p6)  ;;  %1056 = vst [vmem:[%s1012_s19 + $0x68] sm:$0xf] (%p1666_p6), %v1055_v24 }
 0x14a   : > { %v951_v4 = vadd.f32 %v950_v2, %v902_v61  ;;  %1046 = vst [vmem:[%s1012_s19 + $0x40] sm:$0xf] (%p1666_p6), %v1045_v17 }
 0x14b   : > { %v940_v3 = vpop.f32.mrf.mxu2  ;;  %1048 = vst [vmem:[%s1012_s19 + $0x48] sm:$0xf] (%p1666_p6), %v1047_v19 }
 0x14c   : > { %v941_v5 = vadd.f32 %v940_v3, %v892_v1  ;;  %v968_v37 = vmax.f32 %v951_v4, 0.0 }
 0x14e   : > { %v964_v9 = vmax.f32 %v941_v5, 0.0  ;;  %v1495_v10 = vpack.c.bf16 %v968_v37, %v967_v6  ;;  %1007 = sbr.rel (!%p1666_p6) target bundleno = 348 (0x15c), region = 77 }
 0x150   : > { %v1485_v11 = vpack.c.bf16 %v964_v9, %v963_v8  ;;  %1503 = vst [vmem:[%s2017_s6 + $0x38] sm:$0xff] %v1495_v10  }
 0x152   : > { %1501 = vst [vmem:[%s2017_s6 + $0x28] sm:$0xff] %v1485_v11  }
 0x157   : > { %v1057_v25 = vld [vmem:[%s2017_s6 + $0x38] sm:$0xf]  ;;  %v1059_v26 = vld [vmem:[%s2017_s6 + $0x3c] sm:$0xf] }
 0x158   : > { %1058 = vst [vmem:[%s1012_s19 + $0x70] sm:$0xf] %v1057_v25 }
 0x159   : > { %v1049_v21 = vld [vmem:[%s2017_s6 + $0x28] sm:$0xf]  ;;  %v1051_v22 = vld [vmem:[%s2017_s6 + $0x2c] sm:$0xf]  ;;  %1060 = vst [vmem:[%s1012_s19 + $0x78] sm:$0xf] %v1059_v26 }
 0x15a   : > { %1050 = vst [vmem:[%s1012_s19 + $0x50] sm:$0xf] %v1049_v21 }
 0x15b   : > { %1052 = vst [vmem:[%s1012_s19 + $0x58] sm:$0xf] %v1051_v22 }
 0x15c PF: > { %s13_s16 = sadd.s32 1, %s1609_s16   ;;  %s2091_s12 = smov %s1597_s13 }
 0x15d   : > { %p10_p12 = scmp.ge.s32.totalorder %s13_s16, 4   ;;  %s2092_s13 = smov %s1671_s22 }
 0x15e   : > { %s2093_s14 = smov %s1605_s15  ;;  %s2094_s15 = smov %s2096_s17 }
 0x15f   :  { %12 = sbr.rel (!%p10_p12) target bundleno = 3 (0x3), region = 155 }

// kernel: _lambda_.5
= control target key start
LH: loop header
LB: loop body
LE: loop exit
PB: predicated region body
PF: predicated region fallthrough
CT: control target
= control target key end

     0   :  { %8 = vsyncpa [#allocation4], 0  ;;  %s4637_s0 = inlined_call_operand.vmem [shape: bf16[128,256], index: 0, kind: input, shape index: {}]   ;;  %s4638_s1 = inlined_call_operand.vmem [shape: bf16[256,2048], index: 1, kind: input, shape index: {}]   ;;  %s4639_s2 = inlined_call_operand.vmem [shape: f32[1,2048], index: 2, kind: input, shape index: {}]   ;;  %s4640_s3 = inlined_call_operand.hbm [shape: f32[2,2048], index: 3, kind: output, shape index: {}]  }
   0x1   :  { %10 = vsyncpa [#allocation4 + $0x1], 0  ;;  %s3512_s12 = smov 0   ;;  %s3514_s13 = smov 0  }
   0x2   :  { %s3516_s14 = smov 0   ;;  %s3518_s15 = smov 0  }
   0x3 LB: > { %s3533_s16 = sadd.s32 4294967295, %s3489_s15   ;;  %s2647_s17 = sadd.s32 4294967294, %s3489_s15   ;;  %s3489_s15 = sphi %s3518_s15, %s4646_s15   ;;  %s3485_s14 = sphi %s3516_s14, %s4645_s14   ;;  %s3481_s13 = sphi %s3514_s13, %s4644_s13   ;;  %s3477_s12 = sphi %s3512_s12, %s4643_s12  }
   0x4   : > { %s3537_s18 = sadd.s32 1, %s3489_s15   ;;  %s44_s19 = sadd.s32 1, %s3485_s14 }
   0x5   : > { %s41_s20 = ssub.s32 %s3489_s15, %s3537_s18  ;;  %p51_p0 = scmp.ne.s32.totalorder %s3485_s14, %s3481_s13 }
   0x6   : > { %p42_p1 = scmp.eq.s32.totalorder %s41_s20, 0  ;;  %p52_p2 = scmp.eq.s32.totalorder %s3489_s15, 0 }
   0x7   : > { %p107_p3 = scmp.eq.s32.totalorder %s3533_s16, 1  ;;  %p112_p4 = scmp.ne.s32.totalorder %s3481_s13, %s3477_s12 }
   0x8   : > { %s3549_s21 = scalar_select %p42_p1, %s3485_s14, %s44_s19  }
   0x9   : > { %p53_p5 = por %p52_p2, %p51_p0  ;;  %p3551_p6 = por %p107_p3, %p51_p0 }
   0xa   : > { %p113_p7 = scmp.eq.s32.totalorder %s2647_s17, 1  ;;  %p2649_p9 = scmp.ge.s32.totalorder %s3489_s15, 2 }
   0xc   : > { %p3555_p8 = por %p113_p7, %p112_p4  ;;  %132 = sbr.rel (%p2649_p9) target bundleno = 149 (0x95), region = 20 }
  0x11   : > { %135 = sbr.rel (!%p53_p5) target bundleno = 149 (0x95), region = 24  ;;  %s137_s24 = sand.u32 (%p53_p5), 1, %s3485_s14  }
  0x12   : > { %s3238_s25 = sshll.u32 (%p53_p5), %s3489_s15, 5  ;;  %s2650_s26 = sshll.u32 (%p53_p5), %s137_s24, 10 }
  0x13   : > { %s3567_s29 = scalar_lea.vmem (%p53_p5), %s4638_s1, %s3238_s25  ;;  %s3572_s30 = scalar_lea.vmem (%p53_p5), [#allocation2], %s2650_s26 }
  0x14   : > { %v155_v0 = vld [vmem:[%s3567_s29] sm:$0xff] (%p53_p5)  ;;  %v157_v1 = vld [vmem:[%s3567_s29 + $0x8] sm:$0xff] (%p53_p5)  ;;  %v159_v2 = vld [vmem:[%s3567_s29 + $0x10] sm:$0xff] (%p53_p5) }
  0x15   : > { %156 = vst [vmem:[%s3572_s30] sm:$0xff] (%p53_p5), %v155_v0  ;;  %v161_v3 = vld [vmem:[%s3567_s29 + $0x18] sm:$0xff] (%p53_p5)  ;;  %v163_v4 = vld [vmem:[%s3567_s29 + $0x40] sm:$0xff] (%p53_p5)  ;;  %v165_v5 = vld [vmem:[%s3567_s29 + $0x48] sm:$0xff] (%p53_p5) }
  0x16   : > { %158 = vst [vmem:[%s3572_s30 + $0x8] sm:$0xff] %v157_v1  ;;  %v167_v6 = vld [vmem:[%s3567_s29 + $0x50] sm:$0xff]  ;;  %v169_v7 = vld [vmem:[%s3567_s29 + $0x58] sm:$0xff]  ;;  %v171_v8 = vld [vmem:[%s3567_s29 + $0x80] sm:$0xff] }
  0x17   : > { %160 = vst [vmem:[%s3572_s30 + $0x10] sm:$0xff] %v159_v2  ;;  %v173_v9 = vld [vmem:[%s3567_s29 + $0x88] sm:$0xff]  ;;  %v175_v10 = vld [vmem:[%s3567_s29 + $0x90] sm:$0xff]  ;;  %v177_v11 = vld [vmem:[%s3567_s29 + $0x98] sm:$0xff] }
  0x18   : > { %162 = vst [vmem:[%s3572_s30 + $0x18] sm:$0xff] %v161_v3  ;;  %v179_v12 = vld [vmem:[%s3567_s29 + $0xc0] sm:$0xff]  ;;  %v181_v13 = vld [vmem:[%s3567_s29 + $0xc8] sm:$0xff]  ;;  %v183_v14 = vld [vmem:[%s3567_s29 + $0xd0] sm:$0xff] }
  0x19   : > { %164 = vst [vmem:[%s3572_s30 + $0x20] sm:$0xff] %v163_v4  ;;  %v185_v15 = vld [vmem:[%s3567_s29 + $0xd8] sm:$0xff]  ;;  %v187_v16 = vld [vmem:[%s3567_s29 + $0x100] sm:$0xff]  ;;  %v189_v17 = vld [vmem:[%s3567_s29 + $0x108] sm:$0xff] }
  0x1a   : > { %166 = vst [vmem:[%s3572_s30 + $0x28] sm:$0xff] %v165_v5  ;;  %v191_v18 = vld [vmem:[%s3567_s29 + $0x110] sm:$0xff]  ;;  %v193_v19 = vld [vmem:[%s3567_s29 + $0x118] sm:$0xff]  ;;  %v195_v20 = vld [vmem:[%s3567_s29 + $0x140] sm:$0xff] }
  0x1b   : > { %168 = vst [vmem:[%s3572_s30 + $0x30] sm:$0xff] %v167_v6  ;;  %v197_v21 = vld [vmem:[%s3567_s29 + $0x148] sm:$0xff]  ;;  %v199_v22 = vld [vmem:[%s3567_s29 + $0x150] sm:$0xff]  ;;  %v201_v23 = vld [vmem:[%s3567_s29 + $0x158] sm:$0xff] }
  0x1c   : > { %170 = vst [vmem:[%s3572_s30 + $0x38] sm:$0xff] %v169_v7  ;;  %v203_v24 = vld [vmem:[%s3567_s29 + $0x180] sm:$0xff]  ;;  %v205_v25 = vld [vmem:[%s3567_s29 + $0x188] sm:$0xff]  ;;  %v207_v26 = vld [vmem:[%s3567_s29 + $0x190] sm:$0xff] }
  0x1d   : > { %172 = vst [vmem:[%s3572_s30 + $0x40] sm:$0xff] %v171_v8  ;;  %v209_v27 = vld [vmem:[%s3567_s29 + $0x198] sm:$0xff]  ;;  %v211_v28 = vld [vmem:[%s3567_s29 + $0x1c0] sm:$0xff]  ;;  %v213_v29 = vld [vmem:[%s3567_s29 + $0x1c8] sm:$0xff] }
  0x1e   : > { %174 = vst [vmem:[%s3572_s30 + $0x48] sm:$0xff] %v173_v9  ;;  %v215_v30 = vld [vmem:[%s3567_s29 + $0x1d0] sm:$0xff]  ;;  %v217_v31 = vld [vmem:[%s3567_s29 + $0x1d8] sm:$0xff]  ;;  %v219_v32 = vld [vmem:[%s3567_s29 + $0x200] sm:$0xff] }
  0x1f   : > { %176 = vst [vmem:[%s3572_s30 + $0x50] sm:$0xff] %v175_v10  ;;  %v221_v33 = vld [vmem:[%s3567_s29 + $0x208] sm:$0xff]  ;;  %v223_v34 = vld [vmem:[%s3567_s29 + $0x210] sm:$0xff]  ;;  %v225_v35 = vld [vmem:[%s3567_s29 + $0x218] sm:$0xff] }
  0x20   : > { %178 = vst [vmem:[%s3572_s30 + $0x58] sm:$0xff] %v177_v11  ;;  %v227_v36 = vld [vmem:[%s3567_s29 + $0x240] sm:$0xff]  ;;  %v229_v37 = vld [vmem:[%s3567_s29 + $0x248] sm:$0xff]  ;;  %v231_v38 = vld [vmem:[%s3567_s29 + $0x250] sm:$0xff] }
  0x21   : > { %180 = vst [vmem:[%s3572_s30 + $0x60] sm:$0xff] %v179_v12  ;;  %v233_v39 = vld [vmem:[%s3567_s29 + $0x258] sm:$0xff]  ;;  %v235_v40 = vld [vmem:[%s3567_s29 + $0x280] sm:$0xff]  ;;  %v237_v41 = vld [vmem:[%s3567_s29 + $0x288] sm:$0xff] }
  0x22   : > { %182 = vst [vmem:[%s3572_s30 + $0x68] sm:$0xff] %v181_v13  ;;  %v239_v42 = vld [vmem:[%s3567_s29 + $0x290] sm:$0xff]  ;;  %v241_v43 = vld [vmem:[%s3567_s29 + $0x298] sm:$0xff]  ;;  %v243_v44 = vld [vmem:[%s3567_s29 + $0x2c0] sm:$0xff] }
  0x23   : > { %184 = vst [vmem:[%s3572_s30 + $0x70] sm:$0xff] %v183_v14  ;;  %v245_v45 = vld [vmem:[%s3567_s29 + $0x2c8] sm:$0xff]  ;;  %v247_v46 = vld [vmem:[%s3567_s29 + $0x2d0] sm:$0xff]  ;;  %v249_v47 = vld [vmem:[%s3567_s29 + $0x2d8] sm:$0xff] }
  0x24   : > { %186 = vst [vmem:[%s3572_s30 + $0x78] sm:$0xff] %v185_v15  ;;  %v251_v48 = vld [vmem:[%s3567_s29 + $0x300] sm:$0xff]  ;;  %v253_v49 = vld [vmem:[%s3567_s29 + $0x308] sm:$0xff]  ;;  %v255_v50 = vld [vmem:[%s3567_s29 + $0x310] sm:$0xff] }
  0x25   : > { %188 = vst [vmem:[%s3572_s30 + $0x80] sm:$0xff] %v187_v16  ;;  %v257_v51 = vld [vmem:[%s3567_s29 + $0x318] sm:$0xff]  ;;  %v259_v52 = vld [vmem:[%s3567_s29 + $0x340] sm:$0xff]  ;;  %v261_v53 = vld [vmem:[%s3567_s29 + $0x348] sm:$0xff] }
  0x26   : > { %190 = vst [vmem:[%s3572_s30 + $0x88] sm:$0xff] %v189_v17  ;;  %v263_v54 = vld [vmem:[%s3567_s29 + $0x350] sm:$0xff]  ;;  %v265_v55 = vld [vmem:[%s3567_s29 + $0x358] sm:$0xff]  ;;  %v267_v56 = vld [vmem:[%s3567_s29 + $0x380] sm:$0xff] }
  0x27   : > { %192 = vst [vmem:[%s3572_s30 + $0x90] sm:$0xff] %v191_v18  ;;  %v269_v57 = vld [vmem:[%s3567_s29 + $0x388] sm:$0xff]  ;;  %v271_v58 = vld [vmem:[%s3567_s29 + $0x390] sm:$0xff]  ;;  %v273_v59 = vld [vmem:[%s3567_s29 + $0x398] sm:$0xff] }
  0x28   : > { %194 = vst [vmem:[%s3572_s30 + $0x98] sm:$0xff] %v193_v19  ;;  %v275_v60 = vld [vmem:[%s3567_s29 + $0x3c0] sm:$0xff]  ;;  %v277_v61 = vld [vmem:[%s3567_s29 + $0x3c8] sm:$0xff]  ;;  %v279_v62 = vld [vmem:[%s3567_s29 + $0x3d0] sm:$0xff] }
  0x29   : > { %196 = vst [vmem:[%s3572_s30 + $0xa0] sm:$0xff] %v195_v20  ;;  %v281_v63 = vld [vmem:[%s3567_s29 + $0x3d8] sm:$0xff]  ;;  %v283_v0 = vld [vmem:[%s3567_s29 + $0x400] sm:$0xff]  ;;  %v285_v1 = vld [vmem:[%s3567_s29 + $0x408] sm:$0xff] }
  0x2a   : > { %198 = vst [vmem:[%s3572_s30 + $0xa8] sm:$0xff] %v197_v21  ;;  %v287_v2 = vld [vmem:[%s3567_s29 + $0x410] sm:$0xff]  ;;  %v289_v3 = vld [vmem:[%s3567_s29 + $0x418] sm:$0xff]  ;;  %v291_v4 = vld [vmem:[%s3567_s29 + $0x440] sm:$0xff] }
  0x2b   : > { %200 = vst [vmem:[%s3572_s30 + $0xb0] sm:$0xff] %v199_v22  ;;  %v293_v5 = vld [vmem:[%s3567_s29 + $0x448] sm:$0xff]  ;;  %v295_v6 = vld [vmem:[%s3567_s29 + $0x450] sm:$0xff]  ;;  %v297_v7 = vld [vmem:[%s3567_s29 + $0x458] sm:$0xff] }
  0x2c   : > { %202 = vst [vmem:[%s3572_s30 + $0xb8] sm:$0xff] %v201_v23  ;;  %v299_v8 = vld [vmem:[%s3567_s29 + $0x480] sm:$0xff]  ;;  %v301_v9 = vld [vmem:[%s3567_s29 + $0x488] sm:$0xff]  ;;  %v303_v10 = vld [vmem:[%s3567_s29 + $0x490] sm:$0xff] }
  0x2d   : > { %204 = vst [vmem:[%s3572_s30 + $0xc0] sm:$0xff] %v203_v24  ;;  %v305_v11 = vld [vmem:[%s3567_s29 + $0x498] sm:$0xff]  ;;  %v307_v12 = vld [vmem:[%s3567_s29 + $0x4c0] sm:$0xff]  ;;  %v309_v13 = vld [vmem:[%s3567_s29 + $0x4c8] sm:$0xff] }
  0x2e   : > { %206 = vst [vmem:[%s3572_s30 + $0xc8] sm:$0xff] %v205_v25  ;;  %v311_v14 = vld [vmem:[%s3567_s29 + $0x4d0] sm:$0xff]  ;;  %v313_v15 = vld [vmem:[%s3567_s29 + $0x4d8] sm:$0xff]  ;;  %v315_v16 = vld [vmem:[%s3567_s29 + $0x500] sm:$0xff] }
  0x2f   : > { %208 = vst [vmem:[%s3572_s30 + $0xd0] sm:$0xff] %v207_v26  ;;  %v317_v17 = vld [vmem:[%s3567_s29 + $0x508] sm:$0xff]  ;;  %v319_v18 = vld [vmem:[%s3567_s29 + $0x510] sm:$0xff]  ;;  %v321_v19 = vld [vmem:[%s3567_s29 + $0x518] sm:$0xff] }
  0x30   : > { %210 = vst [vmem:[%s3572_s30 + $0xd8] sm:$0xff] %v209_v27  ;;  %v323_v20 = vld [vmem:[%s3567_s29 + $0x540] sm:$0xff]  ;;  %v325_v21 = vld [vmem:[%s3567_s29 + $0x548] sm:$0xff]  ;;  %v327_v22 = vld [vmem:[%s3567_s29 + $0x550] sm:$0xff] }
  0x31   : > { %212 = vst [vmem:[%s3572_s30 + $0xe0] sm:$0xff] %v211_v28  ;;  %v329_v23 = vld [vmem:[%s3567_s29 + $0x558] sm:$0xff]  ;;  %v331_v24 = vld [vmem:[%s3567_s29 + $0x580] sm:$0xff]  ;;  %v333_v25 = vld [vmem:[%s3567_s29 + $0x588] sm:$0xff] }
  0x32   : > { %214 = vst [vmem:[%s3572_s30 + $0xe8] sm:$0xff] %v213_v29  ;;  %v335_v26 = vld [vmem:[%s3567_s29 + $0x590] sm:$0xff]  ;;  %v337_v27 = vld [vmem:[%s3567_s29 + $0x598] sm:$0xff]  ;;  %v339_v28 = vld [vmem:[%s3567_s29 + $0x5c0] sm:$0xff] }
  0x33   : > { %216 = vst [vmem:[%s3572_s30 + $0xf0] sm:$0xff] %v215_v30  ;;  %v341_v29 = vld [vmem:[%s3567_s29 + $0x5c8] sm:$0xff]  ;;  %v343_v30 = vld [vmem:[%s3567_s29 + $0x5d0] sm:$0xff] }
  0x34   : > { %218 = vst [vmem:[%s3572_s30 + $0xf8] sm:$0xff] %v217_v31  ;;  %v345_v31 = vld [vmem:[%s3567_s29 + $0x5d8] sm:$0xff] }
  0x35   : > { %220 = vst [vmem:[%s3572_s30 + $0x100] sm:$0xff] %v219_v32  ;;  %v347_v32 = vld [vmem:[%s3567_s29 + $0x600] sm:$0xff] }
  0x36   : > { %222 = vst [vmem:[%s3572_s30 + $0x108] sm:$0xff] %v221_v33  ;;  %v349_v33 = vld [vmem:[%s3567_s29 + $0x608] sm:$0xff] }
  0x37   : > { %224 = vst [vmem:[%s3572_s30 + $0x110] sm:$0xff] %v223_v34  ;;  %v351_v34 = vld [vmem:[%s3567_s29 + $0x610] sm:$0xff] }
  0x38   : > { %226 = vst [vmem:[%s3572_s30 + $0x118] sm:$0xff] %v225_v35  ;;  %v353_v35 = vld [vmem:[%s3567_s29 + $0x618] sm:$0xff] }
  0x39   : > { %228 = vst [vmem:[%s3572_s30 + $0x120] sm:$0xff] %v227_v36  ;;  %v355_v36 = vld [vmem:[%s3567_s29 + $0x640] sm:$0xff] }
  0x3a   : > { %230 = vst [vmem:[%s3572_s30 + $0x128] sm:$0xff] %v229_v37  ;;  %v357_v37 = vld [vmem:[%s3567_s29 + $0x648] sm:$0xff] }
  0x3b   : > { %232 = vst [vmem:[%s3572_s30 + $0x130] sm:$0xff] %v231_v38  ;;  %v359_v38 = vld [vmem:[%s3567_s29 + $0x650] sm:$0xff] }
  0x3c   : > { %234 = vst [vmem:[%s3572_s30 + $0x138] sm:$0xff] %v233_v39  ;;  %v361_v39 = vld [vmem:[%s3567_s29 + $0x658] sm:$0xff] }
  0x3d   : > { %236 = vst [vmem:[%s3572_s30 + $0x140] sm:$0xff] %v235_v40  ;;  %v363_v40 = vld [vmem:[%s3567_s29 + $0x680] sm:$0xff] }
  0x3e   : > { %238 = vst [vmem:[%s3572_s30 + $0x148] sm:$0xff] %v237_v41  ;;  %v365_v41 = vld [vmem:[%s3567_s29 + $0x688] sm:$0xff] }
  0x3f   : > { %240 = vst [vmem:[%s3572_s30 + $0x150] sm:$0xff] %v239_v42  ;;  %v367_v42 = vld [vmem:[%s3567_s29 + $0x690] sm:$0xff] }
  0x40   : > { %242 = vst [vmem:[%s3572_s30 + $0x158] sm:$0xff] %v241_v43  ;;  %v369_v43 = vld [vmem:[%s3567_s29 + $0x698] sm:$0xff] }
  0x41   : > { %244 = vst [vmem:[%s3572_s30 + $0x160] sm:$0xff] %v243_v44  ;;  %v371_v44 = vld [vmem:[%s3567_s29 + $0x6c0] sm:$0xff] }
  0x42   : > { %246 = vst [vmem:[%s3572_s30 + $0x168] sm:$0xff] %v245_v45  ;;  %v373_v45 = vld [vmem:[%s3567_s29 + $0x6c8] sm:$0xff] }
  0x43   : > { %248 = vst [vmem:[%s3572_s30 + $0x170] sm:$0xff] %v247_v46  ;;  %v375_v46 = vld [vmem:[%s3567_s29 + $0x6d0] sm:$0xff] }
  0x44   : > { %250 = vst [vmem:[%s3572_s30 + $0x178] sm:$0xff] %v249_v47  ;;  %v377_v47 = vld [vmem:[%s3567_s29 + $0x6d8] sm:$0xff] }
  0x45   : > { %252 = vst [vmem:[%s3572_s30 + $0x180] sm:$0xff] %v251_v48  ;;  %v379_v48 = vld [vmem:[%s3567_s29 + $0x700] sm:$0xff] }
  0x46   : > { %254 = vst [vmem:[%s3572_s30 + $0x188] sm:$0xff] %v253_v49  ;;  %v381_v49 = vld [vmem:[%s3567_s29 + $0x708] sm:$0xff] }
  0x47   : > { %256 = vst [vmem:[%s3572_s30 + $0x190] sm:$0xff] %v255_v50  ;;  %v383_v50 = vld [vmem:[%s3567_s29 + $0x710] sm:$0xff] }
  0x48   : > { %258 = vst [vmem:[%s3572_s30 + $0x198] sm:$0xff] %v257_v51  ;;  %v385_v51 = vld [vmem:[%s3567_s29 + $0x718] sm:$0xff] }
  0x49   : > { %260 = vst [vmem:[%s3572_s30 + $0x1a0] sm:$0xff] %v259_v52  ;;  %v387_v52 = vld [vmem:[%s3567_s29 + $0x740] sm:$0xff] }
  0x4a   : > { %262 = vst [vmem:[%s3572_s30 + $0x1a8] sm:$0xff] %v261_v53  ;;  %v389_v53 = vld [vmem:[%s3567_s29 + $0x748] sm:$0xff] }
  0x4b   : > { %264 = vst [vmem:[%s3572_s30 + $0x1b0] sm:$0xff] %v263_v54  ;;  %v391_v54 = vld [vmem:[%s3567_s29 + $0x750] sm:$0xff] }
  0x4c   : > { %266 = vst [vmem:[%s3572_s30 + $0x1b8] sm:$0xff] %v265_v55  ;;  %v393_v55 = vld [vmem:[%s3567_s29 + $0x758] sm:$0xff] }
  0x4d   : > { %268 = vst [vmem:[%s3572_s30 + $0x1c0] sm:$0xff] %v267_v56  ;;  %v395_v56 = vld [vmem:[%s3567_s29 + $0x780] sm:$0xff] }
  0x4e   : > { %270 = vst [vmem:[%s3572_s30 + $0x1c8] sm:$0xff] %v269_v57  ;;  %v397_v57 = vld [vmem:[%s3567_s29 + $0x788] sm:$0xff] }
  0x4f   : > { %272 = vst [vmem:[%s3572_s30 + $0x1d0] sm:$0xff] %v271_v58  ;;  %v399_v58 = vld [vmem:[%s3567_s29 + $0x790] sm:$0xff] }
  0x50   : > { %274 = vst [vmem:[%s3572_s30 + $0x1d8] sm:$0xff] %v273_v59  ;;  %v401_v59 = vld [vmem:[%s3567_s29 + $0x798] sm:$0xff] }
  0x51   : > { %276 = vst [vmem:[%s3572_s30 + $0x1e0] sm:$0xff] %v275_v60  ;;  %v403_v60 = vld [vmem:[%s3567_s29 + $0x7c0] sm:$0xff] }
  0x52   : > { %278 = vst [vmem:[%s3572_s30 + $0x1e8] sm:$0xff] %v277_v61  ;;  %v405_v61 = vld [vmem:[%s3567_s29 + $0x7c8] sm:$0xff] }
  0x53   : > { %280 = vst [vmem:[%s3572_s30 + $0x1f0] sm:$0xff] %v279_v62  ;;  %v407_v62 = vld [vmem:[%s3567_s29 + $0x7d0] sm:$0xff] }
  0x54   : > { %282 = vst [vmem:[%s3572_s30 + $0x1f8] sm:$0xff] %v281_v63  ;;  %v409_v63 = vld [vmem:[%s3567_s29 + $0x7d8] sm:$0xff] }
  0x55   : > { %284 = vst [vmem:[%s3572_s30 + $0x200] sm:$0xff] %v283_v0 }
  0x56   : > { %286 = vst [vmem:[%s3572_s30 + $0x208] sm:$0xff] %v285_v1 }
  0x57   : > { %288 = vst [vmem:[%s3572_s30 + $0x210] sm:$0xff] %v287_v2 }
  0x58   : > { %290 = vst [vmem:[%s3572_s30 + $0x218] sm:$0xff] %v289_v3 }
  0x59   : > { %292 = vst [vmem:[%s3572_s30 + $0x220] sm:$0xff] %v291_v4 }
  0x5a   : > { %294 = vst [vmem:[%s3572_s30 + $0x228] sm:$0xff] %v293_v5 }
  0x5b   : > { %296 = vst [vmem:[%s3572_s30 + $0x230] sm:$0xff] %v295_v6 }
  0x5c   : > { %298 = vst [vmem:[%s3572_s30 + $0x238] sm:$0xff] %v297_v7 }
  0x5d   : > { %300 = vst [vmem:[%s3572_s30 + $0x240] sm:$0xff] %v299_v8 }
  0x5e   : > { %302 = vst [vmem:[%s3572_s30 + $0x248] sm:$0xff] %v301_v9 }
  0x5f   : > { %304 = vst [vmem:[%s3572_s30 + $0x250] sm:$0xff] %v303_v10 }
  0x60   : > { %306 = vst [vmem:[%s3572_s30 + $0x258] sm:$0xff] %v305_v11 }
  0x61   : > { %308 = vst [vmem:[%s3572_s30 + $0x260] sm:$0xff] %v307_v12 }
  0x62   : > { %310 = vst [vmem:[%s3572_s30 + $0x268] sm:$0xff] %v309_v13 }
  0x63   : > { %312 = vst [vmem:[%s3572_s30 + $0x270] sm:$0xff] %v311_v14 }
  0x64   : > { %314 = vst [vmem:[%s3572_s30 + $0x278] sm:$0xff] %v313_v15 }
  0x65   : > { %316 = vst [vmem:[%s3572_s30 + $0x280] sm:$0xff] %v315_v16 }
  0x66   : > { %318 = vst [vmem:[%s3572_s30 + $0x288] sm:$0xff] %v317_v17 }
  0x67   : > { %320 = vst [vmem:[%s3572_s30 + $0x290] sm:$0xff] %v319_v18 }
  0x68   : > { %322 = vst [vmem:[%s3572_s30 + $0x298] sm:$0xff] %v321_v19 }
  0x69   : > { %324 = vst [vmem:[%s3572_s30 + $0x2a0] sm:$0xff] %v323_v20 }
  0x6a   : > { %326 = vst [vmem:[%s3572_s30 + $0x2a8] sm:$0xff] %v325_v21 }
  0x6b   : > { %328 = vst [vmem:[%s3572_s30 + $0x2b0] sm:$0xff] %v327_v22 }
  0x6c   : > { %330 = vst [vmem:[%s3572_s30 + $0x2b8] sm:$0xff] %v329_v23 }
  0x6d   : > { %332 = vst [vmem:[%s3572_s30 + $0x2c0] sm:$0xff] %v331_v24 }
  0x6e   : > { %334 = vst [vmem:[%s3572_s30 + $0x2c8] sm:$0xff] %v333_v25 }
  0x6f   : > { %336 = vst [vmem:[%s3572_s30 + $0x2d0] sm:$0xff] %v335_v26 }
  0x70   : > { %338 = vst [vmem:[%s3572_s30 + $0x2d8] sm:$0xff] %v337_v27 }
  0x71   : > { %340 = vst [vmem:[%s3572_s30 + $0x2e0] sm:$0xff] %v339_v28 }
  0x72   : > { %342 = vst [vmem:[%s3572_s30 + $0x2e8] sm:$0xff] %v341_v29 }
  0x73   : > { %344 = vst [vmem:[%s3572_s30 + $0x2f0] sm:$0xff] %v343_v30 }
  0x74   : > { %346 = vst [vmem:[%s3572_s30 + $0x2f8] sm:$0xff] %v345_v31 }
  0x75   : > { %348 = vst [vmem:[%s3572_s30 + $0x300] sm:$0xff] %v347_v32 }
  0x76   : > { %350 = vst [vmem:[%s3572_s30 + $0x308] sm:$0xff] %v349_v33 }
  0x77   : > { %352 = vst [vmem:[%s3572_s30 + $0x310] sm:$0xff] %v351_v34 }
  0x78   : > { %354 = vst [vmem:[%s3572_s30 + $0x318] sm:$0xff] %v353_v35 }
  0x79   : > { %356 = vst [vmem:[%s3572_s30 + $0x320] sm:$0xff] %v355_v36 }
  0x7a   : > { %358 = vst [vmem:[%s3572_s30 + $0x328] sm:$0xff] %v357_v37 }
  0x7b   : > { %360 = vst [vmem:[%s3572_s30 + $0x330] sm:$0xff] %v359_v38 }
  0x7c   : > { %362 = vst [vmem:[%s3572_s30 + $0x338] sm:$0xff] %v361_v39 }
  0x7d   : > { %364 = vst [vmem:[%s3572_s30 + $0x340] sm:$0xff] %v363_v40 }
  0x7e   : > { %366 = vst [vmem:[%s3572_s30 + $0x348] sm:$0xff] %v365_v41 }
  0x7f   : > { %368 = vst [vmem:[%s3572_s30 + $0x350] sm:$0xff] %v367_v42 }
  0x80   : > { %370 = vst [vmem:[%s3572_s30 + $0x358] sm:$0xff] %v369_v43 }
  0x81   : > { %372 = vst [vmem:[%s3572_s30 + $0x360] sm:$0xff] %v371_v44 }
  0x82   : > { %374 = vst [vmem:[%s3572_s30 + $0x368] sm:$0xff] %v373_v45 }
  0x83   : > { %376 = vst [vmem:[%s3572_s30 + $0x370] sm:$0xff] %v375_v46 }
  0x84   : > { %378 = vst [vmem:[%s3572_s30 + $0x378] sm:$0xff] %v377_v47 }
  0x85   : > { %380 = vst [vmem:[%s3572_s30 + $0x380] sm:$0xff] %v379_v48 }
  0x86   : > { %382 = vst [vmem:[%s3572_s30 + $0x388] sm:$0xff] %v381_v49 }
  0x87   : > { %384 = vst [vmem:[%s3572_s30 + $0x390] sm:$0xff] %v383_v50 }
  0x88   : > { %386 = vst [vmem:[%s3572_s30 + $0x398] sm:$0xff] %v385_v51 }
  0x89   : > { %388 = vst [vmem:[%s3572_s30 + $0x3a0] sm:$0xff] %v387_v52 }
  0x8a   : > { %390 = vst [vmem:[%s3572_s30 + $0x3a8] sm:$0xff] %v389_v53 }
  0x8b   : > { %392 = vst [vmem:[%s3572_s30 + $0x3b0] sm:$0xff] %v391_v54 }
  0x8c   : > { %394 = vst [vmem:[%s3572_s30 + $0x3b8] sm:$0xff] %v393_v55 }
  0x8d   : > { %396 = vst [vmem:[%s3572_s30 + $0x3c0] sm:$0xff] %v395_v56 }
  0x8e   : > { %398 = vst [vmem:[%s3572_s30 + $0x3c8] sm:$0xff] %v397_v57 }
  0x8f   : > { %400 = vst [vmem:[%s3572_s30 + $0x3d0] sm:$0xff] %v399_v58 }
  0x90   : > { %402 = vst [vmem:[%s3572_s30 + $0x3d8] sm:$0xff] %v401_v59 }
  0x91   : > { %404 = vst [vmem:[%s3572_s30 + $0x3e0] sm:$0xff] %v403_v60 }
  0x92   : > { %406 = vst [vmem:[%s3572_s30 + $0x3e8] sm:$0xff] %v405_v61 }
  0x93   : > { %408 = vst [vmem:[%s3572_s30 + $0x3f0] sm:$0xff] %v407_v62 }
  0x94   : > { %410 = vst [vmem:[%s3572_s30 + $0x3f8] sm:$0xff] %v409_v63 }
  0x95 PF: > { %p2653_p10 = scmp.ge.s32.totalorder %s3489_s15, 1  ;;  %p423_p11 = scmp.lt.s32.totalorder %s3489_s15, 3 }
  0x97   : > { %p424_p12 = pnand %p2653_p10, %p423_p11 }
  0x98   : > { %s3830_s4 = sand.u32 (!%p424_p12), 1, %s3481_s13   ;;  %s2656_s24 = sshll.u32 (!%p424_p12), %s3533_s16, 3 }
  0x99   : > { %427 = sbr.rel (%p424_p12) target bundleno = 864 (0x360), region = 51  ;;  %s2654_s5 = sshll.u32 (!%p424_p12), %s3830_s4, 10 }
  0x9a   : > { %s3833_s6 = scalar_lea.vmem (!%p424_p12), [#allocation2], %s2654_s5  ;;  %p459_p13 = scmp.lt.s32.totalorder (!%p424_p12), %s2656_s24, 15 }
  0x9b   : > { %s3383_s17 = sshll.u32 (!%p424_p12), %s3533_s16, 4  ;;  %s2557_s16 = scalar_lea.sflag (!%p424_p12), [#allocation4], %s3830_s4 }
  0x9c   : > { %s3447_s5 = scalar_lea.hbm (!%p424_p12), %s4640_s3, 32 }
  0x9e   : > { %v2947_v0 = vld [vmem:[%s3833_s6 + $0x1c0] sm:$0xf]  ;;  %v3311_v5 = vld [vmem:[%s3833_s6 + $0x1c4] sm:$0xf]  ;;  %s4648_s24 = smov (!%p459_p13, %s2656_s24), 15  ;;  %vm2517_vm1 = vcmask 1041408  }
  0x9f   : > { %v3315_v1 = vld [vmem:[%s3833_s6 + $0x1dc] sm:$0xf0]  ;;  %v2949_v6 = vld [vmem:[%s3833_s6 + $0x1e0] sm:$0xf0]  ;;  %s4135_s10 = scalar_lea.vmem %s4639_s2, %s4648_s24  ;;  %vm2519_vm2 = vcmask 1045508   ;;  %vm2521_vm3 = vcmask 1043456   ;;  %s2568_s24 = scalar_lea.hbm %s4640_s3, %s3383_s17 }
  0xa0   : > { %v3203_v2 = vld [vmem:[%s3833_s6 + $0x3c0] sm:$0xf]  ;;  %v2948_v3 = vor.u32 %v3315_v1, %v2947_v0  ;;  %v2952_v8 = vor.u32 %v3311_v5, %v2949_v6  ;;  %v3375_v9 = vld [vmem:[%s3833_s6 + $0x3c4] sm:$0xf]  ;;  %vm2537_vm4 = vcmask 1041409   ;;  %vm2539_vm5 = vcmask 1043459  }
  0xa1   : > { %v3379_v4 = vld [vmem:[%s3833_s6 + $0x3dc] sm:$0xf0]  ;;  %v3205_v10 = vld [vmem:[%s3833_s6 + $0x3e0] sm:$0xf0]  ;;  %vm2541_vm6 = vcmask 1045509   ;;  %vm2543_vm7 = vcmask 1047559  }
  0xa2   : > { %v3204_v7 = vor.u32 %v3379_v4, %v3203_v2  ;;  %v2915_v11 = vld [vmem:[%s3833_s6 + $0x180] sm:$0xf]  ;;  %1346 = vmatpush.bf16.msra.mxu0 %v2948_v3  ;;  %v3208_v12 = vor.u32 %v3375_v9, %v3205_v10  ;;  %1444 = vmatpush.bf16.msra.mxu2 %v2952_v8  ;;  %v3303_v18 = vld [vmem:[%s3833_s6 + $0x184] sm:$0xf]  ;;  %s2572_s26 = sshll.u32 %s2568_s24, 4  ;;  %s2573_s26 = int_to_ptr.hbm [resolvable:$true] %s2572_s26 }
  0xa3   : > { %v3307_v13 = vld [vmem:[%s3833_s6 + $0x19c] sm:$0xf0]  ;;  %v2917_v19 = vld [vmem:[%s3833_s6 + $0x1a0] sm:$0xf0]  ;;  %s3441_s27 = sshra.s32 %s2573_s26, 4  ;;  %s3442_s27 = int_to_ptr.hbm [resolvable:$true] %s3441_s27 }
  0xa4   : > { %v3171_v14 = vld [vmem:[%s3833_s6 + $0x380] sm:$0xf]  ;;  %1395 = vmatpush.bf16.msra.mxu1 %v3204_v7  ;;  %v2916_v16 = vor.u32 %v3307_v13, %v2915_v11  ;;  %v3367_v20 = vld [vmem:[%s3833_s6 + $0x384] sm:$0xf]  ;;  %1493 = vmatpush.bf16.msra.mxu3 %v3208_v12  ;;  %v2920_v21 = vor.u32 %v3303_v18, %v2917_v19  ;;  %s3443_s28 = scalar_lea.hbm %s3442_s27, 16  ;;  %p3448_p3 = scmp.lt.s32.totalorder %s3442_s27, %s4640_s3 }
  0xa5   : > { %v3371_v15 = vld [vmem:[%s3833_s6 + $0x39c] sm:$0xf0]  ;;  %v3173_v22 = vld [vmem:[%s3833_s6 + $0x3a0] sm:$0xf0]  ;;  %p3444_p0 = scmp.ne.s32.totalorder %s3442_s27, %s3443_s28  ;;  %p3449_p4 = scmp.lt.s32.totalorder %s3447_s5, %s3443_s28 }
  0xa6   : > { %v3172_v17 = vor.u32 %v3371_v15, %v3171_v14  ;;  %v2883_v23 = vld [vmem:[%s3833_s6 + $0x140] sm:$0xf]  ;;  %v3176_v25 = vor.u32 %v3367_v20, %v3173_v22  ;;  %v3295_v28 = vld [vmem:[%s3833_s6 + $0x144] sm:$0xf]  ;;  %1347 = vmatpush.bf16.msra.mxu0 %v2916_v16  ;;  %1445 = vmatpush.bf16.msra.mxu2 %v2920_v21 }
  0xa7   : > { %v3299_v24 = vld [vmem:[%s3833_s6 + $0x15c] sm:$0xf0]  ;;  %v2885_v30 = vld [vmem:[%s3833_s6 + $0x160] sm:$0xf0]  ;;  %p3445_p1 = pnand %p3444_p0, %p3551_p6  ;;  %p3450_p5 = por %p3449_p4, %p3448_p3 }
  0xa8   : > { %v3139_v26 = vld [vmem:[%s3833_s6 + $0x340] sm:$0xf]  ;;  %v2884_v29 = vor.u32 %v3299_v24, %v2883_v23  ;;  %v3359_v31 = vld [vmem:[%s3833_s6 + $0x344] sm:$0xf]  ;;  %1396 = vmatpush.bf16.msra.mxu1 %v3172_v17  ;;  %v2888_v34 = vor.u32 %v3295_v28, %v2885_v30  ;;  %1494 = vmatpush.bf16.msra.mxu3 %v3176_v25  ;;  %v2957_v30 = vld [vmem:[%s3833_s6 + $0x1e8] sm:$0xf0] }
  0xa9   : > { %v3363_v27 = vld [vmem:[%s3833_s6 + $0x35c] sm:$0xf0]  ;;  %v3141_v32 = vld [vmem:[%s3833_s6 + $0x360] sm:$0xf0]  ;;  %p3446_p2 = pneg %p3445_p1 }
  0xaa   : > { %v3140_v33 = vor.u32 %v3363_v27, %v3139_v26  ;;  %v2851_v35 = vld [vmem:[%s3833_s6 + $0x100] sm:$0xf]  ;;  %v3144_v38 = vor.u32 %v3359_v31, %v3141_v32  ;;  %v3287_v40 = vld [vmem:[%s3833_s6 + $0x104] sm:$0xf]  ;;  %1348 = vmatpush.bf16.msra.mxu0 %v2884_v29  ;;  %1446 = vmatpush.bf16.msra.mxu2 %v2888_v34  ;;  %v3312_v29 = vld [vmem:[%s3833_s6 + $0x1cc] sm:$0xf] }
  0xab   : > { %v3291_v36 = vld [vmem:[%s3833_s6 + $0x11c] sm:$0xf0]  ;;  %v2853_v41 = vld [vmem:[%s3833_s6 + $0x120] sm:$0xf0]  ;;  %v3240_v32 = vld [vmem:[%s4637_s0 + $0x4] sm:$0xf0]  ;;  %p3451_p7 = pnand %p3450_p5, %p3446_p2 }
  0xac   : > { %v3107_v37 = vld [vmem:[%s3833_s6 + $0x300] sm:$0xf]  ;;  %v3351_v42 = vld [vmem:[%s3833_s6 + $0x304] sm:$0xf]  ;;  %v2852_v44 = vor.u32 %v3291_v36, %v2851_v35  ;;  %1397 = vmatpush.bf16.msra.mxu1 %v3140_v33  ;;  %v2856_v46 = vor.u32 %v3287_v40, %v2853_v41  ;;  %1495 = vmatpush.bf16.msra.mxu3 %v3144_v38  ;;  %v3376_v33 = vld [vmem:[%s3833_s6 + $0x3cc] sm:$0xf]  ;;  %v2960_v40 = vor.u32 %v3312_v29, %v2957_v30 }
  0xad   : > { %v3355_v39 = vld [vmem:[%s3833_s6 + $0x31c] sm:$0xf0]  ;;  %v3109_v43 = vld [vmem:[%s3833_s6 + $0x320] sm:$0xf0]  ;;  %v3213_v34 = vld [vmem:[%s3833_s6 + $0x3e8] sm:$0xf0] }
  0xae   : > { %v3108_v45 = vor.u32 %v3355_v39, %v3107_v37  ;;  %v2819_v47 = vld [vmem:[%s3833_s6 + $0xc0] sm:$0xf]  ;;  %v3112_v50 = vor.u32 %v3351_v42, %v3109_v43  ;;  %v3279_v52 = vld [vmem:[%s3833_s6 + $0xc4] sm:$0xf]  ;;  %1349 = vmatpush.bf16.msra.mxu0 %v2852_v44  ;;  %1447 = vmatpush.bf16.msra.mxu2 %v2856_v46  ;;  %v2661_v38 = vld [vmem:[%s4637_s0 + $0x8] sm:$0xf0] }
  0xaf   : > { %v3283_v48 = vld [vmem:[%s3833_s6 + $0xdc] sm:$0xf0]  ;;  %v2821_v53 = vld [vmem:[%s3833_s6 + $0xe0] sm:$0xf0]  ;;  %v2955_v41 = vld [vmem:[%s3833_s6 + $0x1c8] sm:$0xf] }
  0xb0   : > { %v3075_v49 = vld [vmem:[%s3833_s6 + $0x2c0] sm:$0xf]  ;;  %v3343_v54 = vld [vmem:[%s3833_s6 + $0x2c4] sm:$0xf]  ;;  %v2820_v56 = vor.u32 %v3283_v48, %v2819_v47  ;;  %1398 = vmatpush.bf16.msra.mxu1 %v3108_v45  ;;  %v2824_v58 = vor.u32 %v3279_v52, %v2821_v53  ;;  %1496 = vmatpush.bf16.msra.mxu3 %v3112_v50  ;;  %v3316_v42 = vld [vmem:[%s3833_s6 + $0x1e4] sm:$0xf0]  ;;  %v3216_v45 = vor.u32 %v3376_v33, %v3213_v34 }
  0xb1   : > { %v3347_v51 = vld [vmem:[%s3833_s6 + $0x2dc] sm:$0xf0]  ;;  %v3077_v55 = vld [vmem:[%s3833_s6 + $0x2e0] sm:$0xf0]  ;;  %v3211_v43 = vld [vmem:[%s3833_s6 + $0x3c8] sm:$0xf]  ;;  %v2956_v52 = vor.u32 %v3316_v42, %v2955_v41 }
  0xb2   : > { %v3076_v57 = vor.u32 %v3347_v51, %v3075_v49  ;;  %v2787_v59 = vld [vmem:[%s3833_s6 + $0x80] sm:$0xf]  ;;  %v3080_v62 = vor.u32 %v3343_v54, %v3077_v55  ;;  %v3271_v0 = vld [vmem:[%s3833_s6 + $0x84] sm:$0xf]  ;;  %1350 = vmatpush.bf16.msra.mxu0 %v2820_v56  ;;  %1448 = vmatpush.bf16.msra.mxu2 %v2824_v58  ;;  %v3380_v46 = vld [vmem:[%s3833_s6 + $0x3e4] sm:$0xf0] }
  0xb3   : > { %v3275_v60 = vld [vmem:[%s3833_s6 + $0x9c] sm:$0xf0]  ;;  %v2789_v1 = vld [vmem:[%s3833_s6 + $0xa0] sm:$0xf0]  ;;  %v3304_v47 = vld [vmem:[%s3833_s6 + $0x18c] sm:$0xf]  ;;  %v3212_v53 = vor.u32 %v3380_v46, %v3211_v43 }
  0xb4   : > { %v3043_v61 = vld [vmem:[%s3833_s6 + $0x280] sm:$0xf]  ;;  %v3335_v2 = vld [vmem:[%s3833_s6 + $0x284] sm:$0xf]  ;;  %v2788_v4 = vor.u32 %v3275_v60, %v2787_v59  ;;  %1399 = vmatpush.bf16.msra.mxu1 %v3076_v57  ;;  %v2792_v6 = vor.u32 %v3271_v0, %v2789_v1  ;;  %1497 = vmatpush.bf16.msra.mxu3 %v3080_v62  ;;  %v2925_v48 = vld [vmem:[%s3833_s6 + $0x1a8] sm:$0xf0] }
  0xb5   : > { %v3339_v63 = vld [vmem:[%s3833_s6 + $0x29c] sm:$0xf0]  ;;  %v3045_v3 = vld [vmem:[%s3833_s6 + $0x2a0] sm:$0xf0]  ;;  %v3368_v50 = vld [vmem:[%s3833_s6 + $0x38c] sm:$0xf]  ;;  %v2928_v54 = vor.u32 %v3304_v47, %v2925_v48 }
  0xb6   : > { %v3044_v5 = vor.u32 %v3339_v63, %v3043_v61  ;;  %v2755_v7 = vld [vmem:[%s3833_s6 + $0x40] sm:$0xf]  ;;  %v3048_v10 = vor.u32 %v3335_v2, %v3045_v3  ;;  %v3263_v12 = vld [vmem:[%s3833_s6 + $0x44] sm:$0xf]  ;;  %1351 = vmatpush.bf16.msra.mxu0 %v2788_v4  ;;  %1449 = vmatpush.bf16.msra.mxu2 %v2792_v6  ;;  %v3181_v51 = vld [vmem:[%s3833_s6 + $0x3a8] sm:$0xf0] }
  0xb7   : > { %v3267_v8 = vld [vmem:[%s3833_s6 + $0x5c] sm:$0xf0]  ;;  %v2757_v13 = vld [vmem:[%s3833_s6 + $0x60] sm:$0xf0]  ;;  %v2923_v55 = vld [vmem:[%s3833_s6 + $0x188] sm:$0xf]  ;;  %v3184_v57 = vor.u32 %v3368_v50, %v3181_v51 }
  0xb8   : > { %v3011_v9 = vld [vmem:[%s3833_s6 + $0x240] sm:$0xf]  ;;  %v3327_v14 = vld [vmem:[%s3833_s6 + $0x244] sm:$0xf]  ;;  %v2756_v16 = vor.u32 %v3267_v8, %v2755_v7  ;;  %1400 = vmatpush.bf16.msra.mxu1 %v3044_v5  ;;  %v2760_v20 = vor.u32 %v3263_v12, %v2757_v13  ;;  %1498 = vmatpush.bf16.msra.mxu3 %v3048_v10  ;;  %v3308_v56 = vld [vmem:[%s3833_s6 + $0x1a4] sm:$0xf0] }
  0xb9   : > { %v3331_v11 = vld [vmem:[%s3833_s6 + $0x25c] sm:$0xf0]  ;;  %v3013_v15 = vld [vmem:[%s3833_s6 + $0x260] sm:$0xf0]  ;;  %v3179_v58 = vld [vmem:[%s3833_s6 + $0x388] sm:$0xf]  ;;  %v2924_v60 = vor.u32 %v3308_v56, %v2923_v55 }
  0xba   : > { %v2723_v17 = vld [vmem:[%s3833_s6] sm:$0xf]  ;;  %v3012_v19 = vor.u32 %v3331_v11, %v3011_v9  ;;  %v3255_v23 = vld [vmem:[%s3833_s6 + $0x4] sm:$0xf]  ;;  %v3016_v24 = vor.u32 %v3327_v14, %v3013_v15  ;;  %1352 = vmatpush.bf16.msra.mxu0 %v2756_v16  ;;  %1450 = vmatpush.bf16.msra.mxu2 %v2760_v20  ;;  %v3372_v59 = vld [vmem:[%s3833_s6 + $0x3a4] sm:$0xf0] }
  0xbb   : > { %v3259_v18 = vld [vmem:[%s3833_s6 + $0x1c] sm:$0xf0]  ;;  %v2725_v25 = vld [vmem:[%s3833_s6 + $0x20] sm:$0xf0]  ;;  %v3296_v61 = vld [vmem:[%s3833_s6 + $0x14c] sm:$0xf]  ;;  %v3180_v0 = vor.u32 %v3372_v59, %v3179_v58 }
  0xbc   : > { %v2979_v21 = vld [vmem:[%s3833_s6 + $0x200] sm:$0xf]  ;;  %v3319_v26 = vld [vmem:[%s3833_s6 + $0x204] sm:$0xf]  ;;  %v2724_v31 = vor.u32 %v3259_v18, %v2723_v17  ;;  %1401 = vmatpush.bf16.msra.mxu1 %v3012_v19  ;;  %v2728_v36 = vor.u32 %v3255_v23, %v2725_v25  ;;  %1499 = vmatpush.bf16.msra.mxu3 %v3016_v24  ;;  %v2893_v62 = vld [vmem:[%s3833_s6 + $0x168] sm:$0xf0] }
  0xbd   : > { %v3323_v22 = vld [vmem:[%s3833_s6 + $0x21c] sm:$0xf0]  ;;  %v2981_v27 = vld [vmem:[%s3833_s6 + $0x220] sm:$0xf0]  ;;  %v3360_v63 = vld [vmem:[%s3833_s6 + $0x34c] sm:$0xf]  ;;  %v2896_v1 = vor.u32 %v3296_v61, %v2893_v62 }
  0xbe   : > { %v2659_v28 = vld [vmem:[%s4637_s0] sm:$0xf]  ;;  %v2980_v35 = vor.u32 %v3323_v22, %v2979_v21  ;;  %v3239_v37 = vld [vmem:[%s4637_s0 + $0x4] sm:$0xf]  ;;  %v2984_v39 = vor.u32 %v3319_v26, %v2981_v27  ;;  %1353 = vmatpush.bf16.msra.mxu0 %v2724_v31  ;;  %1451 = vmatpush.bf16.msra.mxu2 %v2728_v36  ;;  %v3149_v2 = vld [vmem:[%s3833_s6 + $0x368] sm:$0xf0] }
  0xbf   : > { %v3918_v44 = vor.u32 %v3240_v32, %v2659_v28  ;;  %v3923_v49 = vor.u32 %v3239_v37, %v2661_v38  ;;  %v2891_v3 = vld [vmem:[%s3833_s6 + $0x148] sm:$0xf]  ;;  %v3152_v5 = vor.u32 %v3360_v63, %v3149_v2  ;;  %v2667_v10 = vld [vmem:[%s4637_s0 + $0x10] sm:$0xf]  ;;  %v3242_v11 = vld [vmem:[%s4637_s0 + $0x14] sm:$0xf0] }
  0xc0   : > { %1402 = vmatpush.bf16.msra.mxu1 %v2980_v35  ;;  %1500 = vmatpush.bf16.msra.mxu3 %v2984_v39  ;;  %v3300_v4 = vld [vmem:[%s3833_s6 + $0x164] sm:$0xf0]  ;;  %v3241_v12 = vld [vmem:[%s4637_s0 + $0x14] sm:$0xf]  ;;  %v2669_v13 = vld [vmem:[%s4637_s0 + $0x18] sm:$0xf0]  ;;  %v3955_v14 = vor.u32 %v3242_v11, %v2667_v10 }
  0xc1   : > { %1354 = vmatmul.bf16.vlgmr.msra.gmra.mxu0 %v3918_v44  ;;  %1452 = vmatmul.bf16.vlgmr.msra.gmra.mxu2 %v3918_v44  ;;  %v3147_v6 = vld [vmem:[%s3833_s6 + $0x348] sm:$0xf]  ;;  %v2892_v8 = vor.u32 %v3300_v4, %v2891_v3  ;;  %v3957_v15 = vor.u32 %v3241_v12, %v2669_v13  ;;  %v3288_v16 = vld [vmem:[%s3833_s6 + $0x10c] sm:$0xf]  ;;  %v2675_v28 = vld [vmem:[%s4637_s0 + $0x20] sm:$0xf] }
  0xc2   : > { %1640 = vmatpush.bf16.msrb.mxu2 %v2960_v40  ;;  %1542 = vmatpush.bf16.msrb.mxu0 %v2956_v52  ;;  %v3364_v7 = vld [vmem:[%s3833_s6 + $0x364] sm:$0xf0]  ;;  %v2861_v17 = vld [vmem:[%s3833_s6 + $0x128] sm:$0xf0]  ;;  %v3243_v30 = vld [vmem:[%s4637_s0 + $0x24] sm:$0xf] }
  0xc3   : > { %1403 = vmatmul.bf16.vlgmr.msra.gmra.mxu1 %v3923_v49  ;;  %1501 = vmatmul.bf16.vlgmr.msra.gmra.mxu3 %v3923_v49  ;;  %v3148_v9 = vor.u32 %v3364_v7, %v3147_v6  ;;  %v3352_v18 = vld [vmem:[%s3833_s6 + $0x30c] sm:$0xf]  ;;  %v2864_v19 = vor.u32 %v3288_v16, %v2861_v17  ;;  %v2859_v21 = vld [vmem:[%s3833_s6 + $0x108] sm:$0xf]  ;;  %v2683_v47 = vld [vmem:[%s4637_s0 + $0x30] sm:$0xf] }
  0xc4   : > { %1689 = vmatpush.bf16.msrb.mxu3 %v3216_v45  ;;  %1591 = vmatpush.bf16.msrb.mxu1 %v3212_v53  ;;  %v3117_v20 = vld [vmem:[%s3833_s6 + $0x328] sm:$0xf0]  ;;  %v3292_v22 = vld [vmem:[%s3833_s6 + $0x124] sm:$0xf0]  ;;  %v3246_v48 = vld [vmem:[%s4637_s0 + $0x34] sm:$0xf0] }
  0xc5   : > { %v3120_v23 = vor.u32 %v3352_v18, %v3117_v20  ;;  %v2860_v24 = vor.u32 %v3292_v22, %v2859_v21  ;;  %v3115_v25 = vld [vmem:[%s3833_s6 + $0x308] sm:$0xf]  ;;  %v2677_v31 = vld [vmem:[%s4637_s0 + $0x28] sm:$0xf0]  ;;  %v3245_v50 = vld [vmem:[%s4637_s0 + $0x34] sm:$0xf]  ;;  %v4011_v52 = vor.u32 %v3246_v48, %v2683_v47 }
  0xc6   : > { %1641 = vmatpush.bf16.msrb.mxu2 %v2928_v54  ;;  %1543 = vmatpush.bf16.msrb.mxu0 %v2924_v60  ;;  %v3356_v26 = vld [vmem:[%s3833_s6 + $0x324] sm:$0xf0]  ;;  %v3985_v33 = vor.u32 %v3243_v30, %v2677_v31  ;;  %v3280_v34 = vld [vmem:[%s3833_s6 + $0xcc] sm:$0xf]  ;;  %v2685_v51 = vld [vmem:[%s4637_s0 + $0x38] sm:$0xf0] }
  0xc7   : > { %v3116_v27 = vor.u32 %v3356_v26, %v3115_v25  ;;  %v3244_v29 = vld [vmem:[%s4637_s0 + $0x24] sm:$0xf0]  ;;  %v2829_v35 = vld [vmem:[%s3833_s6 + $0xe8] sm:$0xf0]  ;;  %v4013_v53 = vor.u32 %v3245_v50, %v2685_v51  ;;  %v2691_v2 = vld [vmem:[%s4637_s0 + $0x40] sm:$0xf] }
  0xc8   : > { %1690 = vmatpush.bf16.msrb.mxu3 %v3184_v57  ;;  %1592 = vmatpush.bf16.msrb.mxu1 %v3180_v0  ;;  %v3983_v32 = vor.u32 %v3244_v29, %v2675_v28  ;;  %v3344_v36 = vld [vmem:[%s3833_s6 + $0x2cc] sm:$0xf]  ;;  %v2832_v37 = vor.u32 %v3280_v34, %v2829_v35  ;;  %v2827_v39 = vld [vmem:[%s3833_s6 + $0xc8] sm:$0xf]  ;;  %v3247_v4 = vld [vmem:[%s4637_s0 + $0x44] sm:$0xf] }
  0xc9   : > { %v3085_v38 = vld [vmem:[%s3833_s6 + $0x2e8] sm:$0xf0]  ;;  %v3284_v40 = vld [vmem:[%s3833_s6 + $0xe4] sm:$0xf0]  ;;  %v2699_v22 = vld [vmem:[%s4637_s0 + $0x50] sm:$0xf] }
  0xca   : > { %1642 = vmatpush.bf16.msrb.mxu2 %v2896_v1  ;;  %1544 = vmatpush.bf16.msrb.mxu0 %v2892_v8  ;;  %v3088_v41 = vor.u32 %v3344_v36, %v3085_v38  ;;  %v2828_v42 = vor.u32 %v3284_v40, %v2827_v39  ;;  %v3083_v43 = vld [vmem:[%s3833_s6 + $0x2c8] sm:$0xf]  ;;  %v3272_v54 = vld [vmem:[%s3833_s6 + $0x8c] sm:$0xf]  ;;  %v2701_v25 = vld [vmem:[%s4637_s0 + $0x58] sm:$0xf0] }
  0xcb   : > { %v3348_v45 = vld [vmem:[%s3833_s6 + $0x2e4] sm:$0xf0]  ;;  %v2797_v55 = vld [vmem:[%s3833_s6 + $0xa8] sm:$0xf0]  ;;  %v3313_v50 = vld [vmem:[%s3833_s6 + $0x1d4] sm:$0xf] }
  0xcc   : > { %1691 = vmatpush.bf16.msrb.mxu3 %v3152_v5  ;;  %1593 = vmatpush.bf16.msrb.mxu1 %v3148_v9  ;;  %v3084_v46 = vor.u32 %v3348_v45, %v3083_v43  ;;  %v3336_v56 = vld [vmem:[%s3833_s6 + $0x28c] sm:$0xf]  ;;  %v2800_v57 = vor.u32 %v3272_v54, %v2797_v55  ;;  %v2795_v59 = vld [vmem:[%s3833_s6 + $0x88] sm:$0xf]  ;;  %v3251_v45 = vld [vmem:[%s4637_s0 + $0x64] sm:$0xf] }
  0xcd   : > { %v3053_v58 = vld [vmem:[%s3833_s6 + $0x2a8] sm:$0xf0]  ;;  %v3276_v60 = vld [vmem:[%s3833_s6 + $0xa4] sm:$0xf0]  ;;  %v2965_v51 = vld [vmem:[%s3833_s6 + $0x1f0] sm:$0xf0] }
  0xce   : > { %1643 = vmatpush.bf16.msrb.mxu2 %v2864_v19  ;;  %1545 = vmatpush.bf16.msrb.mxu0 %v2860_v24  ;;  %v3056_v61 = vor.u32 %v3336_v56, %v3053_v58  ;;  %v2796_v62 = vor.u32 %v3276_v60, %v2795_v59  ;;  %v3051_v63 = vld [vmem:[%s3833_s6 + $0x288] sm:$0xf]  ;;  %v2693_v5 = vld [vmem:[%s4637_s0 + $0x48] sm:$0xf0]  ;;  %v3249_v24 = vld [vmem:[%s4637_s0 + $0x54] sm:$0xf]  ;;  %v2968_v55 = vor.u32 %v3313_v50, %v2965_v51 }
  0xcf   : > { %v3340_v0 = vld [vmem:[%s3833_s6 + $0x2a4] sm:$0xf0]  ;;  %v4041_v7 = vor.u32 %v3247_v4, %v2693_v5  ;;  %v3264_v8 = vld [vmem:[%s3833_s6 + $0x4c] sm:$0xf]  ;;  %v3377_v54 = vld [vmem:[%s3833_s6 + $0x3d4] sm:$0xf] }
  0xd0   : > { %1692 = vmatpush.bf16.msrb.mxu3 %v3120_v23  ;;  %1594 = vmatpush.bf16.msrb.mxu1 %v3116_v27  ;;  %v3052_v1 = vor.u32 %v3340_v0, %v3051_v63  ;;  %v3248_v3 = vld [vmem:[%s4637_s0 + $0x44] sm:$0xf0]  ;;  %v2765_v9 = vld [vmem:[%s3833_s6 + $0x68] sm:$0xf0]  ;;  %v3250_v23 = vld [vmem:[%s4637_s0 + $0x54] sm:$0xf0]  ;;  %v4069_v27 = vor.u32 %v3249_v24, %v2701_v25 }
  0xd1   : > { %1359 = vmatmul.bf16.gmra.mxu0 %v3955_v14  ;;  %1457 = vmatmul.bf16.gmra.mxu2 %v3955_v14  ;;  %v4039_v6 = vor.u32 %v3248_v3, %v2691_v2  ;;  %v3328_v10 = vld [vmem:[%s3833_s6 + $0x24c] sm:$0xf]  ;;  %v2768_v11 = vor.u32 %v3264_v8, %v2765_v9  ;;  %v2763_v13 = vld [vmem:[%s3833_s6 + $0x48] sm:$0xf]  ;;  %v4067_v26 = vor.u32 %v3250_v23, %v2699_v22  ;;  %v3221_v56 = vld [vmem:[%s3833_s6 + $0x3f0] sm:$0xf0] }
  0xd2   : > { %1644 = vmatpush.bf16.msrb.mxu2 %v2832_v37  ;;  %1546 = vmatpush.bf16.msrb.mxu0 %v2828_v42  ;;  %v3021_v12 = vld [vmem:[%s3833_s6 + $0x268] sm:$0xf0]  ;;  %v3268_v16 = vld [vmem:[%s3833_s6 + $0x64] sm:$0xf0]  ;;  %v2707_v42 = vld [vmem:[%s4637_s0 + $0x60] sm:$0xf] }
  0xd3   : > { %1408 = vmatmul.bf16.gmra.mxu1 %v3957_v15  ;;  %1506 = vmatmul.bf16.gmra.mxu3 %v3957_v15  ;;  %v3024_v17 = vor.u32 %v3328_v10, %v3021_v12  ;;  %v2764_v18 = vor.u32 %v3268_v16, %v2763_v13  ;;  %v3019_v19 = vld [vmem:[%s3833_s6 + $0x248] sm:$0xf]  ;;  %v3256_v28 = vld [vmem:[%s3833_s6 + $0xc] sm:$0xf]  ;;  %v2715_v58 = vld [vmem:[%s4637_s0 + $0x70] sm:$0xf] }
  0xd4   : > { %1693 = vmatpush.bf16.msrb.mxu3 %v3088_v41  ;;  %1595 = vmatpush.bf16.msrb.mxu1 %v3084_v46  ;;  %v3332_v20 = vld [vmem:[%s3833_s6 + $0x264] sm:$0xf0]  ;;  %v2733_v29 = vld [vmem:[%s3833_s6 + $0x28] sm:$0xf0]  ;;  %v3254_v59 = vld [vmem:[%s4637_s0 + $0x74] sm:$0xf0] }
  0xd5   : > { %v3020_v21 = vor.u32 %v3332_v20, %v3019_v19  ;;  %v3320_v30 = vld [vmem:[%s3833_s6 + $0x20c] sm:$0xf]  ;;  %v2736_v31 = vor.u32 %v3256_v28, %v2733_v29  ;;  %v2731_v35 = vld [vmem:[%s3833_s6 + $0x8] sm:$0xf]  ;;  %v3253_v60 = vld [vmem:[%s4637_s0 + $0x74] sm:$0xf] }
  0xd6   : > { %1645 = vmatpush.bf16.msrb.mxu2 %v2800_v57  ;;  %1547 = vmatpush.bf16.msrb.mxu0 %v2796_v62  ;;  %v2989_v34 = vld [vmem:[%s3833_s6 + $0x228] sm:$0xf0]  ;;  %v3260_v36 = vld [vmem:[%s3833_s6 + $0x24] sm:$0xf0]  ;;  %v3224_v57 = vor.u32 %v3377_v54, %v3221_v56  ;;  %v4120_v62 = vor.u32 %v3254_v59, %v2715_v58  ;;  %v2963_v63 = vld [vmem:[%s3833_s6 + $0x1d0] sm:$0xf] }
  0xd7   : > { %v2992_v37 = vor.u32 %v3320_v30, %v2989_v34  ;;  %v2732_v38 = vor.u32 %v3260_v36, %v2731_v35  ;;  %v2987_v39 = vld [vmem:[%s3833_s6 + $0x208] sm:$0xf]  ;;  %v2709_v46 = vld [vmem:[%s4637_s0 + $0x68] sm:$0xf0]  ;;  %v3317_v0 = vld [vmem:[%s3833_s6 + $0x1ec] sm:$0xf0] }
  0xd8   : > { %1694 = vmatpush.bf16.msrb.mxu3 %v3056_v61  ;;  %1596 = vmatpush.bf16.msrb.mxu1 %v3052_v1  ;;  %v3324_v40 = vld [vmem:[%s3833_s6 + $0x224] sm:$0xf0]  ;;  %v4097_v48 = vor.u32 %v3251_v45, %v2709_v46  ;;  %v2717_v61 = vld [vmem:[%s4637_s0 + $0x78] sm:$0xf0]  ;;  %v3219_v1 = vld [vmem:[%s3833_s6 + $0x3d0] sm:$0xf]  ;;  %v2964_v3 = vor.u32 %v3317_v0, %v2963_v63 }
  0xd9   : > { %v2988_v41 = vor.u32 %v3324_v40, %v2987_v39  ;;  %v3252_v43 = vld [vmem:[%s4637_s0 + $0x64] sm:$0xf0]  ;;  %v4125_v2 = vor.u32 %v3253_v60, %v2717_v61  ;;  %v3381_v4 = vld [vmem:[%s3833_s6 + $0x3ec] sm:$0xf0]  ;;  %v3305_v8 = vld [vmem:[%s3833_s6 + $0x194] sm:$0xf] }
  0xda   : > { %1646 = vmatpush.bf16.msrb.mxu2 %v2768_v11  ;;  %1548 = vmatpush.bf16.msrb.mxu0 %v2764_v18  ;;  %v4095_v47 = vor.u32 %v3252_v43, %v2707_v42  ;;  %v3220_v5 = vor.u32 %v3381_v4, %v3219_v1  ;;  %v2933_v9 = vld [vmem:[%s3833_s6 + $0x1b0] sm:$0xf0]  ;;  %v4142_v16 = vld [vmem:[%s4135_s10] sm:$0xff]  ;;  %v2931_v18 = vld [vmem:[%s3833_s6 + $0x190] sm:$0xf] }
  0xdb   : > { %v3369_v10 = vld [vmem:[%s3833_s6 + $0x394] sm:$0xf]  ;;  %v2936_v11 = vor.u32 %v3305_v8, %v2933_v9  ;;  %v3309_v19 = vld [vmem:[%s3833_s6 + $0x1ac] sm:$0xf0]  ;;  %v4156_v30 = vperm.slane %v4142_v16, 1 }
  0xdc   : > { %1695 = vmatpush.bf16.msrb.mxu3 %v3024_v17  ;;  %1597 = vmatpush.bf16.msrb.mxu1 %v3020_v21  ;;  %v3189_v12 = vld [vmem:[%s3833_s6 + $0x3b0] sm:$0xf0]  ;;  %v4145_v17 = vperm.slane %v4142_v16, 0  ;;  %v3187_v20 = vld [vmem:[%s3833_s6 + $0x390] sm:$0xf]  ;;  %v2932_v22 = vor.u32 %v3309_v19, %v2931_v18 }
  0xdd   : > { %v3192_v13 = vor.u32 %v3369_v10, %v3189_v12  ;;  %v3373_v23 = vld [vmem:[%s3833_s6 + $0x3ac] sm:$0xf0]  ;;  %v3297_v34 = vld [vmem:[%s3833_s6 + $0x154] sm:$0xf] }
  0xde   : > { %1647 = vmatpush.bf16.msrb.mxu2 %v2736_v31  ;;  %1549 = vmatpush.bf16.msrb.mxu0 %v2732_v38  ;;  %v3188_v28 = vor.u32 %v3373_v23, %v3187_v20  ;;  %v2901_v35 = vld [vmem:[%s3833_s6 + $0x170] sm:$0xf0]  ;;  %v3301_v58 = vld [vmem:[%s3833_s6 + $0x16c] sm:$0xf0] }
  0xdf   : > { %v3361_v36 = vld [vmem:[%s3833_s6 + $0x354] sm:$0xf]  ;;  %v2904_v40 = vor.u32 %v3297_v34, %v2901_v35  ;;  %v3155_v59 = vld [vmem:[%s3833_s6 + $0x350] sm:$0xf] }
  0xe0   : > { %1696 = vmatpush.bf16.msrb.mxu3 %v2992_v37  ;;  %1598 = vmatpush.bf16.msrb.mxu1 %v2988_v41  ;;  %v3157_v41 = vld [vmem:[%s3833_s6 + $0x370] sm:$0xf0]  ;;  %v3365_v1 = vld [vmem:[%s3833_s6 + $0x36c] sm:$0xf0] }
  0xe1   : > { %1364 = vmatmul.bf16.gmra.mxu0 %v3983_v32  ;;  %1462 = vmatmul.bf16.gmra.mxu2 %v3983_v32  ;;  %v3160_v45 = vor.u32 %v3361_v36, %v3157_v41  ;;  %v3289_v20 = vld [vmem:[%s3833_s6 + $0x114] sm:$0xf] }
  0xe2   : > { %1836 = vmatpush.bf16.msra.mxu2 %v2968_v55  ;;  %1738 = vmatpush.bf16.msra.mxu0 %v2964_v3 }
  0xe3   : > { %1413 = vmatmul.bf16.gmra.mxu1 %v3985_v33  ;;  %1511 = vmatmul.bf16.gmra.mxu3 %v3985_v33 }
  0xe4   : > { %1885 = vmatpush.bf16.msra.mxu3 %v3224_v57  ;;  %1787 = vmatpush.bf16.msra.mxu1 %v3220_v5  ;;  %v2899_v57 = vld [vmem:[%s3833_s6 + $0x150] sm:$0xf]  ;;  %v3156_v5 = vor.u32 %v3365_v1, %v3155_v59 }
  0xe5   : > { %v2900_v0 = vor.u32 %v3301_v58, %v2899_v57 }
  0xe6   : > { %1837 = vmatpush.bf16.msra.mxu2 %v2936_v11  ;;  %1739 = vmatpush.bf16.msra.mxu0 %v2932_v22  ;;  %v3353_v22 = vld [vmem:[%s3833_s6 + $0x314] sm:$0xf] }
  0xe8   : > { %1886 = vmatpush.bf16.msra.mxu3 %v3192_v13  ;;  %1788 = vmatpush.bf16.msra.mxu1 %v3188_v28 }
  0xea   : > { %1838 = vmatpush.bf16.msra.mxu2 %v2904_v40  ;;  %1740 = vmatpush.bf16.msra.mxu0 %v2900_v0 }
  0xec   : > { %1887 = vmatpush.bf16.msra.mxu3 %v3160_v45  ;;  %1789 = vmatpush.bf16.msra.mxu1 %v3156_v5 }
  0xf1   : > { %1369 = vmatmul.bf16.gmra.mxu0 %v4011_v52  ;;  %1467 = vmatmul.bf16.gmra.mxu2 %v4011_v52 }
  0xf3   : > { %1418 = vmatmul.bf16.gmra.mxu1 %v4013_v53  ;;  %1516 = vmatmul.bf16.gmra.mxu3 %v4013_v53 }
 0x101   : > { %1374 = vmatmul.bf16.gmra.mxu0 %v4039_v6  ;;  %1472 = vmatmul.bf16.gmra.mxu2 %v4039_v6 }
 0x103   : > { %1423 = vmatmul.bf16.gmra.mxu1 %v4041_v7  ;;  %1521 = vmatmul.bf16.gmra.mxu3 %v4041_v7 }
 0x111   : > { %1379 = vmatmul.bf16.gmra.mxu0 %v4067_v26  ;;  %1477 = vmatmul.bf16.gmra.mxu2 %v4067_v26 }
 0x113   : > { %1428 = vmatmul.bf16.gmra.mxu1 %v4069_v27  ;;  %1526 = vmatmul.bf16.gmra.mxu3 %v4069_v27 }
 0x121   : > { %1384 = vmatmul.bf16.gmra.mxu0 %v4095_v47  ;;  %1482 = vmatmul.bf16.gmra.mxu2 %v4095_v47 }
 0x123   : > { %1433 = vmatmul.bf16.gmra.mxu1 %v4097_v48  ;;  %1531 = vmatmul.bf16.gmra.mxu3 %v4097_v48 }
 0x131   : > { %1389 = vmatmul.bf16.gmra.mxu0 %v4120_v62  ;;  %1487 = vmatmul.bf16.gmra.mxu2 %v4120_v62 }
 0x133   : > { %1438 = vmatmul.bf16.gmra.mxu1 %v4125_v2  ;;  %1536 = vmatmul.bf16.gmra.mxu3 %v4125_v2 }
 0x13e   : > { %v1355_v21 = vpop.f32.mrf.mxu0 }
 0x13f   : > { %v1356_v24 = vadd.f32 %v1355_v21, %v4145_v17  ;;  %v2869_v21 = vld [vmem:[%s3833_s6 + $0x130] sm:$0xf0] }
 0x140   : > { %v1404_v25 = vpop.f32.mrf.mxu1  ;;  %v2872_v28 = vor.u32 %v3289_v20, %v2869_v21 }
 0x141   : > { %v1405_v29 = vadd.f32 %v1404_v25, %v1356_v24  ;;  %1550 = vmatmul.bf16.vlgmr.msrb.gmra.mxu0 %v3918_v44  ;;  %1648 = vmatmul.bf16.vlgmr.msrb.gmra.mxu2 %v3918_v44 }
 0x142   : > { %1839 = vmatpush.bf16.msra.mxu2 %v2872_v28 }
 0x143   : > { %1599 = vmatmul.bf16.vlgmr.msrb.gmra.mxu1 %v3923_v49  ;;  %1697 = vmatmul.bf16.vlgmr.msrb.gmra.mxu3 %v3923_v49  ;;  %v2130_v51 = vmax.f32 %v1405_v29, 0.0  ;;  %v3125_v29 = vld [vmem:[%s3833_s6 + $0x330] sm:$0xf0] }
 0x144   : > { %v1453_v31 = vpop.f32.mrf.mxu2  ;;  %v3128_v35 = vor.u32 %v3353_v22, %v3125_v29 }
 0x145   : > { %v1454_v37 = vadd.f32 %v1453_v31, %v4156_v30 }
 0x146   : > { %v1502_v38 = vpop.f32.mrf.mxu3  ;;  %v1357_v39 = vpop.f32.mrf.mxu0  ;;  %1888 = vmatpush.bf16.msra.mxu3 %v3128_v35 }
 0x147   : > { %v1358_v42 = vadd.f32 %v1357_v39, %v4145_v17  ;;  %v1503_v46 = vadd.f32 %v1502_v38, %v1454_v37 }
 0x148   : > { %v1406_v43 = vpop.f32.mrf.mxu1 }
 0x149   : > { %v1407_v50 = vadd.f32 %v1406_v43, %v1358_v42  ;;  %v2131_v10 = vmax.f32 %v1503_v46, 0.0 }
 0x14b   : > { %v2138_v54 = vmax.f32 %v1407_v50, 0.0 }
 0x14c   : > { %v1455_v56 = vpop.f32.mrf.mxu2 }
 0x14d   : > { %v2258_v55 = vadd.f32 %v2138_v54, %v2130_v51  ;;  %v1456_v60 = vadd.f32 %v1455_v56, %v4156_v30 }
 0x14e   : > { %v1504_v61 = vpop.f32.mrf.mxu3  ;;  %v1360_v63 = vpop.f32.mrf.mxu0 }
 0x14f   : > { %v1361_v3 = vadd.f32 %v1360_v63, %v4145_v17  ;;  %v1505_v8 = vadd.f32 %v1504_v61, %v1456_v60 }
 0x150   : > { %v1409_v4 = vpop.f32.mrf.mxu1 }
 0x151   : > { %v1410_v9 = vadd.f32 %v1409_v4, %v1361_v3  ;;  %1555 = vmatmul.bf16.gmra.mxu0 %v3955_v14  ;;  %v2139_v11 = vmax.f32 %v1505_v8, 0.0  ;;  %1653 = vmatmul.bf16.gmra.mxu2 %v3955_v14 }
 0x153   : > { %1604 = vmatmul.bf16.gmra.mxu1 %v3957_v15  ;;  %v2146_v12 = vmax.f32 %v1410_v9, 0.0  ;;  %1702 = vmatmul.bf16.gmra.mxu3 %v3957_v15  ;;  %v2271_v13 = vadd.f32 %v2139_v11, %v2131_v10  ;;  %v2867_v10 = vld [vmem:[%s3833_s6 + $0x110] sm:$0xf] }
 0x154   : > { %v1458_v19 = vpop.f32.mrf.mxu2  ;;  %v3293_v11 = vld [vmem:[%s3833_s6 + $0x12c] sm:$0xf0] }
 0x155   : > { %v2259_v18 = vadd.f32 %v2258_v55, %v2146_v12  ;;  %v1459_v23 = vadd.f32 %v1458_v19, %v4156_v30  ;;  %v3357_v19 = vld [vmem:[%s3833_s6 + $0x32c] sm:$0xf0] }
 0x156   : > { %v1507_v24 = vpop.f32.mrf.mxu3  ;;  %v1362_v25 = vpop.f32.mrf.mxu0 }
 0x157   : > { %v1363_v31 = vadd.f32 %v1362_v25, %v4145_v17  ;;  %v1508_v36 = vadd.f32 %v1507_v24, %v1459_v23 }
 0x158   : > { %v1411_v34 = vpop.f32.mrf.mxu1 }
 0x159   : > { %v1412_v37 = vadd.f32 %v1411_v34, %v1363_v31  ;;  %v2147_v38 = vmax.f32 %v1508_v36, 0.0 }
 0x15b   : > { %v2154_v39 = vmax.f32 %v1412_v37, 0.0  ;;  %v2272_v40 = vadd.f32 %v2271_v13, %v2147_v38  ;;  %v2868_v13 = vor.u32 %v3293_v11, %v2867_v10 }
 0x15c   : > { %v1460_v42 = vpop.f32.mrf.mxu2 }
 0x15d   : > { %v2260_v41 = vadd.f32 %v2259_v18, %v2154_v39  ;;  %v1461_v43 = vadd.f32 %v1460_v42, %v4156_v30  ;;  %v3123_v18 = vld [vmem:[%s3833_s6 + $0x310] sm:$0xf]  ;;  %1741 = vmatpush.bf16.msra.mxu0 %v2868_v13 }
 0x15e   : > { %v1509_v45 = vpop.f32.mrf.mxu3  ;;  %v1365_v46 = vpop.f32.mrf.mxu0  ;;  %v3124_v22 = vor.u32 %v3357_v19, %v3123_v18 }
 0x15f   : > { %v1366_v50 = vadd.f32 %v1365_v46, %v4145_v17  ;;  %v1510_v54 = vadd.f32 %v1509_v45, %v1461_v43  ;;  %v3281_v43 = vld [vmem:[%s3833_s6 + $0xd4] sm:$0xf] }
 0x160   : > { %v1414_v51 = vpop.f32.mrf.mxu1  ;;  %1790 = vmatpush.bf16.msra.mxu1 %v3124_v22  ;;  %v2837_v45 = vld [vmem:[%s3833_s6 + $0xf0] sm:$0xf0]  ;;  %v2803_v22 = vld [vmem:[%s3833_s6 + $0x90] sm:$0xf] }
 0x161   : > { %v1415_v55 = vadd.f32 %v1414_v51, %v1366_v50  ;;  %1560 = vmatmul.bf16.gmra.mxu0 %v3983_v32  ;;  %v2155_v56 = vmax.f32 %v1510_v54, 0.0  ;;  %1658 = vmatmul.bf16.gmra.mxu2 %v3983_v32  ;;  %v3345_v46 = vld [vmem:[%s3833_s6 + $0x2d4] sm:$0xf]  ;;  %v3491_v54 = vmov 64.0  }
 0x162   : > { %3424 = vrcp.f32 %v3491_v54  ;;  %v3265_v54 = vld [vmem:[%s3833_s6 + $0x54] sm:$0xf] }
 0x163   : > { %1609 = vmatmul.bf16.gmra.mxu1 %v3985_v33  ;;  %v2162_v57 = vmax.f32 %v1415_v55, 0.0  ;;  %1707 = vmatmul.bf16.gmra.mxu3 %v3985_v33  ;;  %v2273_v58 = vadd.f32 %v2272_v40, %v2155_v56  ;;  %v2840_v55 = vor.u32 %v3281_v43, %v2837_v45  ;;  %v3093_v56 = vld [vmem:[%s3833_s6 + $0x2f0] sm:$0xf0] }
 0x164   : > { %v1463_v60 = vpop.f32.mrf.mxu2 }
 0x165   : > { %v2261_v59 = vadd.f32 %v2260_v41, %v2162_v57  ;;  %v1464_v61 = vadd.f32 %v1463_v60, %v4156_v30  ;;  %v2835_v57 = vld [vmem:[%s3833_s6 + $0xd0] sm:$0xf]  ;;  %v3096_v60 = vor.u32 %v3345_v46, %v3093_v56  ;;  %1840 = vmatpush.bf16.msra.mxu2 %v2840_v55  ;;  %v2773_v55 = vld [vmem:[%s3833_s6 + $0x70] sm:$0xf0] }
 0x166   : > { %v1512_v63 = vpop.f32.mrf.mxu3  ;;  %v1367_v0 = vpop.f32.mrf.mxu0  ;;  %v3329_v56 = vld [vmem:[%s3833_s6 + $0x254] sm:$0xf] }
 0x167   : > { %v1368_v1 = vadd.f32 %v1367_v0, %v4145_v17  ;;  %v1513_v4 = vadd.f32 %v1512_v63, %v1464_v61  ;;  %v3091_v63 = vld [vmem:[%s3833_s6 + $0x2d0] sm:$0xf]  ;;  %1889 = vmatpush.bf16.msra.mxu3 %v3096_v60 }
 0x168   : > { %v1416_v3 = vpop.f32.mrf.mxu1  ;;  %v3349_v0 = vld [vmem:[%s3833_s6 + $0x2ec] sm:$0xf0]  ;;  %v4213_v19 = vpop.eup %3424 }
 0x169   : > { %v1417_v5 = vadd.f32 %v1416_v3, %v1368_v1  ;;  %v2163_v8 = vmax.f32 %v1513_v4, 0.0  ;;  %v3273_v1 = vld [vmem:[%s3833_s6 + $0x94] sm:$0xf]  ;;  %v3092_v4 = vor.u32 %v3349_v0, %v3091_v63  ;;  %vm2471_vm0 = vweird.f32 %v4213_v19 }
 0x16a   : > { %v3029_v63 = vld [vmem:[%s3833_s6 + $0x270] sm:$0xf0] }
 0x16b   : > { %v2170_v9 = vmax.f32 %v1417_v5, 0.0  ;;  %v2274_v12 = vadd.f32 %v2273_v58, %v2163_v8  ;;  %v3285_v58 = vld [vmem:[%s3833_s6 + $0xec] sm:$0xf0]  ;;  %v2805_v5 = vld [vmem:[%s3833_s6 + $0xb0] sm:$0xf0]  ;;  %1791 = vmatpush.bf16.msra.mxu1 %v3092_v4 }
 0x16c   : > { %v1465_v21 = vpop.f32.mrf.mxu2  ;;  %v2836_v61 = vor.u32 %v3285_v58, %v2835_v57  ;;  %v3337_v8 = vld [vmem:[%s3833_s6 + $0x294] sm:$0xf]  ;;  %v2808_v11 = vor.u32 %v3273_v1, %v2805_v5 }
 0x16d   : > { %v2262_v20 = vadd.f32 %v2261_v59, %v2170_v9  ;;  %v1466_v23 = vadd.f32 %v1465_v21, %v4156_v30  ;;  %v3061_v9 = vld [vmem:[%s3833_s6 + $0x2b0] sm:$0xf0] }
 0x16e   : > { %v1514_v24 = vpop.f32.mrf.mxu3  ;;  %v1370_v25 = vpop.f32.mrf.mxu0  ;;  %1742 = vmatpush.bf16.msra.mxu0 %v2836_v61  ;;  %1841 = vmatpush.bf16.msra.mxu2 %v2808_v11  ;;  %v2776_v61 = vor.u32 %v3265_v54, %v2773_v55 }
 0x16f   : > { %v1371_v28 = vadd.f32 %v1370_v25, %v4145_v17  ;;  %v1515_v31 = vadd.f32 %v1514_v24, %v1466_v23  ;;  %v3277_v23 = vld [vmem:[%s3833_s6 + $0xac] sm:$0xf0] }
 0x170   : > { %v1419_v29 = vpop.f32.mrf.mxu1  ;;  %v3059_v24 = vld [vmem:[%s3833_s6 + $0x290] sm:$0xf] }
 0x171   : > { %v1420_v34 = vadd.f32 %v1419_v29, %v1371_v28  ;;  %1565 = vmatmul.bf16.gmra.mxu0 %v4011_v52  ;;  %v2171_v35 = vmax.f32 %v1515_v31, 0.0  ;;  %1663 = vmatmul.bf16.gmra.mxu2 %v4011_v52  ;;  %v2804_v31 = vor.u32 %v3277_v23, %v2803_v22 }
 0x172   : > { %1842 = vmatpush.bf16.msra.mxu2 %v2776_v61  ;;  %v2741_v61 = vld [vmem:[%s3833_s6 + $0x30] sm:$0xf0] }
 0x173   : > { %1614 = vmatmul.bf16.gmra.mxu1 %v4013_v53  ;;  %v2178_v36 = vmax.f32 %v1420_v34, 0.0  ;;  %1712 = vmatmul.bf16.gmra.mxu3 %v4013_v53  ;;  %v2275_v37 = vadd.f32 %v2274_v12, %v2171_v35  ;;  %v3064_v12 = vor.u32 %v3337_v8, %v3061_v9  ;;  %v3341_v34 = vld [vmem:[%s3833_s6 + $0x2ac] sm:$0xf0] }
 0x174   : > { %v1468_v39 = vpop.f32.mrf.mxu2  ;;  %1743 = vmatpush.bf16.msra.mxu0 %v2804_v31 }
 0x175   : > { %v2263_v38 = vadd.f32 %v2262_v20, %v2178_v36  ;;  %v1469_v40 = vadd.f32 %v1468_v39, %v4156_v30  ;;  %1890 = vmatpush.bf16.msra.mxu3 %v3064_v12 }
 0x176   : > { %v1517_v41 = vpop.f32.mrf.mxu3  ;;  %v1372_v42 = vpop.f32.mrf.mxu0 }
 0x177   : > { %v1373_v50 = vadd.f32 %v1372_v42, %v4145_v17  ;;  %v1518_v59 = vadd.f32 %v1517_v41, %v1469_v40 }
 0x178   : > { %v1421_v51 = vpop.f32.mrf.mxu1 }
 0x179   : > { %v1422_v3 = vadd.f32 %v1421_v51, %v1373_v50  ;;  %v2179_v10 = vmax.f32 %v1518_v59, 0.0 }
 0x17b   : > { %v2186_v13 = vmax.f32 %v1422_v3, 0.0  ;;  %v2276_v18 = vadd.f32 %v2275_v37, %v2179_v10  ;;  %v3060_v37 = vor.u32 %v3341_v34, %v3059_v24  ;;  %v3032_v3 = vor.u32 %v3329_v56, %v3029_v63  ;;  %v2771_v24 = vld [vmem:[%s3833_s6 + $0x50] sm:$0xf]  ;;  %v3321_v63 = vld [vmem:[%s3833_s6 + $0x214] sm:$0xf] }
 0x17c   : > { %v1470_v21 = vpop.f32.mrf.mxu2 }
 0x17d   : > { %v2264_v20 = vadd.f32 %v2263_v38, %v2186_v13  ;;  %v1471_v25 = vadd.f32 %v1470_v21, %v4156_v30  ;;  %v2467_v38 = vmul.f32 64.0, %v4213_v19  ;;  %1792 = vmatpush.bf16.msra.mxu1 %v3060_v37  ;;  %1891 = vmatpush.bf16.msra.mxu3 %v3032_v3 }
 0x17e   : > { %v1519_v28 = vpop.f32.mrf.mxu3  ;;  %v1375_v29 = vpop.f32.mrf.mxu0 }
 0x17f   : > { %v2265_v35 = vrot.slane %v2264_v20, 4  ;;  %v1376_v36 = vadd.f32 %v1375_v29, %v4145_v17  ;;  %v1520_v40 = vadd.f32 %v1519_v28, %v1471_v25  ;;  %v2468_v46 = vsub.f32 1.0, %v2467_v38  ;;  %v3269_v25 = vld [vmem:[%s3833_s6 + $0x6c] sm:$0xf0] }
 0x180   : > { %v1424_v39 = vpop.f32.mrf.mxu1  ;;  %v3027_v28 = vld [vmem:[%s3833_s6 + $0x250] sm:$0xf] }
 0x181   : > { %v2266_v41 = vadd.f32 %v2265_v35, %v2264_v20  ;;  %v1425_v42 = vadd.f32 %v1424_v39, %v1376_v36  ;;  %1570 = vmatmul.bf16.gmra.mxu0 %v4039_v6  ;;  %v2187_v43 = vmax.f32 %v1520_v40, 0.0  ;;  %1668 = vmatmul.bf16.gmra.mxu2 %v4039_v6  ;;  %v2469_v9 = vmul.f32 %v4213_v19, %v2468_v46  ;;  %v3333_v39 = vld [vmem:[%s3833_s6 + $0x26c] sm:$0xf0] }
 0x182   : > { %v2772_v36 = vor.u32 %v3269_v25, %v2771_v24  ;;  %v3028_v40 = vor.u32 %v3333_v39, %v3027_v28  ;;  %v2739_v24 = vld [vmem:[%s3833_s6 + $0x10] sm:$0xf] }
 0x183   : > { %1619 = vmatmul.bf16.gmra.mxu1 %v4041_v7  ;;  %1717 = vmatmul.bf16.gmra.mxu3 %v4041_v7  ;;  %v2267_v45 = vrot.slane %v2266_v41, 2  ;;  %v2277_v50 = vadd.f32 %v2276_v18, %v2187_v43  ;;  %v2194_v12 = vmax.f32 %v1425_v42, 0.0  ;;  %v2470_v21 = vadd.f32 %v4213_v19, %v2469_v9  ;;  %v3261_v25 = vld [vmem:[%s3833_s6 + $0x2c] sm:$0xf0] }
 0x184   : > { %v1473_v51 = vpop.f32.mrf.mxu2  ;;  %1744 = vmatpush.bf16.msra.mxu0 %v2772_v36  ;;  %1793 = vmatpush.bf16.msra.mxu1 %v3028_v40  ;;  %v2995_v28 = vld [vmem:[%s3833_s6 + $0x210] sm:$0xf] }
 0x185   : > { %v2278_v57 = vrot.slane %v2277_v50, 4  ;;  %v1474_v58 = vadd.f32 %v1473_v51, %v4156_v30  ;;  %v2268_v4 = vadd.f32 %v2267_v45, %v2266_v41  ;;  %v4242_v45 = vsel %vm2471_vm0, %v4213_v19, %v2470_v21  ;;  %v3325_v36 = vld [vmem:[%s3833_s6 + $0x22c] sm:$0xf0] }
 0x186   : > { %v1522_v59 = vpop.f32.mrf.mxu3  ;;  %v1377_v60 = vpop.f32.mrf.mxu0 }
 0x187   : > { %v1378_v0 = vadd.f32 %v1377_v60, %v4145_v17  ;;  %v2279_v5 = vadd.f32 %v2278_v57, %v2277_v50  ;;  %v1523_v8 = vadd.f32 %v1522_v59, %v1474_v58  ;;  %v2269_v18 = vrot.slane %v2268_v4, 1  ;;  %v3257_v60 = vld [vmem:[%s3833_s6 + $0x14] sm:$0xf] }
 0x188   : > { %v1426_v1 = vpop.f32.mrf.mxu1 }
 0x189   : > { %v1427_v10 = vadd.f32 %v1426_v1, %v1378_v0  ;;  %v2280_v11 = vrot.slane %v2279_v5, 2  ;;  %v2270_v41 = vadd.f32 %v2269_v18, %v2268_v4  ;;  %v2195_v51 = vmax.f32 %v1523_v8, 0.0  ;;  %v2997_v8 = vld [vmem:[%s3833_s6 + $0x230] sm:$0xf0] }
 0x18b   : > { %v2202_v13 = vmax.f32 %v1427_v10, 0.0  ;;  %v2281_v20 = vadd.f32 %v2280_v11, %v2279_v5  ;;  %v2473_v19 = vmul.f32 %v4242_v45, %v2270_v41  ;;  %v2744_v5 = vor.u32 %v3257_v60, %v2741_v61 }
 0x18c   : > { %v1475_v23 = vpop.f32.mrf.mxu2  ;;  %v3000_v11 = vor.u32 %v3321_v63, %v2997_v8 }
 0x18d   : > { %v2362_v22 = vadd.f32 %v2202_v13, %v2194_v12  ;;  %v2282_v29 = vrot.slane %v2281_v20, 1  ;;  %v1476_v31 = vadd.f32 %v1475_v23, %v4156_v30  ;;  %1843 = vmatpush.bf16.msra.mxu2 %v2744_v5 }
 0x18e   : > { %v1524_v34 = vpop.f32.mrf.mxu3  ;;  %v1380_v35 = vpop.f32.mrf.mxu0  ;;  %1892 = vmatpush.bf16.msra.mxu3 %v3000_v11 }
 0x18f   : > { %v1381_v37 = vadd.f32 %v1380_v35, %v4145_v17  ;;  %v2283_v42 = vadd.f32 %v2282_v29, %v2281_v20  ;;  %v1525_v43 = vadd.f32 %v1524_v34, %v1476_v31  ;;  %v2740_v35 = vor.u32 %v3261_v25, %v2739_v24 }
 0x190   : > { %v1429_v38 = vpop.f32.mrf.mxu1 }
 0x191   : > { %v1430_v46 = vadd.f32 %v1429_v38, %v1381_v37  ;;  %1575 = vmatmul.bf16.gmra.mxu0 %v4067_v26  ;;  %v2474_v50 = vmul.f32 %v4242_v45, %v2283_v42  ;;  %v2203_v54 = vmax.f32 %v1525_v43, 0.0  ;;  %1673 = vmatmul.bf16.gmra.mxu2 %v4067_v26  ;;  %v2996_v38 = vor.u32 %v3325_v36, %v2995_v28 }
 0x192   : > { %1745 = vmatpush.bf16.msra.mxu0 %v2740_v35 }
 0x193   : > { %1624 = vmatmul.bf16.gmra.mxu1 %v4069_v27  ;;  %v2210_v55 = vmax.f32 %v1430_v46, 0.0  ;;  %1722 = vmatmul.bf16.gmra.mxu3 %v4069_v27  ;;  %v2505_v56 = vrot.slane %v2474_v50, 6  ;;  %v2375_v57 = vadd.f32 %v2203_v54, %v2195_v51 }
 0x194   : > { %v1478_v59 = vpop.f32.mrf.mxu2  ;;  %1794 = vmatpush.bf16.msra.mxu1 %v2996_v38 }
 0x195   : > { %v2363_v58 = vadd.f32 %v2362_v22, %v2210_v55  ;;  %v4254_v0 = vsel %vm2517_vm1, %v2473_v19, %v2505_v56  ;;  %v1479_v1 = vadd.f32 %v1478_v59, %v4156_v30 }
 0x196   : > { %v1527_v3 = vpop.f32.mrf.mxu3  ;;  %v1382_v4 = vpop.f32.mrf.mxu0 }
 0x197   : > { %v1383_v9 = vadd.f32 %v1382_v4, %v4145_v17  ;;  %v1528_v12 = vadd.f32 %v1527_v3, %v1479_v1 }
 0x198   : > { %v1431_v10 = vpop.f32.mrf.mxu1 }
 0x199   : > { %v1432_v13 = vadd.f32 %v1431_v10, %v1383_v9  ;;  %v2211_v18 = vmax.f32 %v1528_v12, 0.0 }
 0x19b   : > { %v2218_v20 = vmax.f32 %v1432_v13, 0.0  ;;  %v2376_v21 = vadd.f32 %v2375_v57, %v2211_v18 }
 0x19c   : > { %v1480_v23 = vpop.f32.mrf.mxu2 }
 0x19d   : > { %v2364_v22 = vadd.f32 %v2363_v58, %v2218_v20  ;;  %v1481_v29 = vadd.f32 %v1480_v23, %v4156_v30  ;;  %v3378_v23 = vld [vmem:[%s3833_s6 + $0x3dc] sm:$0xf] }
 0x19e   : > { %v1529_v31 = vpop.f32.mrf.mxu3  ;;  %v1385_v34 = vpop.f32.mrf.mxu0 }
 0x19f   : > { %v1386_v39 = vadd.f32 %v1385_v34, %v4145_v17  ;;  %v1530_v40 = vadd.f32 %v1529_v31, %v1481_v29  ;;  %v3229_v29 = vld [vmem:[%s3833_s6 + $0x3f8] sm:$0xf0]  ;;  %v2971_v31 = vld [vmem:[%s3833_s6 + $0x1d8] sm:$0xf] }
 0x1a0   : > { %v1434_v37 = vpop.f32.mrf.mxu1  ;;  %v3318_v34 = vld [vmem:[%s3833_s6 + $0x1f4] sm:$0xf0] }
 0x1a1   : > { %v1435_v41 = vadd.f32 %v1434_v37, %v1386_v39  ;;  %1580 = vmatmul.bf16.gmra.mxu0 %v4095_v47  ;;  %v2219_v42 = vmax.f32 %v1530_v40, 0.0  ;;  %1678 = vmatmul.bf16.gmra.mxu2 %v4095_v47  ;;  %v3232_v37 = vor.u32 %v3378_v23, %v3229_v29  ;;  %v2972_v38 = vor.u32 %v3318_v34, %v2971_v31  ;;  %v3227_v40 = vld [vmem:[%s3833_s6 + $0x3d8] sm:$0xf]  ;;  %v3298_v34 = vld [vmem:[%s3833_s6 + $0x15c] sm:$0xf] }
 0x1a3   : > { %1629 = vmatmul.bf16.gmra.mxu1 %v4097_v48  ;;  %v2226_v43 = vmax.f32 %v1435_v41, 0.0  ;;  %1727 = vmatmul.bf16.gmra.mxu3 %v4097_v48  ;;  %v2377_v46 = vadd.f32 %v2376_v21, %v2219_v42  ;;  %v3314_v21 = vld [vmem:[%s3833_s6 + $0x1dc] sm:$0xf]  ;;  %v3382_v41 = vld [vmem:[%s3833_s6 + $0x3f4] sm:$0xf0] }
 0x1a4   : > { %v1483_v51 = vpop.f32.mrf.mxu2  ;;  %v3306_v42 = vld [vmem:[%s3833_s6 + $0x19c] sm:$0xf]  ;;  %2081 = vmatpush.bf16.msrb.mxu3 %v3232_v37  ;;  %1934 = vmatpush.bf16.msrb.mxu0 %v2972_v38 }
 0x1a5   : > { %v2365_v50 = vadd.f32 %v2364_v22, %v2226_v43  ;;  %v1484_v54 = vadd.f32 %v1483_v51, %v4156_v30  ;;  %v2973_v22 = vld [vmem:[%s3833_s6 + $0x1f8] sm:$0xf0] }
 0x1a6   : > { %v1532_v55 = vpop.f32.mrf.mxu3  ;;  %v1387_v19 = vpop.f32.mrf.mxu0  ;;  %v2976_v28 = vor.u32 %v3314_v21, %v2973_v22  ;;  %v2941_v51 = vld [vmem:[%s3833_s6 + $0x1b8] sm:$0xf0] }
 0x1a7   : > { %v1388_v56 = vadd.f32 %v1387_v19, %v4145_v17  ;;  %v1533_v58 = vadd.f32 %v1532_v55, %v1484_v54  ;;  %v3370_v54 = vld [vmem:[%s3833_s6 + $0x39c] sm:$0xf] }
 0x1a8   : > { %v1436_v57 = vpop.f32.mrf.mxu1  ;;  %2032 = vmatpush.bf16.msrb.mxu2 %v2976_v28  ;;  %v3197_v55 = vld [vmem:[%s3833_s6 + $0x3b8] sm:$0xf0] }
 0x1a9   : > { %v1437_v59 = vadd.f32 %v1436_v57, %v1388_v56  ;;  %v2227_v60 = vmax.f32 %v1533_v58, 0.0  ;;  %v2944_v56 = vor.u32 %v3306_v42, %v2941_v51  ;;  %v3200_v57 = vor.u32 %v3370_v54, %v3197_v55  ;;  %v3165_v42 = vld [vmem:[%s3833_s6 + $0x378] sm:$0xf0] }
 0x1ab   : > { %v2234_v61 = vmax.f32 %v1437_v59, 0.0  ;;  %v2378_v63 = vadd.f32 %v2377_v46, %v2227_v60  ;;  %2082 = vmatpush.bf16.msrb.mxu3 %v3200_v57 }
 0x1ac   : > { %v1485_v3 = vpop.f32.mrf.mxu2  ;;  %2033 = vmatpush.bf16.msrb.mxu2 %v2944_v56 }
 0x1ad   : > { %v2366_v1 = vadd.f32 %v2365_v50, %v2234_v61  ;;  %v1486_v4 = vadd.f32 %v1485_v3, %v4156_v30  ;;  %v3228_v50 = vor.u32 %v3382_v41, %v3227_v40  ;;  %v2939_v3 = vld [vmem:[%s3833_s6 + $0x198] sm:$0xf] }
 0x1ae   : > { %v1534_v5 = vpop.f32.mrf.mxu3  ;;  %v1390_v8 = vpop.f32.mrf.mxu0 }
 0x1af   : > { %v1391_v9 = vadd.f32 %v1390_v8, %v4145_v17  ;;  %v1535_v11 = vadd.f32 %v1534_v5, %v1486_v4  ;;  %1983 = vmatpush.bf16.msrb.mxu1 %v3228_v50  ;;  %v3310_v4 = vld [vmem:[%s3833_s6 + $0x1b4] sm:$0xf0] }
 0x1b0   : > { %v1439_v10 = vpop.f32.mrf.mxu1  ;;  %v3195_v5 = vld [vmem:[%s3833_s6 + $0x398] sm:$0xf] }
 0x1b1   : > { %v1440_v12 = vadd.f32 %v1439_v10, %v1391_v9  ;;  %1585 = vmatmul.bf16.gmra.mxu0 %v4120_v62  ;;  %v2235_v13 = vmax.f32 %v1535_v11, 0.0  ;;  %1683 = vmatmul.bf16.gmra.mxu2 %v4120_v62  ;;  %v2940_v11 = vor.u32 %v3310_v4, %v2939_v3  ;;  %v3163_v3 = vld [vmem:[%s3833_s6 + $0x358] sm:$0xf] }
 0x1b3   : > { %1634 = vmatmul.bf16.gmra.mxu1 %v4125_v2  ;;  %v2242_v18 = vmax.f32 %v1440_v12, 0.0  ;;  %1732 = vmatmul.bf16.gmra.mxu3 %v4125_v2  ;;  %v2379_v20 = vadd.f32 %v2378_v63, %v2235_v13  ;;  %v3374_v12 = vld [vmem:[%s3833_s6 + $0x3b4] sm:$0xf0] }
 0x1b4   : > { %v1488_v25 = vpop.f32.mrf.mxu2  ;;  %v3196_v22 = vor.u32 %v3374_v12, %v3195_v5  ;;  %1935 = vmatpush.bf16.msrb.mxu0 %v2940_v11  ;;  %v3366_v11 = vld [vmem:[%s3833_s6 + $0x374] sm:$0xf0] }
 0x1b5   : > { %v2367_v24 = vadd.f32 %v2366_v1, %v2242_v18  ;;  %v1489_v35 = vadd.f32 %v1488_v25, %v4156_v30  ;;  %v4304_v25 = vperm.slane %v4142_v16, 3 }
 0x1b6   : > { %v1537_v36 = vpop.f32.mrf.mxu3  ;;  %v1392_v39 = vpop.f32.mrf.mxu0  ;;  %1984 = vmatpush.bf16.msrb.mxu1 %v3196_v22 }
 0x1b7   : > { %v1393_v43 = vadd.f32 %v1392_v39, %v4145_v17  ;;  %v1538_v19 = vadd.f32 %v1537_v36, %v1489_v35  ;;  %v4292_v17 = vperm.slane %v4142_v16, 2  ;;  %v2909_v35 = vld [vmem:[%s3833_s6 + $0x178] sm:$0xf0] }
 0x1b8   : > { %v1441_v46 = vpop.f32.mrf.mxu1  ;;  %v3362_v36 = vld [vmem:[%s3833_s6 + $0x35c] sm:$0xf]  ;;  %v2912_v41 = vor.u32 %v3298_v34, %v2909_v35 }
 0x1b9   : > { %v1442_v58 = vadd.f32 %v1441_v46, %v1393_v43  ;;  %v2243_v59 = vmax.f32 %v1538_v19, 0.0  ;;  %v3168_v46 = vor.u32 %v3362_v36, %v3165_v42 }
 0x1ba   : > { %2034 = vmatpush.bf16.msrb.mxu2 %v2912_v41 }
 0x1bb   : > { %v2250_v60 = vmax.f32 %v1442_v58, 0.0  ;;  %v2380_v61 = vadd.f32 %v2379_v20, %v2243_v59  ;;  %2083 = vmatpush.bf16.msrb.mxu3 %v3168_v46  ;;  %v3133_v46 = vld [vmem:[%s3833_s6 + $0x338] sm:$0xf0] }
 0x1bc   : > { %v1490_v1 = vpop.f32.mrf.mxu2 }
 0x1bd   : > { %v2368_v63 = vadd.f32 %v2367_v24, %v2250_v60  ;;  %v1491_v8 = vadd.f32 %v1490_v1, %v4156_v30  ;;  %v3302_v1 = vld [vmem:[%s3833_s6 + $0x174] sm:$0xf0] }
 0x1be   : > { %v1539_v9 = vpop.f32.mrf.mxu3  ;;  %v1551_v10 = vpop.f32.mrf.mxu0 }
 0x1bf   : > { %v2369_v13 = vrot.slane %v2368_v63, 4  ;;  %v1552_v18 = vadd.f32 %v1551_v10, %v4292_v17  ;;  %v1540_v20 = vadd.f32 %v1539_v9, %v1491_v8 }
 0x1c0   : > { %v1600_v21 = vpop.f32.mrf.mxu1 }
 0x1c1   : > { %v2370_v23 = vadd.f32 %v2369_v13, %v2368_v63  ;;  %v1601_v24 = vadd.f32 %v1600_v21, %v1552_v18  ;;  %1746 = vmatmul.bf16.vlgmr.msra.gmra.mxu0 %v3918_v44  ;;  %v2251_v30 = vmax.f32 %v1540_v20, 0.0  ;;  %1844 = vmatmul.bf16.vlgmr.msra.gmra.mxu2 %v3918_v44  ;;  %v2907_v63 = vld [vmem:[%s3833_s6 + $0x158] sm:$0xf]  ;;  %v3164_v18 = vor.u32 %v3366_v11, %v3163_v3 }
 0x1c2   : > { %v2908_v10 = vor.u32 %v3302_v1, %v2907_v63 }
 0x1c3   : > { %1795 = vmatmul.bf16.vlgmr.msra.gmra.mxu1 %v3923_v49  ;;  %1893 = vmatmul.bf16.vlgmr.msra.gmra.mxu3 %v3923_v49  ;;  %v2371_v28 = vrot.slane %v2370_v23, 2  ;;  %v2381_v29 = vadd.f32 %v2380_v61, %v2251_v30  ;;  %v2132_v56 = vmax.f32 %v1601_v24, 0.0 }
 0x1c4   : > { %v1649_v31 = vpop.f32.mrf.mxu2  ;;  %1936 = vmatpush.bf16.msrb.mxu0 %v2908_v10  ;;  %1985 = vmatpush.bf16.msrb.mxu1 %v3164_v18 }
 0x1c5   : > { %v2382_v39 = vrot.slane %v2381_v29, 4  ;;  %v1650_v37 = vadd.f32 %v1649_v31, %v4304_v25  ;;  %v2372_v50 = vadd.f32 %v2371_v28, %v2370_v23 }
 0x1c6   : > { %v1698_v38 = vpop.f32.mrf.mxu3  ;;  %v1553_v40 = vpop.f32.mrf.mxu0 }
 0x1c7   : > { %v1554_v43 = vadd.f32 %v1553_v40, %v4292_v17  ;;  %v2383_v51 = vadd.f32 %v2382_v39, %v2381_v29  ;;  %v1699_v54 = vadd.f32 %v1698_v38, %v1650_v37  ;;  %v2373_v58 = vrot.slane %v2372_v50, 1  ;;  %v3290_v37 = vld [vmem:[%s3833_s6 + $0x11c] sm:$0xf] }
 0x1c8   : > { %v1602_v16 = vpop.f32.mrf.mxu1  ;;  %v2877_v38 = vld [vmem:[%s3833_s6 + $0x138] sm:$0xf0] }
 0x1c9   : > { %v1603_v55 = vadd.f32 %v1602_v16, %v1554_v43  ;;  %v2384_v19 = vrot.slane %v2383_v51, 2  ;;  %v2374_v21 = vadd.f32 %v2373_v58, %v2372_v50  ;;  %v2133_v30 = vmax.f32 %v1699_v54, 0.0  ;;  %v3354_v40 = vld [vmem:[%s3833_s6 + $0x31c] sm:$0xf] }
 0x1ca   : > { %v2880_v16 = vor.u32 %v3290_v37, %v2877_v38  ;;  %v3294_v37 = vld [vmem:[%s3833_s6 + $0x134] sm:$0xf0] }
 0x1cb   : > { %v2140_v57 = vmax.f32 %v1603_v55, 0.0  ;;  %v2385_v59 = vadd.f32 %v2384_v19, %v2383_v51  ;;  %v2481_v31 = vmul.f32 %v4242_v45, %v2374_v21  ;;  %v3136_v55 = vor.u32 %v3354_v40, %v3133_v46  ;;  %v3131_v38 = vld [vmem:[%s3833_s6 + $0x318] sm:$0xf] }
 0x1cc   : > { %v1651_v61 = vpop.f32.mrf.mxu2  ;;  %2035 = vmatpush.bf16.msrb.mxu2 %v2880_v16  ;;  %v3358_v16 = vld [vmem:[%s3833_s6 + $0x334] sm:$0xf0] }
 0x1cd   : > { %v2284_v60 = vadd.f32 %v2140_v57, %v2132_v56  ;;  %v2386_v4 = vrot.slane %v2385_v59, 1  ;;  %v1652_v5 = vadd.f32 %v1651_v61, %v4304_v25  ;;  %2084 = vmatpush.bf16.msrb.mxu3 %v3136_v55 }
 0x1ce   : > { %v1700_v8 = vpop.f32.mrf.mxu3  ;;  %v1556_v9 = vpop.f32.mrf.mxu0 }
 0x1cf   : > { %v1557_v12 = vadd.f32 %v1556_v9, %v4292_v17  ;;  %v2387_v22 = vadd.f32 %v2386_v4, %v2385_v59  ;;  %v1701_v20 = vadd.f32 %v1700_v8, %v1652_v5 }
 0x1d0   : > { %v1605_v13 = vpop.f32.mrf.mxu1 }
 0x1d1   : > { %v1606_v23 = vadd.f32 %v1605_v13, %v1557_v12  ;;  %1751 = vmatmul.bf16.gmra.mxu0 %v3955_v14  ;;  %v2482_v24 = vmul.f32 %v4242_v45, %v2387_v22  ;;  %v2141_v28 = vmax.f32 %v1701_v20, 0.0  ;;  %1849 = vmatmul.bf16.gmra.mxu2 %v3955_v14 }
 0x1d3   : > { %1800 = vmatmul.bf16.gmra.mxu1 %v3957_v15  ;;  %v2148_v29 = vmax.f32 %v1606_v23, 0.0  ;;  %1898 = vmatmul.bf16.gmra.mxu3 %v3957_v15  ;;  %v2511_v34 = vrot.slane %v2482_v24, 6  ;;  %v2297_v35 = vadd.f32 %v2141_v28, %v2133_v30 }
 0x1d4   : > { %v1654_v39 = vpop.f32.mrf.mxu2 }
 0x1d5   : > { %v2285_v36 = vadd.f32 %v2284_v60, %v2148_v29  ;;  %v1655_v41 = vadd.f32 %v1654_v39, %v4304_v25  ;;  %v4331_v50 = vsel %vm2517_vm1, %v2481_v31, %v2511_v34  ;;  %v2875_v39 = vld [vmem:[%s3833_s6 + $0x118] sm:$0xf] }
 0x1d6   : > { %v1703_v42 = vpop.f32.mrf.mxu3  ;;  %v1558_v43 = vpop.f32.mrf.mxu0 }
 0x1d7   : > { %v1559_v51 = vadd.f32 %v1558_v43, %v4292_v17  ;;  %v1704_v19 = vadd.f32 %v1703_v42, %v1655_v41  ;;  %v2876_v43 = vor.u32 %v3294_v37, %v2875_v39 }
 0x1d8   : > { %v1607_v54 = vpop.f32.mrf.mxu1 }
 0x1d9   : > { %v1608_v56 = vadd.f32 %v1607_v54, %v1559_v51  ;;  %v2149_v57 = vmax.f32 %v1704_v19, 0.0  ;;  %v3132_v54 = vor.u32 %v3358_v16, %v3131_v38  ;;  %1937 = vmatpush.bf16.msrb.mxu0 %v2876_v43  ;;  %v3278_v43 = vld [vmem:[%s3833_s6 + $0xb4] sm:$0xf0] }
 0x1da   : > { %v3067_v16 = vld [vmem:[%s3833_s6 + $0x298] sm:$0xf] }
 0x1db   : > { %v2156_v58 = vmax.f32 %v1608_v56, 0.0  ;;  %v2298_v59 = vadd.f32 %v2297_v35, %v2149_v57  ;;  %1986 = vmatpush.bf16.msrb.mxu1 %v3132_v54 }
 0x1dc   : > { %v1656_v61 = vpop.f32.mrf.mxu2 }
 0x1dd   : > { %v2286_v60 = vadd.f32 %v2285_v36, %v2156_v58  ;;  %v1657_v63 = vadd.f32 %v1656_v61, %v4304_v25 }
 0x1de   : > { %v1705_v1 = vpop.f32.mrf.mxu3  ;;  %v1561_v3 = vpop.f32.mrf.mxu0 }
 0x1df   : > { %v1562_v4 = vadd.f32 %v1561_v3, %v4292_v17  ;;  %v1706_v8 = vadd.f32 %v1705_v1, %v1657_v63  ;;  %v3282_v3 = vld [vmem:[%s3833_s6 + $0xdc] sm:$0xf] }
 0x1e0   : > { %v1610_v5 = vpop.f32.mrf.mxu1 }
 0x1e1   : > { %v1611_v9 = vadd.f32 %v1610_v5, %v1562_v4  ;;  %1756 = vmatmul.bf16.gmra.mxu0 %v3983_v32  ;;  %v2157_v10 = vmax.f32 %v1706_v8, 0.0  ;;  %1854 = vmatmul.bf16.gmra.mxu2 %v3983_v32  ;;  %v2845_v4 = vld [vmem:[%s3833_s6 + $0xf8] sm:$0xf0] }
 0x1e2   : > { %v3346_v5 = vld [vmem:[%s3833_s6 + $0x2dc] sm:$0xf] }
 0x1e3   : > { %1805 = vmatmul.bf16.gmra.mxu1 %v3985_v33  ;;  %v2164_v11 = vmax.f32 %v1611_v9, 0.0  ;;  %1903 = vmatmul.bf16.gmra.mxu3 %v3985_v33  ;;  %v2299_v12 = vadd.f32 %v2298_v59, %v2157_v10  ;;  %v2848_v10 = vor.u32 %v3282_v3, %v2845_v4 }
 0x1e4   : > { %v1659_v18 = vpop.f32.mrf.mxu2 }
 0x1e5   : > { %v2287_v13 = vadd.f32 %v2286_v60, %v2164_v11  ;;  %v1660_v21 = vadd.f32 %v1659_v18, %v4304_v25  ;;  %v3101_v11 = vld [vmem:[%s3833_s6 + $0x2f8] sm:$0xf0]  ;;  %2036 = vmatpush.bf16.msrb.mxu2 %v2848_v10 }
 0x1e6   : > { %v1708_v22 = vpop.f32.mrf.mxu3  ;;  %v1563_v20 = vpop.f32.mrf.mxu0 }
 0x1e7   : > { %v1564_v23 = vadd.f32 %v1563_v20, %v4292_v17  ;;  %v1709_v30 = vadd.f32 %v1708_v22, %v1660_v21  ;;  %v3104_v21 = vor.u32 %v3346_v5, %v3101_v11  ;;  %v3099_v20 = vld [vmem:[%s3833_s6 + $0x2d8] sm:$0xf]  ;;  %v3266_v5 = vld [vmem:[%s3833_s6 + $0x5c] sm:$0xf] }
 0x1e8   : > { %v1612_v24 = vpop.f32.mrf.mxu1 }
 0x1e9   : > { %v1613_v28 = vadd.f32 %v1612_v24, %v1564_v23  ;;  %v2165_v29 = vmax.f32 %v1709_v30, 0.0  ;;  %v3350_v23 = vld [vmem:[%s3833_s6 + $0x2f4] sm:$0xf0]  ;;  %v3274_v24 = vld [vmem:[%s3833_s6 + $0x9c] sm:$0xf]  ;;  %2085 = vmatpush.bf16.msrb.mxu3 %v3104_v21 }
 0x1eb   : > { %v2172_v31 = vmax.f32 %v1613_v28, 0.0  ;;  %v2300_v34 = vadd.f32 %v2299_v12, %v2165_v29  ;;  %v2843_v12 = vld [vmem:[%s3833_s6 + $0xd8] sm:$0xf]  ;;  %v3100_v28 = vor.u32 %v3350_v23, %v3099_v20  ;;  %v2813_v29 = vld [vmem:[%s3833_s6 + $0xb8] sm:$0xf0] }
 0x1ec   : > { %v1661_v36 = vpop.f32.mrf.mxu2 }
 0x1ed   : > { %v2288_v35 = vadd.f32 %v2287_v13, %v2172_v31  ;;  %v1662_v40 = vadd.f32 %v1661_v36, %v4304_v25  ;;  %v3286_v13 = vld [vmem:[%s3833_s6 + $0xf4] sm:$0xf0]  ;;  %v3338_v31 = vld [vmem:[%s3833_s6 + $0x29c] sm:$0xf]  ;;  %v2816_v36 = vor.u32 %v3274_v24, %v2813_v29  ;;  %1987 = vmatpush.bf16.msrb.mxu1 %v3100_v28 }
 0x1ee   : > { %v1710_v41 = vpop.f32.mrf.mxu3  ;;  %v1566_v42 = vpop.f32.mrf.mxu0  ;;  %v2844_v22 = vor.u32 %v3286_v13, %v2843_v12 }
 0x1ef   : > { %v1567_v46 = vadd.f32 %v1566_v42, %v4292_v17  ;;  %v1711_v55 = vadd.f32 %v1710_v41, %v1662_v40  ;;  %2037 = vmatpush.bf16.msrb.mxu2 %v2816_v36  ;;  %v2811_v42 = vld [vmem:[%s3833_s6 + $0x98] sm:$0xf] }
 0x1f0   : > { %v1615_v51 = vpop.f32.mrf.mxu1  ;;  %1938 = vmatpush.bf16.msrb.mxu0 %v2844_v22 }
 0x1f1   : > { %v1616_v19 = vadd.f32 %v1615_v51, %v1567_v46  ;;  %1761 = vmatmul.bf16.gmra.mxu0 %v4011_v52  ;;  %v2173_v56 = vmax.f32 %v1711_v55, 0.0  ;;  %1859 = vmatmul.bf16.gmra.mxu2 %v4011_v52  ;;  %v2812_v55 = vor.u32 %v3278_v43, %v2811_v42 }
 0x1f3   : > { %1810 = vmatmul.bf16.gmra.mxu1 %v4013_v53  ;;  %v2180_v57 = vmax.f32 %v1616_v19, 0.0  ;;  %1908 = vmatmul.bf16.gmra.mxu3 %v4013_v53  ;;  %v2301_v58 = vadd.f32 %v2300_v34, %v2173_v56  ;;  %v3069_v34 = vld [vmem:[%s3833_s6 + $0x2b8] sm:$0xf0]  ;;  %v3342_v19 = vld [vmem:[%s3833_s6 + $0x2b4] sm:$0xf0] }
 0x1f4   : > { %v1664_v60 = vpop.f32.mrf.mxu2  ;;  %v3072_v39 = vor.u32 %v3338_v31, %v3069_v34  ;;  %1939 = vmatpush.bf16.msrb.mxu0 %v2812_v55  ;;  %v2779_v31 = vld [vmem:[%s3833_s6 + $0x58] sm:$0xf] }
 0x1f5   : > { %v2289_v59 = vadd.f32 %v2288_v35, %v2180_v57  ;;  %v1665_v61 = vadd.f32 %v1664_v60, %v4304_v25  ;;  %v3270_v34 = vld [vmem:[%s3833_s6 + $0x74] sm:$0xf0] }
 0x1f6   : > { %v1713_v63 = vpop.f32.mrf.mxu3  ;;  %v1568_v1 = vpop.f32.mrf.mxu0  ;;  %2086 = vmatpush.bf16.msrb.mxu3 %v3072_v39 }
 0x1f7   : > { %v1569_v8 = vadd.f32 %v1568_v1, %v4292_v17  ;;  %v1714_v18 = vadd.f32 %v1713_v63, %v1665_v61 }
 0x1f8   : > { %v1617_v9 = vpop.f32.mrf.mxu1 }
 0x1f9   : > { %v1618_v30 = vadd.f32 %v1617_v9, %v1569_v8  ;;  %v2181_v35 = vmax.f32 %v1714_v18, 0.0  ;;  %v2781_v8 = vld [vmem:[%s3833_s6 + $0x78] sm:$0xf0] }
 0x1fa   : > { %v3330_v9 = vld [vmem:[%s3833_s6 + $0x25c] sm:$0xf]  ;;  %v2784_v13 = vor.u32 %v3266_v5, %v2781_v8 }
 0x1fb   : > { %v2188_v37 = vmax.f32 %v1618_v30, 0.0  ;;  %v2302_v38 = vadd.f32 %v2301_v58, %v2181_v35  ;;  %v3068_v58 = vor.u32 %v3342_v19, %v3067_v16  ;;  %v3037_v18 = vld [vmem:[%s3833_s6 + $0x278] sm:$0xf0] }
 0x1fc   : > { %v1666_v41 = vpop.f32.mrf.mxu2  ;;  %v3040_v22 = vor.u32 %v3330_v9, %v3037_v18  ;;  %2038 = vmatpush.bf16.msrb.mxu2 %v2784_v13  ;;  %v2747_v13 = vld [vmem:[%s3833_s6 + $0x18] sm:$0xf] }
 0x1fd   : > { %v2290_v40 = vadd.f32 %v2289_v59, %v2188_v37  ;;  %v1667_v46 = vadd.f32 %v1666_v41, %v4304_v25  ;;  %1988 = vmatpush.bf16.msrb.mxu1 %v3068_v58  ;;  %v2780_v37 = vor.u32 %v3270_v34, %v2779_v31  ;;  %v2749_v58 = vld [vmem:[%s3833_s6 + $0x38] sm:$0xf0]  ;;  %v3262_v18 = vld [vmem:[%s3833_s6 + $0x34] sm:$0xf0] }
 0x1fe   : > { %v1715_v51 = vpop.f32.mrf.mxu3  ;;  %v4370_v54 = vpop.f32.mrf.mxu0  ;;  %2087 = vmatpush.bf16.msrb.mxu3 %v3040_v22  ;;  %v3003_v22 = vld [vmem:[%s3833_s6 + $0x218] sm:$0xf] }
 0x1ff   : > { %v2291_v56 = vrot.slane %v2290_v40, 4  ;;  %v1716_v59 = vadd.f32 %v1715_v51, %v1667_v46  ;;  %1940 = vmatpush.bf16.msrb.mxu0 %v2780_v37 }
 0x200   : > { %v4373_v57 = vpop.f32.mrf.mxu1 }
 0x201   : > { %v2292_v60 = vadd.f32 %v2291_v56, %v2290_v40  ;;  %1766 = vmatmul.bf16.gmra.mxu0 %v4039_v6  ;;  %v2189_v61 = vmax.f32 %v1716_v59, 0.0  ;;  %1864 = vmatmul.bf16.gmra.mxu2 %v4039_v6  ;;  %v3334_v40 = vld [vmem:[%s3833_s6 + $0x274] sm:$0xf0]  ;;  %v3258_v56 = vld [vmem:[%s3833_s6 + $0x1c] sm:$0xf] }
 0x202   : > { %v3322_v59 = vld [vmem:[%s3833_s6 + $0x21c] sm:$0xf] }
 0x203   : > { %1815 = vmatmul.bf16.gmra.mxu1 %v4041_v7  ;;  %v2293_v63 = vrot.slane %v2292_v60, 2  ;;  %1913 = vmatmul.bf16.gmra.mxu3 %v4041_v7  ;;  %v2303_v1 = vadd.f32 %v2302_v38, %v2189_v61  ;;  %v3035_v38 = vld [vmem:[%s3833_s6 + $0x258] sm:$0xf] }
 0x204   : > { %v4379_v4 = vpop.f32.mrf.mxu2  ;;  %v3036_v42 = vor.u32 %v3334_v40, %v3035_v38  ;;  %v1572_v38 = vadd.f32 %v4370_v54, %v4292_v17 }
 0x205   : > { %v2294_v3 = vadd.f32 %v2293_v63, %v2292_v60  ;;  %v2304_v10 = vrot.slane %v2303_v1, 4 }
 0x206   : > { %v4384_v11 = vpop.f32.mrf.mxu3  ;;  %v4386_v12 = vpop.f32.mrf.mxu0  ;;  %1989 = vmatpush.bf16.msrb.mxu1 %v3036_v42 }
 0x207   : > { %v2295_v20 = vrot.slane %v2294_v3, 1  ;;  %v2305_v23 = vadd.f32 %v2304_v10, %v2303_v1  ;;  %v2752_v1 = vor.u32 %v3258_v56, %v2749_v58 }
 0x208   : > { %v4389_v21 = vpop.f32.mrf.mxu1 }
 0x209   : > { %v2306_v24 = vrot.slane %v2305_v23, 2  ;;  %v2296_v30 = vadd.f32 %v2295_v20, %v2294_v3  ;;  %v3005_v3 = vld [vmem:[%s3833_s6 + $0x238] sm:$0xf0]  ;;  %2039 = vmatpush.bf16.msrb.mxu2 %v2752_v1 }
 0x20a   : > { %v3008_v8 = vor.u32 %v3322_v59, %v3005_v3 }
 0x20b   : > { %v2307_v28 = vadd.f32 %v2306_v24, %v2305_v23  ;;  %v2475_v43 = vmul.f32 %v4242_v45, %v2296_v30  ;;  %v2748_v24 = vor.u32 %v3262_v18, %v2747_v13  ;;  %v3326_v30 = vld [vmem:[%s3833_s6 + $0x234] sm:$0xf0]  ;;  %s2655_s6 = sshll.u32 %s3830_s4, 4 }
 0x20c   : > { %v4391_v29 = vpop.f32.mrf.mxu2  ;;  %2088 = vmatpush.bf16.msrb.mxu3 %v3008_v8  ;;  %v3004_v31 = vor.u32 %v3326_v30, %v3003_v22  ;;  %s4486_s11 = scalar_lea.vmem [#allocation3], %s2655_s6 }
 0x20d   : > { %v2308_v35 = vrot.slane %v2307_v28, 1  ;;  %v2506_v51 = vrot.slane %v2475_v43, 4  ;;  %1941 = vmatpush.bf16.msrb.mxu0 %v2748_v24  ;;  %s2570_s25 = sshll.u32 %s4486_s11, 4  ;;  %s2571_s25 = int_to_ptr.vmem [resolvable:$true] %s2570_s25 }
 0x20e   : > { %v4395_v36 = vpop.f32.mrf.mxu3  ;;  %v1576_v39 = vpop.f32.mrf.mxu0  ;;  %1990 = vmatpush.bf16.msrb.mxu1 %v3004_v31 }
 0x20f   : > { %v2309_v16 = vadd.f32 %v2308_v35, %v2307_v28  ;;  %v1577_v40 = vadd.f32 %v1576_v39, %v4292_v17  ;;  %v1670_v39 = vadd.f32 %v4379_v4, %v4304_v25 }
 0x210   : > { %v1625_v41 = vpop.f32.mrf.mxu1 }
 0x211   : > { %1771 = vmatmul.bf16.gmra.mxu0 %v4067_v26  ;;  %v2476_v46 = vmul.f32 %v4242_v45, %v2309_v16  ;;  %1869 = vmatmul.bf16.gmra.mxu2 %v4067_v26  ;;  %v1719_v4 = vadd.f32 %v4384_v11, %v1670_v39 }
 0x213   : > { %1820 = vmatmul.bf16.gmra.mxu1 %v4069_v27  ;;  %1918 = vmatmul.bf16.gmra.mxu3 %v4069_v27  ;;  %v2507_v55 = vrot.slane %v2476_v46, 2  ;;  %v1621_v46 = vadd.f32 %v4373_v57, %v1572_v38  ;;  %v2197_v11 = vmax.f32 %v1719_v4, 0.0 }
 0x214   : > { %v1674_v19 = vpop.f32.mrf.mxu2 }
 0x215   : > { %v2520_v60 = vsel %vm2519_vm2, %v2506_v51, %v2507_v55  ;;  %v1626_v51 = vadd.f32 %v1625_v41, %v1577_v40  ;;  %v2196_v1 = vmax.f32 %v1621_v46, 0.0 }
 0x216   : > { %v1723_v61 = vpop.f32.mrf.mxu3  ;;  %v1578_v63 = vpop.f32.mrf.mxu0  ;;  %v4412_v9 = vsel %vm2521_vm3, %v4254_v0, %v2520_v60  ;;  %v1574_v0 = vadd.f32 %v4386_v12, %v4292_v17  ;;  %v1672_v12 = vadd.f32 %v4391_v29, %v4304_v25 }
 0x217   : > { %v1579_v16 = vadd.f32 %v1578_v63, %v4292_v17  ;;  %v2212_v57 = vmax.f32 %v1626_v51, 0.0 }
 0x218   : > { %v1627_v5 = vpop.f32.mrf.mxu1  ;;  %v1623_v43 = vadd.f32 %v4389_v21, %v1574_v0  ;;  %v1675_v21 = vadd.f32 %v1674_v19, %v4304_v25  ;;  %v1721_v29 = vadd.f32 %v4395_v36, %v1672_v12 }
 0x219   : > { %v1628_v58 = vadd.f32 %v1627_v5, %v1579_v16 }
 0x21a   : > { %v2204_v56 = vmax.f32 %v1623_v43, 0.0  ;;  %v1724_v19 = vadd.f32 %v1723_v61, %v1675_v21  ;;  %v2205_v36 = vmax.f32 %v1721_v29, 0.0 }
 0x21b   : > { %v2220_v18 = vmax.f32 %v1628_v58, 0.0 }
 0x21c   : > { %v1676_v10 = vpop.f32.mrf.mxu2  ;;  %v2388_v13 = vadd.f32 %v2204_v56, %v2196_v1  ;;  %v2213_v61 = vmax.f32 %v1724_v19, 0.0  ;;  %v2401_v12 = vadd.f32 %v2205_v36, %v2197_v11  ;;  %v4450_v1 = vld [vmem:[%s4135_s10] sm:$0xff] }
 0x21d   : > { %v1677_v5 = vadd.f32 %v1676_v10, %v4304_v25 }
 0x21e   : > { %v1725_v20 = vpop.f32.mrf.mxu3  ;;  %v1581_v23 = vpop.f32.mrf.mxu0  ;;  %v2389_v24 = vadd.f32 %v2388_v13, %v2212_v57  ;;  %v4453_v57 = vperm.slane %v4450_v1, 4 }
 0x21f   : > { %v1582_v55 = vadd.f32 %v1581_v23, %v4292_v17  ;;  %v1726_v10 = vadd.f32 %v1725_v20, %v1677_v5 }
 0x220   : > { %v1630_v28 = vpop.f32.mrf.mxu1  ;;  %v2390_v0 = vadd.f32 %v2389_v24, %v2220_v18 }
 0x221   : > { %1776 = vmatmul.bf16.gmra.mxu0 %v4095_v47  ;;  %1874 = vmatmul.bf16.gmra.mxu2 %v4095_v47  ;;  %v1631_v41 = vadd.f32 %v1630_v28, %v1582_v55  ;;  %v2221_v20 = vmax.f32 %v1726_v10, 0.0 }
 0x223   : > { %1825 = vmatmul.bf16.gmra.mxu1 %v4097_v48  ;;  %1923 = vmatmul.bf16.gmra.mxu3 %v4097_v48  ;;  %v2228_v30 = vmax.f32 %v1631_v41, 0.0 }
 0x224   : > { %v1679_v34 = vpop.f32.mrf.mxu2 }
 0x225   : > { %v1680_v23 = vadd.f32 %v1679_v34, %v4304_v25  ;;  %v2391_v16 = vadd.f32 %v2390_v0, %v2228_v30 }
 0x226   : > { %v1728_v35 = vpop.f32.mrf.mxu3  ;;  %v1583_v37 = vpop.f32.mrf.mxu0 }
 0x227   : > { %v1584_v59 = vadd.f32 %v1583_v37, %v4292_v17  ;;  %v1729_v40 = vadd.f32 %v1728_v35, %v1680_v23 }
 0x228   : > { %v1632_v42 = vpop.f32.mrf.mxu1 }
 0x229   : > { %v1633_v22 = vadd.f32 %v1632_v42, %v1584_v59  ;;  %v2229_v39 = vmax.f32 %v1729_v40, 0.0 }
 0x22b   : > { %v2236_v37 = vmax.f32 %v1633_v22, 0.0 }
 0x22c   : > { %v1681_v54 = vpop.f32.mrf.mxu2 }
 0x22d   : > { %v1682_v31 = vadd.f32 %v1681_v54, %v4304_v25  ;;  %v2392_v58 = vadd.f32 %v2391_v16, %v2236_v37  ;;  %v2402_v54 = vadd.f32 %v2401_v12, %v2213_v61 }
 0x22e   : > { %v1730_v60 = vpop.f32.mrf.mxu3  ;;  %v1586_v63 = vpop.f32.mrf.mxu0 }
 0x22f   : > { %v1587_v3 = vadd.f32 %v1586_v63, %v4292_v17  ;;  %v1731_v56 = vadd.f32 %v1730_v60, %v1682_v31  ;;  %v2403_v41 = vadd.f32 %v2402_v54, %v2221_v20 }
 0x230   : > { %v1635_v8 = vpop.f32.mrf.mxu1 }
 0x231   : > { %1781 = vmatmul.bf16.gmra.mxu0 %v4120_v62  ;;  %1879 = vmatmul.bf16.gmra.mxu2 %v4120_v62  ;;  %v1636_v28 = vadd.f32 %v1635_v8, %v1587_v3  ;;  %v2237_v3 = vmax.f32 %v1731_v56, 0.0  ;;  %v2404_v29 = vadd.f32 %v2403_v41, %v2229_v39 }
 0x233   : > { %1830 = vmatmul.bf16.gmra.mxu1 %v4125_v2  ;;  %1928 = vmatmul.bf16.gmra.mxu3 %v4125_v2  ;;  %v2244_v46 = vmax.f32 %v1636_v28, 0.0  ;;  %v2405_v23 = vadd.f32 %v2404_v29, %v2237_v3 }
 0x234   : > { %v1684_v38 = vpop.f32.mrf.mxu2 }
 0x235   : > { %v1685_v34 = vadd.f32 %v1684_v38, %v4304_v25  ;;  %v2393_v63 = vadd.f32 %v2392_v58, %v2244_v46 }
 0x236   : > { %v1733_v42 = vpop.f32.mrf.mxu3  ;;  %v1588_v43 = vpop.f32.mrf.mxu0 }
 0x237   : > { %v1589_v51 = vadd.f32 %v1588_v43, %v4292_v17  ;;  %v1734_v21 = vadd.f32 %v1733_v42, %v1685_v34 }
 0x238   : > { %v1637_v55 = vpop.f32.mrf.mxu1 }
 0x239   : > { %v1638_v59 = vadd.f32 %v1637_v55, %v1589_v51  ;;  %v2245_v5 = vmax.f32 %v1734_v21, 0.0 }
 0x23b   : > { %v2252_v35 = vmax.f32 %v1638_v59, 0.0  ;;  %v2406_v36 = vadd.f32 %v2405_v23, %v2245_v5 }
 0x23c   : > { %v1686_v17 = vpop.f32.mrf.mxu2 }
 0x23d   : > { %v2394_v8 = vadd.f32 %v2393_v63, %v2252_v35  ;;  %v1687_v60 = vadd.f32 %v1686_v17, %v4304_v25  ;;  %v4461_v25 = vperm.slane %v4450_v1, 5 }
 0x23e   : > { %v1735_v13 = vpop.f32.mrf.mxu3  ;;  %v1747_v18 = vpop.f32.mrf.mxu0 }
 0x23f   : > { %v2395_v22 = vrot.slane %v2394_v8, 4  ;;  %v1748_v4 = vadd.f32 %v1747_v18, %v4453_v57  ;;  %v1736_v24 = vadd.f32 %v1735_v13, %v1687_v60 }
 0x240   : > { %v1796_v19 = vpop.f32.mrf.mxu1 }
 0x241   : > { %v2396_v30 = vadd.f32 %v2395_v22, %v2394_v8  ;;  %v1797_v28 = vadd.f32 %v1796_v19, %v1748_v4  ;;  %1942 = vmatmul.bf16.vlgmr.msrb.gmra.mxu0 %v3918_v44  ;;  %v2253_v10 = vmax.f32 %v1736_v24, 0.0  ;;  %2040 = vmatmul.bf16.vlgmr.msrb.gmra.mxu2 %v3918_v44 }
 0x243   : > { %1991 = vmatmul.bf16.vlgmr.msrb.gmra.mxu1 %v3923_v49  ;;  %v2397_v31 = vrot.slane %v2396_v30, 2  ;;  %2089 = vmatmul.bf16.vlgmr.msrb.gmra.mxu3 %v3923_v49  ;;  %v2407_v0 = vadd.f32 %v2406_v36, %v2253_v10  ;;  %v2134_v12 = vmax.f32 %v1797_v28, 0.0 }
 0x244   : > { %v1845_v38 = vpop.f32.mrf.mxu2 }
 0x245   : > { %v2398_v37 = vadd.f32 %v2397_v31, %v2396_v30  ;;  %v2408_v11 = vrot.slane %v2407_v0, 4  ;;  %v1846_v61 = vadd.f32 %v1845_v38, %v4461_v25 }
 0x246   : > { %v1894_v40 = vpop.f32.mrf.mxu3  ;;  %v1749_v34 = vpop.f32.mrf.mxu0 }
 0x247   : > { %v1750_v42 = vadd.f32 %v1749_v34, %v4453_v57  ;;  %v2399_v16 = vrot.slane %v2398_v37, 1  ;;  %v2409_v46 = vadd.f32 %v2408_v11, %v2407_v0  ;;  %v1895_v44 = vadd.f32 %v1894_v40, %v1846_v61 }
 0x248   : > { %v1798_v43 = vpop.f32.mrf.mxu1 }
 0x249   : > { %v1799_v51 = vadd.f32 %v1798_v43, %v1750_v42  ;;  %v2410_v55 = vrot.slane %v2409_v46, 2  ;;  %v2400_v56 = vadd.f32 %v2399_v16, %v2398_v37  ;;  %v2135_v60 = vmax.f32 %v1895_v44, 0.0 }
 0x24b   : > { %v2142_v20 = vmax.f32 %v1799_v51, 0.0  ;;  %v2411_v49 = vadd.f32 %v2410_v55, %v2409_v46  ;;  %v2483_v3 = vmul.f32 %v4242_v45, %v2400_v56 }
 0x24c   : > { %v1847_v59 = vpop.f32.mrf.mxu2 }
 0x24d   : > { %v2310_v58 = vadd.f32 %v2142_v20, %v2134_v12  ;;  %v2412_v54 = vrot.slane %v2411_v49, 1  ;;  %v1848_v39 = vadd.f32 %v1847_v59, %v4461_v25  ;;  %v2512_v22 = vrot.slane %v2483_v3, 4 }
 0x24e   : > { %v1896_v21 = vpop.f32.mrf.mxu3  ;;  %v1752_v63 = vpop.f32.mrf.mxu0 }
 0x24f   : > { %v1753_v35 = vadd.f32 %v1752_v63, %v4453_v57  ;;  %v2413_v8 = vadd.f32 %v2412_v54, %v2411_v49  ;;  %v1897_v17 = vadd.f32 %v1896_v21, %v1848_v39 }
 0x250   : > { %v1801_v41 = vpop.f32.mrf.mxu1 }
 0x251   : > { %v1802_v29 = vadd.f32 %v1801_v41, %v1753_v35  ;;  %1947 = vmatmul.bf16.gmra.mxu0 %v3955_v14  ;;  %v2484_v5 = vmul.f32 %v4242_v45, %v2413_v8  ;;  %v2143_v13 = vmax.f32 %v1897_v17, 0.0  ;;  %2045 = vmatmul.bf16.gmra.mxu2 %v3955_v14 }
 0x253   : > { %1996 = vmatmul.bf16.gmra.mxu1 %v3957_v15  ;;  %v2150_v18 = vmax.f32 %v1802_v29, 0.0  ;;  %2094 = vmatmul.bf16.gmra.mxu3 %v3957_v15  ;;  %v2513_v4 = vrot.slane %v2484_v5, 2  ;;  %v2323_v19 = vadd.f32 %v2143_v13, %v2135_v60 }
 0x254   : > { %v1850_v24 = vpop.f32.mrf.mxu2 }
 0x255   : > { %v2311_v23 = vadd.f32 %v2310_v58, %v2150_v18  ;;  %v1851_v30 = vadd.f32 %v1850_v24, %v4461_v25  ;;  %v2527_v10 = vsel %vm2519_vm2, %v2512_v22, %v2513_v4 }
 0x256   : > { %v1899_v28 = vpop.f32.mrf.mxu3  ;;  %v1754_v36 = vpop.f32.mrf.mxu0  ;;  %v2528_v14 = vsel %vm2521_vm3, %v4331_v50, %v2527_v10 }
 0x257   : > { %v1755_v31 = vadd.f32 %v1754_v36, %v4453_v57  ;;  %v1900_v37 = vadd.f32 %v1899_v28, %v1851_v30  ;;  %v2536_v15 = vrot.slane %v2528_v14, 7 }
 0x258   : > { %v1803_v0 = vpop.f32.mrf.mxu1 }
 0x259   : > { %v1804_v38 = vadd.f32 %v1803_v0, %v1755_v31  ;;  %v2151_v11 = vmax.f32 %v1900_v37, 0.0  ;;  %v2538_v61 = vsel %vm2537_vm4, %v2536_v15, %v4412_v9 }
 0x25a   : > { %v2540_v34 = vsel %vm2539_vm5, %v2536_v15, %v2538_v61 }
 0x25b   : > { %v2158_v40 = vmax.f32 %v1804_v38, 0.0  ;;  %v2324_v42 = vadd.f32 %v2323_v19, %v2151_v11  ;;  %v2542_v43 = vsel %vm2541_vm6, %v2536_v15, %v2540_v34 }
 0x25c   : > { %v1852_v50 = vpop.f32.mrf.mxu2  ;;  %v2544_v46 = vsel %vm2543_vm7, %v2536_v15, %v2542_v43 }
 0x25d   : > { %v2312_v16 = vadd.f32 %v2311_v23, %v2158_v40  ;;  %v1853_v44 = vadd.f32 %v1852_v50, %v4461_v25  ;;  %2554 = vst [vmem:[%s4486_s11] sm:$0xff] %v2544_v46 }
 0x25e   : > { %v1901_v51 = vpop.f32.mrf.mxu3  ;;  %v1757_v55 = vpop.f32.mrf.mxu0 }
 0x25f   : > { %v1758_v9 = vadd.f32 %v1757_v55, %v4453_v57  ;;  %v1902_v20 = vadd.f32 %v1901_v51, %v1853_v44 }
 0x260   : > { %v1806_v12 = vpop.f32.mrf.mxu1 }
 0x261   : > { %v1807_v56 = vadd.f32 %v1806_v12, %v1758_v9  ;;  %1952 = vmatmul.bf16.gmra.mxu0 %v3983_v32  ;;  %v2159_v49 = vmax.f32 %v1902_v20, 0.0  ;;  %2050 = vmatmul.bf16.gmra.mxu2 %v3983_v32 }
 0x263   : > { %2001 = vmatmul.bf16.gmra.mxu1 %v3985_v33  ;;  %v2166_v58 = vmax.f32 %v1807_v56, 0.0  ;;  %2099 = vmatmul.bf16.gmra.mxu3 %v3985_v33  ;;  %v2325_v59 = vadd.f32 %v2324_v42, %v2159_v49 }
 0x264   : > { %v1855_v39 = vpop.f32.mrf.mxu2 }
 0x265   : > { %v2313_v54 = vadd.f32 %v2312_v16, %v2166_v58  ;;  %v1856_v21 = vadd.f32 %v1855_v39, %v4461_v25 }
 0x266   : > { %v1904_v63 = vpop.f32.mrf.mxu3  ;;  %v1759_v35 = vpop.f32.mrf.mxu0 }
 0x267   : > { %v1760_v41 = vadd.f32 %v1759_v35, %v4453_v57  ;;  %v1905_v8 = vadd.f32 %v1904_v63, %v1856_v21 }
 0x268   : > { %v1808_v3 = vpop.f32.mrf.mxu1 }
 0x269   : > { %v1809_v17 = vadd.f32 %v1808_v3, %v1760_v41  ;;  %v2167_v29 = vmax.f32 %v1905_v8, 0.0 }
 0x26b   : > { %v2174_v5 = vmax.f32 %v1809_v17, 0.0  ;;  %v2326_v60 = vadd.f32 %v2325_v59, %v2167_v29 }
 0x26c   : > { %v1857_v32 = vpop.f32.mrf.mxu2 }
 0x26d   : > { %v2314_v13 = vadd.f32 %v2313_v54, %v2174_v5  ;;  %v1858_v18 = vadd.f32 %v1857_v32, %v4461_v25 }
 0x26e   : > { %v1906_v33 = vpop.f32.mrf.mxu3  ;;  %v1762_v22 = vpop.f32.mrf.mxu0 }
 0x26f   : > { %v1763_v4 = vadd.f32 %v1762_v22, %v4453_v57  ;;  %v1907_v23 = vadd.f32 %v1906_v33, %v1858_v18 }
 0x270   : > { %v1811_v19 = vpop.f32.mrf.mxu1 }
 0x271   : > { %v1812_v24 = vadd.f32 %v1811_v19, %v1763_v4  ;;  %1957 = vmatmul.bf16.gmra.mxu0 %v4011_v52  ;;  %v2175_v30 = vmax.f32 %v1907_v23, 0.0  ;;  %2055 = vmatmul.bf16.gmra.mxu2 %v4011_v52 }
 0x273   : > { %2006 = vmatmul.bf16.gmra.mxu1 %v4013_v53  ;;  %v2182_v28 = vmax.f32 %v1812_v24, 0.0  ;;  %2104 = vmatmul.bf16.gmra.mxu3 %v4013_v53  ;;  %v2327_v36 = vadd.f32 %v2326_v60, %v2175_v30 }
 0x274   : > { %v1860_v31 = vpop.f32.mrf.mxu2 }
 0x275   : > { %v2315_v10 = vadd.f32 %v2314_v13, %v2182_v28  ;;  %v1861_v0 = vadd.f32 %v1860_v31, %v4461_v25 }
 0x276   : > { %v1909_v14 = vpop.f32.mrf.mxu3  ;;  %v1764_v37 = vpop.f32.mrf.mxu0 }
 0x277   : > { %v1765_v15 = vadd.f32 %v1764_v37, %v4453_v57  ;;  %v1910_v11 = vadd.f32 %v1909_v14, %v1861_v0 }
 0x278   : > { %v1813_v38 = vpop.f32.mrf.mxu1 }
 0x279   : > { %v1814_v61 = vadd.f32 %v1813_v38, %v1765_v15  ;;  %v2183_v40 = vmax.f32 %v1910_v11, 0.0 }
 0x27b   : > { %v2190_v34 = vmax.f32 %v1814_v61, 0.0  ;;  %v2328_v42 = vadd.f32 %v2327_v36, %v2183_v40 }
 0x27c   : > { %v1862_v52 = vpop.f32.mrf.mxu2 }
 0x27d   : > { %v2316_v43 = vadd.f32 %v2315_v10, %v2190_v34  ;;  %v1863_v16 = vadd.f32 %v1862_v52, %v4461_v25 }
 0x27e   : > { %v1911_v53 = vpop.f32.mrf.mxu3  ;;  %v1767_v50 = vpop.f32.mrf.mxu0 }
 0x27f   : > { %v2317_v46 = vrot.slane %v2316_v43, 4  ;;  %v1768_v44 = vadd.f32 %v1767_v50, %v4453_v57  ;;  %v1912_v55 = vadd.f32 %v1911_v53, %v1863_v16 }
 0x280   : > { %v1816_v51 = vpop.f32.mrf.mxu1 }
 0x281   : > { %v2318_v9 = vadd.f32 %v2317_v46, %v2316_v43  ;;  %v1817_v12 = vadd.f32 %v1816_v51, %v1768_v44  ;;  %1962 = vmatmul.bf16.gmra.mxu0 %v4039_v6  ;;  %v2191_v20 = vmax.f32 %v1912_v55, 0.0  ;;  %2060 = vmatmul.bf16.gmra.mxu2 %v4039_v6 }
 0x283   : > { %2011 = vmatmul.bf16.gmra.mxu1 %v4041_v7  ;;  %2109 = vmatmul.bf16.gmra.mxu3 %v4041_v7  ;;  %v2319_v56 = vrot.slane %v2318_v9, 2  ;;  %v2329_v49 = vadd.f32 %v2328_v42, %v2191_v20  ;;  %v2198_v5 = vmax.f32 %v1817_v12, 0.0 }
 0x284   : > { %v1865_v58 = vpop.f32.mrf.mxu2 }
 0x285   : > { %v2330_v59 = vrot.slane %v2329_v49, 4  ;;  %v1866_v54 = vadd.f32 %v1865_v58, %v4461_v25  ;;  %v2320_v41 = vadd.f32 %v2319_v56, %v2318_v9 }
 0x286   : > { %v1914_v39 = vpop.f32.mrf.mxu3  ;;  %v1769_v21 = vpop.f32.mrf.mxu0 }
 0x287   : > { %v1770_v63 = vadd.f32 %v1769_v21, %v4453_v57  ;;  %v2331_v3 = vadd.f32 %v2330_v59, %v2329_v49  ;;  %v1915_v8 = vadd.f32 %v1914_v39, %v1866_v54  ;;  %v2321_v60 = vrot.slane %v2320_v41, 1 }
 0x288   : > { %v1818_v35 = vpop.f32.mrf.mxu1 }
 0x289   : > { %v1819_v17 = vadd.f32 %v1818_v35, %v1770_v63  ;;  %v2332_v29 = vrot.slane %v2331_v3, 2  ;;  %v2322_v24 = vadd.f32 %v2321_v60, %v2320_v41  ;;  %v2199_v31 = vmax.f32 %v1915_v8, 0.0 }
 0x28b   : > { %v2206_v6 = vmax.f32 %v1819_v17, 0.0  ;;  %v2333_v7 = vadd.f32 %v2332_v29, %v2331_v3  ;;  %v2477_v37 = vmul.f32 %v4242_v45, %v2322_v24 }
 0x28c   : > { %v1867_v32 = vpop.f32.mrf.mxu2 }
 0x28d   : > { %v2414_v13 = vadd.f32 %v2206_v6, %v2198_v5  ;;  %v2334_v18 = vrot.slane %v2333_v7, 1  ;;  %v1868_v33 = vadd.f32 %v1867_v32, %v4461_v25 }
 0x28e   : > { %v1916_v22 = vpop.f32.mrf.mxu3  ;;  %v1772_v4 = vpop.f32.mrf.mxu0 }
 0x28f   : > { %v1773_v19 = vadd.f32 %v1772_v4, %v4453_v57  ;;  %v2335_v30 = vadd.f32 %v2334_v18, %v2333_v7  ;;  %v1917_v28 = vadd.f32 %v1916_v22, %v1868_v33 }
 0x290   : > { %v1821_v23 = vpop.f32.mrf.mxu1 }
 0x291   : > { %v1822_v36 = vadd.f32 %v1821_v23, %v1773_v19  ;;  %1967 = vmatmul.bf16.gmra.mxu0 %v4067_v26  ;;  %v2478_v10 = vmul.f32 %v4242_v45, %v2335_v30  ;;  %v2207_v0 = vmax.f32 %v1917_v28, 0.0  ;;  %2065 = vmatmul.bf16.gmra.mxu2 %v4067_v26 }
 0x293   : > { %2016 = vmatmul.bf16.gmra.mxu1 %v4069_v27  ;;  %v2214_v14 = vmax.f32 %v1822_v36, 0.0  ;;  %2114 = vmatmul.bf16.gmra.mxu3 %v4069_v27  ;;  %v2508_v15 = vrot.slane %v2478_v10, 6  ;;  %v2427_v38 = vadd.f32 %v2207_v0, %v2199_v31 }
 0x294   : > { %v1870_v61 = vpop.f32.mrf.mxu2 }
 0x295   : > { %v2415_v11 = vadd.f32 %v2414_v13, %v2214_v14  ;;  %v4521_v40 = vsel %vm2517_vm1, %v2477_v37, %v2508_v15  ;;  %v1871_v34 = vadd.f32 %v1870_v61, %v4461_v25 }
 0x296   : > { %v1919_v42 = vpop.f32.mrf.mxu3  ;;  %v1774_v43 = vpop.f32.mrf.mxu0 }
 0x297   : > { %v1775_v52 = vadd.f32 %v1774_v43, %v4453_v57  ;;  %v1920_v26 = vadd.f32 %v1919_v42, %v1871_v34  ;;  %v4542_v34 = vperm.slane %v4450_v1, 6 }
 0x298   : > { %v1823_v16 = vpop.f32.mrf.mxu1 }
 0x299   : > { %v1824_v53 = vadd.f32 %v1823_v16, %v1775_v52  ;;  %v2215_v50 = vmax.f32 %v1920_v26, 0.0 }
 0x29b   : > { %v2222_v27 = vmax.f32 %v1824_v53, 0.0  ;;  %v2428_v46 = vadd.f32 %v2427_v38, %v2215_v50 }
 0x29c   : > { %v1872_v51 = vpop.f32.mrf.mxu2 }
 0x29d   : > { %v2416_v44 = vadd.f32 %v2415_v11, %v2222_v27  ;;  %v1873_v55 = vadd.f32 %v1872_v51, %v4461_v25  ;;  %v4547_v51 = vperm.slane %v4450_v1, 7 }
 0x29e   : > { %v1921_v9 = vpop.f32.mrf.mxu3  ;;  %v1777_v12 = vpop.f32.mrf.mxu0 }
 0x29f   : > { %v1778_v20 = vadd.f32 %v1777_v12, %v4453_v57  ;;  %v1922_v49 = vadd.f32 %v1921_v9, %v1873_v55 }
 0x2a0   : > { %v1826_v56 = vpop.f32.mrf.mxu1 }
 0x2a1   : > { %v1827_v58 = vadd.f32 %v1826_v56, %v1778_v20  ;;  %1972 = vmatmul.bf16.gmra.mxu0 %v4095_v47  ;;  %v2223_v59 = vmax.f32 %v1922_v49, 0.0  ;;  %2070 = vmatmul.bf16.gmra.mxu2 %v4095_v47 }
 0x2a3   : > { %2021 = vmatmul.bf16.gmra.mxu1 %v4097_v48  ;;  %v2230_v54 = vmax.f32 %v1827_v58, 0.0  ;;  %2119 = vmatmul.bf16.gmra.mxu3 %v4097_v48  ;;  %v2429_v39 = vadd.f32 %v2428_v46, %v2223_v59 }
 0x2a4   : > { %v1875_v63 = vpop.f32.mrf.mxu2 }
 0x2a5   : > { %v2417_v21 = vadd.f32 %v2416_v44, %v2230_v54  ;;  %v1876_v35 = vadd.f32 %v1875_v63, %v4461_v25 }
 0x2a6   : > { %v1924_v41 = vpop.f32.mrf.mxu3  ;;  %v1779_v3 = vpop.f32.mrf.mxu0 }
 0x2a7   : > { %v1780_v8 = vadd.f32 %v1779_v3, %v4453_v57  ;;  %v1925_v29 = vadd.f32 %v1924_v41, %v1876_v35 }
 0x2a8   : > { %v1828_v17 = vpop.f32.mrf.mxu1 }
 0x2a9   : > { %v1829_v5 = vadd.f32 %v1828_v17, %v1780_v8  ;;  %v2231_v6 = vmax.f32 %v1925_v29, 0.0 }
 0x2ab   : > { %v2238_v60 = vmax.f32 %v1829_v5, 0.0  ;;  %v2430_v7 = vadd.f32 %v2429_v39, %v2231_v6 }
 0x2ac   : > { %v1877_v47 = vpop.f32.mrf.mxu2 }
 0x2ad   : > { %v2418_v13 = vadd.f32 %v2417_v21, %v2238_v60  ;;  %v1878_v32 = vadd.f32 %v1877_v47, %v4461_v25 }
 0x2ae   : > { %v1926_v48 = vpop.f32.mrf.mxu3  ;;  %v1782_v18 = vpop.f32.mrf.mxu0 }
 0x2af   : > { %v1783_v33 = vadd.f32 %v1782_v18, %v4453_v57  ;;  %v1927_v4 = vadd.f32 %v1926_v48, %v1878_v32 }
 0x2b0   : > { %v1831_v22 = vpop.f32.mrf.mxu1 }
 0x2b1   : > { %v1832_v19 = vadd.f32 %v1831_v22, %v1783_v33  ;;  %1977 = vmatmul.bf16.gmra.mxu0 %v4120_v62  ;;  %v2239_v23 = vmax.f32 %v1927_v4, 0.0  ;;  %2075 = vmatmul.bf16.gmra.mxu2 %v4120_v62 }
 0x2b3   : > { %2026 = vmatmul.bf16.gmra.mxu1 %v4125_v2  ;;  %v2246_v24 = vmax.f32 %v1832_v19, 0.0  ;;  %2124 = vmatmul.bf16.gmra.mxu3 %v4125_v2  ;;  %v2431_v30 = vadd.f32 %v2430_v7, %v2239_v23 }
 0x2b4   : > { %v1880_v36 = vpop.f32.mrf.mxu2 }
 0x2b5   : > { %v2419_v28 = vadd.f32 %v2418_v13, %v2246_v24  ;;  %v1881_v10 = vadd.f32 %v1880_v36, %v4461_v25 }
 0x2b6   : > { %v1929_v31 = vpop.f32.mrf.mxu3  ;;  %v1784_v0 = vpop.f32.mrf.mxu0 }
 0x2b7   : > { %v1785_v14 = vadd.f32 %v1784_v0, %v4453_v57  ;;  %v1930_v15 = vadd.f32 %v1929_v31, %v1881_v10 }
 0x2b8   : > { %v1833_v37 = vpop.f32.mrf.mxu1 }
 0x2b9   : > { %v1834_v38 = vadd.f32 %v1833_v37, %v1785_v14  ;;  %v2247_v11 = vmax.f32 %v1930_v15, 0.0 }
 0x2bb   : > { %v2254_v61 = vmax.f32 %v1834_v38, 0.0  ;;  %v2432_v62 = vadd.f32 %v2431_v30, %v2247_v11 }
 0x2bc   : > { %v1882_v2 = vpop.f32.mrf.mxu2 }
 0x2bd   : > { %v2420_v42 = vadd.f32 %v2419_v28, %v2254_v61  ;;  %v1883_v43 = vadd.f32 %v1882_v2, %v4461_v25 }
 0x2be   : > { %v1931_v52 = vpop.f32.mrf.mxu3  ;;  %v1943_v16 = vpop.f32.mrf.mxu0 }
 0x2bf   : > { %v2421_v26 = vrot.slane %v2420_v42, 4  ;;  %v1944_v53 = vadd.f32 %v1943_v16, %v4542_v34  ;;  %v1932_v57 = vadd.f32 %v1931_v52, %v1883_v43 }
 0x2c0   : > { %v1992_v50 = vpop.f32.mrf.mxu1 }
 0x2c1   : > { %v2422_v27 = vadd.f32 %v2421_v26, %v2420_v42  ;;  %v1993_v46 = vadd.f32 %v1992_v50, %v1944_v53  ;;  %v2255_v44 = vmax.f32 %v1932_v57, 0.0 }
 0x2c3   : > { %v2423_v55 = vrot.slane %v2422_v27, 2  ;;  %v2433_v9 = vadd.f32 %v2432_v62, %v2255_v44  ;;  %v2136_v41 = vmax.f32 %v1993_v46, 0.0 }
 0x2c4   : > { %v2041_v12 = vpop.f32.mrf.mxu2 }
 0x2c5   : > { %v2434_v20 = vrot.slane %v2433_v9, 4  ;;  %v2042_v56 = vadd.f32 %v2041_v12, %v4547_v51  ;;  %v2424_v54 = vadd.f32 %v2423_v55, %v2422_v27 }
 0x2c6   : > { %v2090_v25 = vpop.f32.mrf.mxu3  ;;  %v1945_v49 = vpop.f32.mrf.mxu0 }
 0x2c7   : > { %v1946_v58 = vadd.f32 %v1945_v49, %v4542_v34  ;;  %v2435_v39 = vadd.f32 %v2434_v20, %v2433_v9  ;;  %v2091_v21 = vadd.f32 %v2090_v25, %v2042_v56  ;;  %v2425_v1 = vrot.slane %v2424_v54, 1 }
 0x2c8   : > { %v1994_v59 = vpop.f32.mrf.mxu1 }
 0x2c9   : > { %v1995_v63 = vadd.f32 %v1994_v59, %v1946_v58  ;;  %v2436_v35 = vrot.slane %v2435_v39, 2  ;;  %v2426_v32 = vadd.f32 %v2425_v1, %v2424_v54  ;;  %v2137_v4 = vmax.f32 %v2091_v21, 0.0 }
 0x2cb   : > { %v2144_v3 = vmax.f32 %v1995_v63, 0.0  ;;  %v2437_v8 = vadd.f32 %v2436_v35, %v2435_v39  ;;  %v2485_v24 = vmul.f32 %v4242_v45, %v2426_v32 }
 0x2cc   : > { %v2043_v29 = vpop.f32.mrf.mxu2 }
 0x2cd   : > { %v2336_v17 = vadd.f32 %v2144_v3, %v2136_v41  ;;  %v2438_v5 = vrot.slane %v2437_v8, 1  ;;  %v2044_v6 = vadd.f32 %v2043_v29, %v4547_v51 }
 0x2ce   : > { %v2092_v60 = vpop.f32.mrf.mxu3  ;;  %v1948_v7 = vpop.f32.mrf.mxu0 }
 0x2cf   : > { %v1949_v13 = vadd.f32 %v1948_v7, %v4542_v34  ;;  %v2439_v48 = vadd.f32 %v2438_v5, %v2437_v8  ;;  %v2093_v18 = vadd.f32 %v2092_v60, %v2044_v6 }
 0x2d0   : > { %v1997_v47 = vpop.f32.mrf.mxu1 }
 0x2d1   : > { %v1998_v33 = vadd.f32 %v1997_v47, %v1949_v13  ;;  %v2486_v22 = vmul.f32 %v4242_v45, %v2439_v48  ;;  %v2145_v19 = vmax.f32 %v2093_v18, 0.0 }
 0x2d3   : > { %v2152_v23 = vmax.f32 %v1998_v33, 0.0  ;;  %v2514_v30 = vrot.slane %v2486_v22, 6  ;;  %v2349_v28 = vadd.f32 %v2145_v19, %v2137_v4 }
 0x2d4   : > { %v2046_v10 = vpop.f32.mrf.mxu2 }
 0x2d5   : > { %v2337_v36 = vadd.f32 %v2336_v17, %v2152_v23  ;;  %v4556_v31 = vsel %vm2517_vm1, %v2485_v24, %v2514_v30  ;;  %v2047_v0 = vadd.f32 %v2046_v10, %v4547_v51 }
 0x2d6   : > { %v2095_v14 = vpop.f32.mrf.mxu3  ;;  %v1950_v37 = vpop.f32.mrf.mxu0 }
 0x2d7   : > { %v1951_v15 = vadd.f32 %v1950_v37, %v4542_v34  ;;  %v2096_v11 = vadd.f32 %v2095_v14, %v2047_v0 }
 0x2d8   : > { %v1999_v38 = vpop.f32.mrf.mxu1 }
 0x2d9   : > { %v2000_v61 = vadd.f32 %v1999_v38, %v1951_v15  ;;  %v2153_v62 = vmax.f32 %v2096_v11, 0.0 }
 0x2db   : > { %v2160_v42 = vmax.f32 %v2000_v61, 0.0  ;;  %v2350_v2 = vadd.f32 %v2349_v28, %v2153_v62 }
 0x2dc   : > { %v2048_v52 = vpop.f32.mrf.mxu2 }
 0x2dd   : > { %v2338_v43 = vadd.f32 %v2337_v36, %v2160_v42  ;;  %v2049_v16 = vadd.f32 %v2048_v52, %v4547_v51 }
 0x2de   : > { %v2097_v26 = vpop.f32.mrf.mxu3  ;;  %v1953_v53 = vpop.f32.mrf.mxu0 }
 0x2df   : > { %v1954_v50 = vadd.f32 %v1953_v53, %v4542_v34  ;;  %v2098_v27 = vadd.f32 %v2097_v26, %v2049_v16 }
 0x2e0   : > { %v2002_v57 = vpop.f32.mrf.mxu1 }
 0x2e1   : > { %v2003_v46 = vadd.f32 %v2002_v57, %v1954_v50  ;;  %v2161_v44 = vmax.f32 %v2098_v27, 0.0 }
 0x2e3   : > { %v2168_v55 = vmax.f32 %v2003_v46, 0.0  ;;  %v2351_v9 = vadd.f32 %v2350_v2, %v2161_v44 }
 0x2e4   : > { %v2051_v20 = vpop.f32.mrf.mxu2 }
 0x2e5   : > { %v2339_v12 = vadd.f32 %v2338_v43, %v2168_v55  ;;  %v2052_v56 = vadd.f32 %v2051_v20, %v4547_v51 }
 0x2e6   : > { %v2100_v25 = vpop.f32.mrf.mxu3  ;;  %v1955_v49 = vpop.f32.mrf.mxu0 }
 0x2e7   : > { %v1956_v58 = vadd.f32 %v1955_v49, %v4542_v34  ;;  %v2101_v54 = vadd.f32 %v2100_v25, %v2052_v56 }
 0x2e8   : > { %v2004_v59 = vpop.f32.mrf.mxu1 }
 0x2e9   : > { %v2005_v39 = vadd.f32 %v2004_v59, %v1956_v58  ;;  %v2169_v21 = vmax.f32 %v2101_v54, 0.0 }
 0x2eb   : > { %v2176_v63 = vmax.f32 %v2005_v39, 0.0  ;;  %v2352_v35 = vadd.f32 %v2351_v9, %v2169_v21 }
 0x2ec   : > { %v2053_v3 = vpop.f32.mrf.mxu2 }
 0x2ed   : > { %v2340_v41 = vadd.f32 %v2339_v12, %v2176_v63  ;;  %v2054_v1 = vadd.f32 %v2053_v3, %v4547_v51 }
 0x2ee   : > { %v2102_v8 = vpop.f32.mrf.mxu3  ;;  %v1958_v17 = vpop.f32.mrf.mxu0 }
 0x2ef   : > { %v1959_v29 = vadd.f32 %v1958_v17, %v4542_v34  ;;  %v2103_v6 = vadd.f32 %v2102_v8, %v2054_v1 }
 0x2f0   : > { %v2007_v5 = vpop.f32.mrf.mxu1 }
 0x2f1   : > { %v2008_v60 = vadd.f32 %v2007_v5, %v1959_v29  ;;  %v2177_v7 = vmax.f32 %v2103_v6, 0.0 }
 0x2f3   : > { %v2184_v13 = vmax.f32 %v2008_v60, 0.0  ;;  %v2353_v47 = vadd.f32 %v2352_v35, %v2177_v7 }
 0x2f4   : > { %v2056_v48 = vpop.f32.mrf.mxu2 }
 0x2f5   : > { %v2341_v32 = vadd.f32 %v2340_v41, %v2184_v13  ;;  %v2057_v18 = vadd.f32 %v2056_v48, %v4547_v51 }
 0x2f6   : > { %v2105_v33 = vpop.f32.mrf.mxu3  ;;  %v1960_v22 = vpop.f32.mrf.mxu0 }
 0x2f7   : > { %v1961_v4 = vadd.f32 %v1960_v22, %v4542_v34  ;;  %v2106_v23 = vadd.f32 %v2105_v33, %v2057_v18 }
 0x2f8   : > { %v2009_v19 = vpop.f32.mrf.mxu1 }
 0x2f9   : > { %v2010_v24 = vadd.f32 %v2009_v19, %v1961_v4  ;;  %v2185_v30 = vmax.f32 %v2106_v23, 0.0 }
 0x2fb   : > { %v2192_v28 = vmax.f32 %v2010_v24, 0.0  ;;  %v2354_v36 = vadd.f32 %v2353_v47, %v2185_v30 }
 0x2fc   : > { %v2058_v0 = vpop.f32.mrf.mxu2 }
 0x2fd   : > { %v2342_v10 = vadd.f32 %v2341_v32, %v2192_v28  ;;  %v2059_v14 = vadd.f32 %v2058_v0, %v4547_v51 }
 0x2fe   : > { %v2107_v37 = vpop.f32.mrf.mxu3  ;;  %v1963_v15 = vpop.f32.mrf.mxu0 }
 0x2ff   : > { %v2343_v38 = vrot.slane %v2342_v10, 4  ;;  %v2108_v61 = vadd.f32 %v2107_v37, %v2059_v14  ;;  %v1964_v32 = vadd.f32 %v1963_v15, %v4542_v34 }
 0x300   : > { %v2012_v11 = vpop.f32.mrf.mxu1 }
 0x301   : > { %v2344_v62 = vadd.f32 %v2343_v38, %v2342_v10  ;;  %v2193_v42 = vmax.f32 %v2108_v61, 0.0  ;;  %v2013_v4 = vadd.f32 %v2012_v11, %v1964_v32 }
 0x303   : > { %v2345_v2 = vrot.slane %v2344_v62, 2  ;;  %v2355_v43 = vadd.f32 %v2354_v36, %v2193_v42  ;;  %v2200_v15 = vmax.f32 %v2013_v4, 0.0 }
 0x304   : > { %v2061_v16 = vpop.f32.mrf.mxu2 }
 0x305   : > { %v2346_v52 = vadd.f32 %v2345_v2, %v2344_v62  ;;  %v2356_v26 = vrot.slane %v2355_v43, 4  ;;  %v2062_v10 = vadd.f32 %v2061_v16, %v4547_v51 }
 0x306   : > { %v2110_v53 = vpop.f32.mrf.mxu3  ;;  %v1965_v50 = vpop.f32.mrf.mxu0 }
 0x307   : > { %v2347_v27 = vrot.slane %v2346_v52, 1  ;;  %v2357_v46 = vadd.f32 %v2356_v26, %v2355_v43  ;;  %v1966_v60 = vadd.f32 %v1965_v50, %v4542_v34  ;;  %v2111_v50 = vadd.f32 %v2110_v53, %v2062_v10 }
 0x308   : > { %v2014_v57 = vpop.f32.mrf.mxu1 }
 0x309   : > { %v2358_v44 = vrot.slane %v2357_v46, 2  ;;  %v2348_v55 = vadd.f32 %v2347_v27, %v2346_v52  ;;  %v2015_v33 = vadd.f32 %v2014_v57, %v1966_v60 }
 0x30b   : > { %v2359_v9 = vadd.f32 %v2358_v44, %v2357_v46  ;;  %v2479_v58 = vmul.f32 %v4242_v45, %v2348_v55  ;;  %v2208_v24 = vmax.f32 %v2015_v33, 0.0 }
 0x30c   : > { %v2063_v12 = vpop.f32.mrf.mxu2 }
 0x30d   : > { %v2360_v20 = vrot.slane %v2359_v9, 1  ;;  %v2509_v39 = vrot.slane %v2479_v58, 4  ;;  %v2064_v23 = vadd.f32 %v2063_v12, %v4547_v51  ;;  %v2440_v43 = vadd.f32 %v2208_v24, %v2200_v15 }
 0x30e   : > { %v2112_v56 = vpop.f32.mrf.mxu3  ;;  %v1968_v25 = vpop.f32.mrf.mxu0 }
 0x30f   : > { %v2361_v59 = vadd.f32 %v2360_v20, %v2359_v9  ;;  %v1969_v48 = vadd.f32 %v1968_v25, %v4542_v34  ;;  %v2113_v42 = vadd.f32 %v2112_v56, %v2064_v23  ;;  %v2201_v56 = vmax.f32 %v2111_v50, 0.0 }
 0x310   : > { %v2017_v49 = vpop.f32.mrf.mxu1 }
 0x311   : > { %v2480_v54 = vmul.f32 %v4242_v45, %v2361_v59  ;;  %v2209_v55 = vmax.f32 %v2113_v42, 0.0 }
 0x313   : > { %v2510_v21 = vrot.slane %v2480_v54, 2 }
 0x314   : > { %v2066_v63 = vpop.f32.mrf.mxu2 }
 0x315   : > { %v2524_v35 = vsel %vm2519_vm2, %v2509_v39, %v2510_v21  ;;  %v2067_v0 = vadd.f32 %v2066_v63, %v4547_v51 }
 0x316   : > { %v2115_v41 = vpop.f32.mrf.mxu3  ;;  %v1970_v3 = vpop.f32.mrf.mxu0  ;;  %v4574_v8 = vsel %vm2521_vm3, %v4521_v40, %v2524_v35  ;;  %v2018_v40 = vadd.f32 %v2017_v49, %v1969_v48 }
 0x317   : > { %v1971_v22 = vadd.f32 %v1970_v3, %v4542_v34  ;;  %v2116_v57 = vadd.f32 %v2115_v41, %v2067_v0  ;;  %v2453_v41 = vadd.f32 %v2209_v55, %v2201_v56 }
 0x318   : > { %v2019_v1 = vpop.f32.mrf.mxu1  ;;  %v2216_v38 = vmax.f32 %v2018_v40, 0.0 }
 0x319   : > { %v2020_v30 = vadd.f32 %v2019_v1, %v1971_v22  ;;  %v2217_v58 = vmax.f32 %v2116_v57, 0.0 }
 0x31a   : > { %v2441_v27 = vadd.f32 %v2440_v43, %v2216_v38 }
 0x31b   : > { %v2224_v52 = vmax.f32 %v2020_v30, 0.0 }
 0x31c   : > { %v2068_v17 = vpop.f32.mrf.mxu2 }
 0x31d   : > { %v2069_v2 = vadd.f32 %v2068_v17, %v4547_v51  ;;  %v2442_v20 = vadd.f32 %v2441_v27, %v2224_v52 }
 0x31e   : > { %v2117_v29 = vpop.f32.mrf.mxu3  ;;  %v1973_v5 = vpop.f32.mrf.mxu0 }
 0x31f   : > { %v1974_v19 = vadd.f32 %v1973_v5, %v4542_v34  ;;  %v2118_v9 = vadd.f32 %v2117_v29, %v2069_v2 }
 0x320   : > { %v2022_v6 = vpop.f32.mrf.mxu1 }
 0x321   : > { %v2023_v61 = vadd.f32 %v2022_v6, %v1974_v19  ;;  %v2225_v3 = vmax.f32 %v2118_v9, 0.0  ;;  %v2454_v6 = vadd.f32 %v2453_v41, %v2217_v58 }
 0x323   : > { %v2232_v46 = vmax.f32 %v2023_v61, 0.0 }
 0x324   : > { %v2071_v7 = vpop.f32.mrf.mxu2 }
 0x325   : > { %v2072_v16 = vadd.f32 %v2071_v7, %v4547_v51  ;;  %v2443_v21 = vadd.f32 %v2442_v20, %v2232_v46 }
 0x326   : > { %v2120_v13 = vpop.f32.mrf.mxu3  ;;  %v1975_v47 = vpop.f32.mrf.mxu0 }
 0x327   : > { %v1976_v28 = vadd.f32 %v1975_v47, %v4542_v34  ;;  %v2121_v59 = vadd.f32 %v2120_v13, %v2072_v16  ;;  %v2455_v13 = vadd.f32 %v2454_v6, %v2225_v3 }
 0x328   : > { %v2024_v18 = vpop.f32.mrf.mxu1 }
 0x329   : > { %v2025_v26 = vadd.f32 %v2024_v18, %v1976_v28  ;;  %v2233_v60 = vmax.f32 %v2121_v59, 0.0 }
 0x32b   : > { %v2240_v25 = vmax.f32 %v2025_v26, 0.0  ;;  %v2456_v22 = vadd.f32 %v2455_v13, %v2233_v60 }
 0x32c   : > { %v2073_v36 = vpop.f32.mrf.mxu2 }
 0x32d   : > { %v2074_v12 = vadd.f32 %v2073_v36, %v4547_v51  ;;  %v2444_v29 = vadd.f32 %v2443_v21, %v2240_v25 }
 0x32e   : > { %v2122_v14 = vpop.f32.mrf.mxu3  ;;  %v1978_v37 = vpop.f32.mrf.mxu0 }
 0x32f   : > { %v1979_v11 = vadd.f32 %v1978_v37, %v4542_v34  ;;  %v2123_v1 = vadd.f32 %v2122_v14, %v2074_v12 }
 0x330   : > { %v2027_v62 = vpop.f32.mrf.mxu1 }
 0x331   : > { %v2028_v44 = vadd.f32 %v2027_v62, %v1979_v11  ;;  %v2241_v48 = vmax.f32 %v2123_v1, 0.0 }
 0x333   : > { %v2248_v63 = vmax.f32 %v2028_v44, 0.0  ;;  %v2457_v23 = vadd.f32 %v2456_v22, %v2241_v48 }
 0x334   : > { %v2076_v49 = vpop.f32.mrf.mxu2 }
 0x335   : > { %v2077_v54 = vadd.f32 %v2076_v49, %v4547_v51  ;;  %v2445_v47 = vadd.f32 %v2444_v29, %v2248_v63 }
 0x336   : > { %v2125_v39 = vpop.f32.mrf.mxu3  ;;  %v1980_v53 = vpop.f32.mrf.mxu0 }
 0x337   : > { %v1981_v35 = vadd.f32 %v1980_v53, %v4542_v34  ;;  %v2126_v7 = vadd.f32 %v2125_v39, %v2077_v54 }
 0x338   : > { %v2029_v17 = vpop.f32.mrf.mxu1 }
 0x339   : > { %v2030_v5 = vadd.f32 %v2029_v17, %v1981_v35  ;;  %v2249_v4 = vmax.f32 %v2126_v7, 0.0 }
 0x33b   : > { %v2256_v32 = vmax.f32 %v2030_v5, 0.0  ;;  %v2458_v28 = vadd.f32 %v2457_v23, %v2249_v4 }
 0x33c   : > { %v2078_v33 = vpop.f32.mrf.mxu2 }
 0x33d   : > { %v2446_v18 = vadd.f32 %v2445_v47, %v2256_v32  ;;  %v2079_v40 = vadd.f32 %v2078_v33, %v4547_v51 }
 0x33e   : > { %v2127_v19 = vpop.f32.mrf.mxu3 }
 0x33f   : > { %v2447_v34 = vrot.slane %v2446_v18, 4  ;;  %v2128_v24 = vadd.f32 %v2127_v19, %v2079_v40 }
 0x341   : > { %v2448_v30 = vadd.f32 %v2447_v34, %v2446_v18  ;;  %v2257_v36 = vmax.f32 %v2128_v24, 0.0 }
 0x343   : > { %v2449_v10 = vrot.slane %v2448_v30, 2  ;;  %v2459_v0 = vadd.f32 %v2458_v28, %v2257_v36 }
 0x345   : > { %v2450_v14 = vadd.f32 %v2449_v10, %v2448_v30  ;;  %v2460_v37 = vrot.slane %v2459_v0, 4 }
 0x347   : > { %v2451_v15 = vrot.slane %v2450_v14, 1  ;;  %v2461_v38 = vadd.f32 %v2460_v37, %v2459_v0 }
 0x349   : > { %v2462_v61 = vrot.slane %v2461_v38, 2  ;;  %v2452_v11 = vadd.f32 %v2451_v15, %v2450_v14 }
 0x34b   : > { %v2463_v62 = vadd.f32 %v2462_v61, %v2461_v38  ;;  %v2487_v51 = vmul.f32 %v4242_v45, %v2452_v11 }
 0x34d   : > { %v2464_v42 = vrot.slane %v2463_v62, 1  ;;  %v2515_v52 = vrot.slane %v2487_v51, 4 }
 0x34f   : > { %v2465_v2 = vadd.f32 %v2464_v42, %v2463_v62 }
 0x351   : > { %v2488_v43 = vmul.f32 %v4242_v45, %v2465_v2 }
 0x353   : > { %v2516_v26 = vrot.slane %v2488_v43, 2 }
 0x355   : > { %v2530_v50 = vsel %vm2519_vm2, %v2515_v52, %v2516_v26 }
 0x356   : > { %v2531_v57 = vsel %vm2521_vm3, %v4556_v31, %v2530_v50 }
 0x357   : > { %v2547_v16 = vrot.slane %v2531_v57, 7 }
 0x359   : > { %v2548_v45 = vsel %vm2537_vm4, %v2547_v16, %v4574_v8 }
 0x35a   : > { %v2549_v27 = vsel %vm2539_vm5, %v2547_v16, %v2548_v45 }
 0x35b   : > { %v2550_v46 = vsel %vm2541_vm6, %v2547_v16, %v2549_v27 }
 0x35c   : > { %v2551_v44 = vsel %vm2543_vm7, %v2547_v16, %v2550_v46 }
 0x35d   : > { %2555 = vst [vmem:[%s4486_s11 + $0x8] sm:$0xff] %v2551_v44 }
 0x35e   : > { %3454 = shalt.err (!%p3451_p7)
}
 0x35f   : > { %3384 = dma.vmem_to_hbm [thread:$0]  (%p3551_p6), %s2571_s25, 256, %s2573_s26, %s2557_s16  }
 0x360 PF: > { %s2584_s4 = sand.u32 1, %s3477_s12   ;;  %p3387_p10 = pnand %p2649_p9, %p3555_p8 }
 0x361   : > { %s2585_s9 = scalar_lea.sflag [#allocation4], %s2584_s4 }
 0x362   : > { %p3388_p11 = pneg %p3387_p10 }
 0x364   : > { %3472 = dma.done.wait (%p3388_p11), %s2585_s9, 256  }
 0x365   : > { %3474 = vsyncadd (%p3388_p11), %s2585_s9, 4294967040  ;;  %p13_p12 = scmp.ge.s32.totalorder %s3537_s18, 4   ;;  %s4643_s12 = smov %s3481_s13 }
 0x366   : > { %s4644_s13 = smov %s3485_s14  ;;  %s4645_s14 = smov %s3549_s21 }
 0x367   : > { %s4646_s15 = smov %s3537_s18  ;;  %15 = sbr.rel (!%p13_p12) target bundleno = 3 (0x3), region = 98 }
 0x36c   :  { %2591 = vsyncpa [#allocation4], 1 }
 0x36d   :  { %2593 = vsyncpa [#allocation4 + $0x1], 1 }

</bundles_post_ra>
